<compile_context>
chip_gen: v6e
topology: v6e:2x2x1
jax: 0.10.0
libtpu: 0.0.40
codegen_flags: <defaults>
</compile_context>

<pallas_src>
import math

import jax
import jax.numpy as jnp
from jax.experimental import pallas as pl
from jax.experimental.pallas import tpu as pltpu

EPS = 1e-5


# ----------------------------------------------------------------------------
# In-kernel helpers
# ----------------------------------------------------------------------------
def _conv3x3(xp_ref, w_ref, b_ref, bn, h, w, c):
    """3x3 'same' conv on a zero-padded VMEM tile.

    xp_ref: (bn, h+2, w+2, c) f32 scratch (zero border).
    w_ref : (9, c, c) bf16, tap index kh*3+kw (HWIO order).
    Returns f32 (bn*h*w, c) accumulator (bias added).
    """
    acc = jnp.zeros((bn * h * w, c), jnp.float32)
    for kh in range(3):
        for kw in range(3):
            patch = xp_ref[:, kh:kh + h, kw:kw + w, :].reshape(bn * h * w, c)
            acc = acc + jnp.dot(patch.astype(jnp.bfloat16), w_ref[kh * 3 + kw],
                                preferred_element_type=jnp.float32)
    return acc + b_ref[...]


def _write_stats(acc, s_ref, ss_ref, c):
    s_ref[...] = jnp.sum(acc, axis=0, keepdims=True).reshape(1, 1, c)
    ss_ref[...] = jnp.sum(acc * acc, axis=0, keepdims=True).reshape(1, 1, c)


# ----------------------------------------------------------------------------
# Pass 1: conv1 + partial BN1 statistics
# ----------------------------------------------------------------------------
def stage1_kernel(x_ref, w_ref, b_ref, y1_ref, s_ref, ss_ref, xp_ref):
    bn, h, w, c = x_ref.shape
    xp_ref[...] = jnp.zeros_like(xp_ref)          # zero border = conv padding
    xp_ref[:, 1:h + 1, 1:w + 1, :] = x_ref[...]
    acc = _conv3x3(xp_ref, w_ref, b_ref, bn, h, w, c)
    y1_ref[...] = acc.reshape(bn, h, w, c)
    _write_stats(acc, s_ref, ss_ref, c)


# ----------------------------------------------------------------------------
# Pass 2: apply BN1 (folded scale/shift) + PReLU, zero-pad in VMEM, conv2,
#         partial BN2 statistics.  The PReLU activation never leaves VMEM.
# ----------------------------------------------------------------------------
def stage2_kernel(y1_ref, sc_ref, sh_ref, a_ref, w_ref, b_ref,
                  y2_ref, s_ref, ss_ref, zp_ref):
    bn, h, w, c = y1_ref.shape
    scale = sc_ref[...].reshape(1, 1, 1, c)
    shift = sh_ref[...].reshape(1, 1, 1, c)
    z = y1_ref[...] * scale + shift               # BN1 as a single FMA
    alpha = a_ref[0, 0]                           # PReLU slope from SMEM
    z = jnp.where(z > 0, z, z * alpha)
    zp_ref[...] = jnp.zeros_like(zp_ref)
    zp_ref[:, 1:h + 1, 1:w + 1, :] = z
    acc = _conv3x3(zp_ref, w_ref, b_ref, bn, h, w, c)
    y2_ref[...] = acc.reshape(bn, h, w, c)
    _write_stats(acc, s_ref, ss_ref, c)


# ----------------------------------------------------------------------------
# Pass 3: apply BN2 (folded) + residual add
# ----------------------------------------------------------------------------
def stage3_kernel(x_ref, y2_ref, sc_ref, sh_ref, o_ref):
    c = x_ref.shape[-1]
    scale = sc_ref[...].reshape(1, 1, 1, c)
    shift = sh_ref[...].reshape(1, 1, 1, c)
    o_ref[...] = x_ref[...] + y2_ref[...] * scale + shift


# ----------------------------------------------------------------------------
# Wrapper
# ----------------------------------------------------------------------------
def _fold_bn(s, ss, count, gamma, beta):
    """Combine per-tile partial sums into a single (scale, shift) pair."""
    s = jnp.sum(s, axis=0).reshape(-1)
    ss = jnp.sum(ss, axis=0).reshape(-1)
    mean = s / count
    var = ss / count - mean * mean                # biased variance
    inv = jax.lax.rsqrt(var + EPS)
    scale = gamma.reshape(-1) * inv
    shift = beta.reshape(-1) - mean * scale
    return scale.reshape(1, -1).astype(jnp.float32), \
           shift.reshape(1, -1).astype(jnp.float32)


@jax.jit
def residual_block(x_nchw, params):
    x = jnp.transpose(x_nchw, (0, 2, 3, 1)).astype(jnp.float32)   # NHWC
    n, h, w, c = x.shape
    bn = 1                       # batch elements per tile (no halo needed)
    nt = n // bn
    count = n * h * w

    w1 = params["w1"].astype(jnp.bfloat16)
    w2 = params["w2"].astype(jnp.bfloat16)

    cparams = pltpu.CompilerParams(
        dimension_semantics=("parallel",),        # megacore-shard the batch
        vmem_limit_bytes=64 * 1024 * 1024,
    )

    tile = pl.BlockSpec((bn, h, w, c), lambda i: (i, 0, 0, 0))
    stat = pl.BlockSpec((1, 1, c), lambda i: (i, 0, 0))
    smem = pl.BlockSpec(memory_space=pltpu.MemorySpace.SMEM)

    def full(a):
        return pl.BlockSpec(a.shape, lambda i, nd=a.ndim: (0,) * nd)

    stat_shapes = [
        jax.ShapeDtypeStruct((nt, 1, c), jnp.float32),
        jax.ShapeDtypeStruct((nt, 1, c), jnp.float32),
    ]

    # ---- pass 1: conv1 + BN1 partial stats -------------------------------
    y1, s1, ss1 = pl.pallas_call(
        stage1_kernel,
        grid=(nt,),
        in_specs=[tile, full(w1), full(params["b1"])],
        out_specs=[tile, stat, stat],
        out_shape=[jax.ShapeDtypeStruct((n, h, w, c), jnp.float32)] + stat_shapes,
        scratch_shapes=[pltpu.VMEM((bn, h + 2, w + 2, c), jnp.float32)],
        compiler_params=cparams,
    )(x, w1, params["b1"])

    scale1, shift1 = _fold_bn(s1, ss1, count, params["g1"], params["be1"])

    # ---- pass 2: BN1 + PReLU + conv2 + BN2 partial stats -----------------
    y2, s2, ss2 = pl.pallas_call(
        stage2_kernel,
        grid=(nt,),
        in_specs=[tile, full(scale1), full(shift1), smem,
                  full(w2), full(params["b2"])],
        out_specs=[tile, stat, stat],
        out_shape=[jax.ShapeDtypeStruct((n, h, w, c), jnp.float32)] + stat_shapes,
        scratch_shapes=[pltpu.VMEM((bn, h + 2, w + 2, c), jnp.float32)],
        compiler_params=cparams,
    )(y1, scale1, shift1, params["a"], w2, params["b2"])

    scale2, shift2 = _fold_bn(s2, ss2, count, params["g2"], params["be2"])

    # ---- pass 3: BN2 + residual add --------------------------------------
    out_nhwc = pl.pallas_call(
        stage3_kernel,
        grid=(nt,),
        in_specs=[tile, tile, full(scale2), full(shift2)],
        out_specs=tile,
        out_shape=jax.ShapeDtypeStruct((n, h, w, c), jnp.float32),
        compiler_params=cparams,
    )(x, y2, scale2, shift2)

    return jnp.transpose(out_nhwc, (0, 3, 1, 2))                  # NCHW


# ----------------------------------------------------------------------------
# Params & pure-JAX reference (same bf16-matmul / f32-accumulate precision)
# ----------------------------------------------------------------------------
def init_params(key, c):
    """Conv weights stored as (9, Cin, Cout), tap index kh*3+kw (HWIO)."""
    k0, k1, k2, k3 = jax.random.split(key, 4)
    fan_in = c * 9
    bound = 1.0 / math.sqrt(fan_in)
    u = lambda k, s: jax.random.uniform(k, s, jnp.float32, -bound, bound)
    return dict(
        w1=u(k0, (9, c, c)), b1=u(k1, (1, c)),
        g1=jnp.ones((1, c), jnp.float32), be1=jnp.zeros((1, c), jnp.float32),
        a=jnp.full((1, 1), 0.25, jnp.float32),
        w2=u(k2, (9, c, c)), b2=u(k3, (1, c)),
        g2=jnp.ones((1, c), jnp.float32), be2=jnp.zeros((1, c), jnp.float32),
    )


def ref_residual_block(x_nchw, params):
    x = jnp.transpose(x_nchw, (0, 2, 3, 1)).astype(jnp.float32)
    c = x.shape[-1]

    def conv(z, w9, b):
        w = w9.reshape(3, 3, c, c).astype(jnp.bfloat16)
        y = jax.lax.conv_general_dilated(
            z.astype(jnp.bfloat16), w, (1, 1), "SAME",
            dimension_numbers=("NHWC", "HWIO", "NHWC"),
            preferred_element_type=jnp.float32)
        return y + b.reshape(1, 1, 1, c)

    def bnorm(z, g, be):
        mean = jnp.mean(z, axis=(0, 1, 2), keepdims=True)
        var = jnp.mean((z - mean) ** 2, axis=(0, 1, 2), keepdims=True)
        return (z - mean) * jax.lax.rsqrt(var + EPS) * g.reshape(1, 1, 1, c) \
            + be.reshape(1, 1, 1, c)

    y = conv(x, params["w1"], params["b1"])
    y = bnorm(y, params["g1"], params["be1"])
    y = jnp.where(y > 0, y, params["a"][0, 0] * y)
    y = conv(y, params["w2"], params["b2"])
    y = bnorm(y, params["g2"], params["be2"])
    return jnp.transpose(x + y, (0, 3, 1, 2))


if __name__ == "__main__":
    key = jax.random.PRNGKey(0)
    k_x, k_p = jax.random.split(key)
    N, C, H, W = 2, 4, 16, 16
    x = jax.random.normal(k_x, (N, C, H, W), jnp.float32)   # NCHW like PyTorch
    params = init_params(k_p, C)

    out = jax.block_until_ready(residual_block(x, params))
    ref = ref_residual_block(x, params)

    assert out.shape == (N, C, H, W), out.shape
    err = float(jnp.max(jnp.abs(out - ref)))
    assert err < 5e-3, f"max abs err {err}"

    print("KERNEL_OK")
</pallas_src>

<mosaic_0001>
module attributes {stable_mosaic.version = 11 : i64} {
  func.func @stage3_kernel(%arg0: i32, %arg1: memref<1x16x16x4xf32, #tpu.memory_space<vmem>>, %arg2: memref<1x16x16x4xf32, #tpu.memory_space<vmem>>, %arg3: memref<1x4xf32, #tpu.memory_space<vmem>>, %arg4: memref<1x4xf32, #tpu.memory_space<vmem>>, %arg5: memref<1x16x16x4xf32, #tpu.memory_space<vmem>>) attributes {dimension_semantics = [#tpu.dimension_semantics<parallel>], iteration_bounds = array<i64: 2>, scalar_prefetch = 0 : i64, scratch_operands = 0 : i64, tpu.core_type = #tpu.core_type<tc>, window_params = [{transform_indices = @transform_0, window_bounds = array<i64: 1, 16, 16, 4>}, {transform_indices = @transform_1, window_bounds = array<i64: 1, 16, 16, 4>}, {pipeline_mode = #tpu.pipeline_mode<synchronous>, transform_indices = @transform_2, window_bounds = array<i64: 1, 4>}, {pipeline_mode = #tpu.pipeline_mode<synchronous>, transform_indices = @transform_3, window_bounds = array<i64: 1, 4>}, {transform_indices = @transform_4, window_bounds = array<i64: 1, 16, 16, 4>}]} {
    %c0 = arith.constant 0 : index
    %c0_0 = arith.constant 0 : index
    %0 = vector.load %arg3[%c0, %c0_0] : memref<1x4xf32, #tpu.memory_space<vmem>>, vector<1x4xf32>
    %1 = vector.shape_cast %0 : vector<1x4xf32> to vector<1x1x1x4xf32>
    %c0_1 = arith.constant 0 : index
    %c0_2 = arith.constant 0 : index
    %2 = vector.load %arg4[%c0_1, %c0_2] : memref<1x4xf32, #tpu.memory_space<vmem>>, vector<1x4xf32>
    %3 = vector.shape_cast %2 : vector<1x4xf32> to vector<1x1x1x4xf32>
    %c0_3 = arith.constant 0 : index
    %c0_4 = arith.constant 0 : index
    %c0_5 = arith.constant 0 : index
    %c0_6 = arith.constant 0 : index
    %4 = vector.load %arg1[%c0_3, %c0_4, %c0_5, %c0_6] : memref<1x16x16x4xf32, #tpu.memory_space<vmem>>, vector<1x16x16x4xf32>
    %c0_7 = arith.constant 0 : index
    %c0_8 = arith.constant 0 : index
    %c0_9 = arith.constant 0 : index
    %c0_10 = arith.constant 0 : index
    %5 = vector.load %arg2[%c0_7, %c0_8, %c0_9, %c0_10] : memref<1x16x16x4xf32, #tpu.memory_space<vmem>>, vector<1x16x16x4xf32>
    %6 = vector.broadcast %1 : vector<1x1x1x4xf32> to vector<1x16x16x4xf32>
    %7 = arith.mulf %5, %6 : vector<1x16x16x4xf32>
    %8 = arith.addf %4, %7 : vector<1x16x16x4xf32>
    %9 = vector.broadcast %3 : vector<1x1x1x4xf32> to vector<1x16x16x4xf32>
    %10 = arith.addf %8, %9 : vector<1x16x16x4xf32>
    %c0_11 = arith.constant 0 : index
    %c0_12 = arith.constant 0 : index
    %c0_13 = arith.constant 0 : index
    %c0_14 = arith.constant 0 : index
    %11 = vector.load %arg5[%c0_11, %c0_12, %c0_13, %c0_14] : memref<1x16x16x4xf32, #tpu.memory_space<vmem>>, vector<1x16x16x4xf32>
    tpu.vector_store %arg5[%c0_11, %c0_12, %c0_13, %c0_14], %10 {strides = array<i32>} : memref<1x16x16x4xf32, #tpu.memory_space<vmem>>, vector<1x16x16x4xf32>,
    return
  }
  func.func @transform_0(%arg0: i32) -> (i32, i32, i32, i32) {
    %c0_i32 = arith.constant 0 : i32
    %c0_i32_0 = arith.constant 0 : i32
    %c0_i32_1 = arith.constant 0 : i32
    %c0_i32_2 = arith.constant 0 : i32
    return %arg0, %c0_i32, %c0_i32_0, %c0_i32_1 : i32, i32, i32, i32
  }
  func.func @transform_1(%arg0: i32) -> (i32, i32, i32, i32) {
    %c0_i32 = arith.constant 0 : i32
    %c0_i32_0 = arith.constant 0 : i32
    %c0_i32_1 = arith.constant 0 : i32
    %c0_i32_2 = arith.constant 0 : i32
    return %arg0, %c0_i32, %c0_i32_0, %c0_i32_1 : i32, i32, i32, i32
  }
  func.func @transform_2(%arg0: i32) -> (i32, i32) {
    %c0_i32 = arith.constant 0 : i32
    %c0_i32_0 = arith.constant 0 : i32
    %c0_i32_1 = arith.constant 0 : i32
    return %c0_i32, %c0_i32_0 : i32, i32
  }
  func.func @transform_3(%arg0: i32) -> (i32, i32) {
    %c0_i32 = arith.constant 0 : i32
    %c0_i32_0 = arith.constant 0 : i32
    %c0_i32_1 = arith.constant 0 : i32
    return %c0_i32, %c0_i32_0 : i32, i32
  }
  func.func @transform_4(%arg0: i32) -> (i32, i32, i32, i32) {
    %c0_i32 = arith.constant 0 : i32
    %c0_i32_0 = arith.constant 0 : i32
    %c0_i32_1 = arith.constant 0 : i32
    %c0_i32_2 = arith.constant 0 : i32
    return %arg0, %c0_i32, %c0_i32_0, %c0_i32_1 : i32, i32, i32, i32
  }
}

module attributes {stable_mosaic.version = 11 : i64} {
  func.func @stage1_kernel(%arg0: i32, %arg1: memref<1x16x16x4xf32, #tpu.memory_space<vmem>>, %arg2: memref<9x4x4xbf16, #tpu.memory_space<vmem>>, %arg3: memref<1x4xf32, #tpu.memory_space<vmem>>, %arg4: memref<1x16x16x4xf32, #tpu.memory_space<vmem>>, %arg5: memref<1x1x4xf32, #tpu.memory_space<vmem>>, %arg6: memref<1x1x4xf32, #tpu.memory_space<vmem>>, %arg7: memref<1x18x18x4xf32, #tpu.memory_space<vmem>>) attributes {dimension_semantics = [#tpu.dimension_semantics<parallel>], iteration_bounds = array<i64: 2>, scalar_prefetch = 0 : i64, scratch_operands = 1 : i64, tpu.core_type = #tpu.core_type<tc>, window_params = [{transform_indices = @transform_0, window_bounds = array<i64: 1, 16, 16, 4>}, {pipeline_mode = #tpu.pipeline_mode<synchronous>, transform_indices = @transform_1, window_bounds = array<i64: 9, 4, 4>}, {pipeline_mode = #tpu.pipeline_mode<synchronous>, transform_indices = @transform_2, window_bounds = array<i64: 1, 4>}, {transform_indices = @transform_3, window_bounds = array<i64: 1, 16, 16, 4>}, {transform_indices = @transform_4, window_bounds = array<i64: 1, 1, 4>}, {transform_indices = @transform_5, window_bounds = array<i64: 1, 1, 4>}]} {
    %cst = arith.constant 0.000000e+00 : f32
    %0 = vector.broadcast %cst : f32 to vector<1x18x18x4xf32>
    %c0 = arith.constant 0 : index
    %c0_0 = arith.constant 0 : index
    %c0_1 = arith.constant 0 : index
    %c0_2 = arith.constant 0 : index
    %1 = vector.load %arg7[%c0, %c0_0, %c0_1, %c0_2] : memref<1x18x18x4xf32, #tpu.memory_space<vmem>>, vector<1x18x18x4xf32>
    tpu.vector_store %arg7[%c0, %c0_0, %c0_1, %c0_2], %0 {strides = array<i32>} : memref<1x18x18x4xf32, #tpu.memory_space<vmem>>, vector<1x18x18x4xf32>,
    %c0_3 = arith.constant 0 : index
    %c0_4 = arith.constant 0 : index
    %c0_5 = arith.constant 0 : index
    %c0_6 = arith.constant 0 : index
    %2 = vector.load %arg1[%c0_3, %c0_4, %c0_5, %c0_6] : memref<1x16x16x4xf32, #tpu.memory_space<vmem>>, vector<1x16x16x4xf32>
    %c0_7 = arith.constant 0 : index
    %c1 = arith.constant 1 : index
    %c1_8 = arith.constant 1 : index
    %c0_9 = arith.constant 0 : index
    %3 = vector.load %arg7[%c0_7, %c1, %c1_8, %c0_9] : memref<1x18x18x4xf32, #tpu.memory_space<vmem>>, vector<1x16x16x4xf32>
    tpu.vector_store %arg7[%c0_7, %c1, %c1_8, %c0_9], %2 {strides = array<i32>} : memref<1x18x18x4xf32, #tpu.memory_space<vmem>>, vector<1x16x16x4xf32>,
    %cst_10 = arith.constant 0.000000e+00 : f32
    %4 = vector.broadcast %cst_10 : f32 to vector<256x4xf32>
    %c0_11 = arith.constant 0 : index
    %c0_12 = arith.constant 0 : index
    %c0_13 = arith.constant 0 : index
    %c0_14 = arith.constant 0 : index
    %5 = vector.load %arg7[%c0_11, %c0_12, %c0_13, %c0_14] : memref<1x18x18x4xf32, #tpu.memory_space<vmem>>, vector<1x16x16x4xf32>
    %6 = vector.shape_cast %5 : vector<1x16x16x4xf32> to vector<256x4xf32>
    %7 = arith.truncf %6 : vector<256x4xf32> to vector<256x4xbf16>
    %c0_15 = arith.constant 0 : index
    %c0_16 = arith.constant 0 : index
    %c0_17 = arith.constant 0 : index
    %8 = vector.load %arg2[%c0_15, %c0_16, %c0_17] : memref<9x4x4xbf16, #tpu.memory_space<vmem>>, vector<1x4x4xbf16>
    %9 = vector.shape_cast %8 : vector<1x4x4xbf16> to vector<4x4xbf16>
    %cst_18 = arith.constant dense<0.000000e+00> : vector<256x4xf32>
    %10 = tpu.matmul %7, %9, %cst_18 {dimension_numbers = #tpu.dot_dimension_numbers<[1], [0], [0], [1], [0, 0, 1, 1], [], []>} : vector<256x4xbf16>, vector<4x4xbf16>, vector<256x4xf32> -> vector<256x4xf32>
    %11 = arith.addf %4, %10 : vector<256x4xf32>
    %c0_19 = arith.constant 0 : index
    %c0_20 = arith.constant 0 : index
    %c1_21 = arith.constant 1 : index
    %c0_22 = arith.constant 0 : index
    %12 = vector.load %arg7[%c0_19, %c0_20, %c1_21, %c0_22] : memref<1x18x18x4xf32, #tpu.memory_space<vmem>>, vector<1x16x16x4xf32>
    %13 = vector.shape_cast %12 : vector<1x16x16x4xf32> to vector<256x4xf32>
    %14 = arith.truncf %13 : vector<256x4xf32> to vector<256x4xbf16>
    %c1_23 = arith.constant 1 : index
    %c0_24 = arith.constant 0 : index
    %c0_25 = arith.constant 0 : index
    %15 = vector.load %arg2[%c1_23, %c0_24, %c0_25] : memref<9x4x4xbf16, #tpu.memory_space<vmem>>, vector<1x4x4xbf16>
    %16 = vector.shape_cast %15 : vector<1x4x4xbf16> to vector<4x4xbf16>
    %cst_26 = arith.constant dense<0.000000e+00> : vector<256x4xf32>
    %17 = tpu.matmul %14, %16, %cst_26 {dimension_numbers = #tpu.dot_dimension_numbers<[1], [0], [0], [1], [0, 0, 1, 1], [], []>} : vector<256x4xbf16>, vector<4x4xbf16>, vector<256x4xf32> -> vector<256x4xf32>
    %18 = arith.addf %11, %17 : vector<256x4xf32>
    %c0_27 = arith.constant 0 : index
    %c0_28 = arith.constant 0 : index
    %c2 = arith.constant 2 : index
    %c0_29 = arith.constant 0 : index
    %19 = vector.load %arg7[%c0_27, %c0_28, %c2, %c0_29] : memref<1x18x18x4xf32, #tpu.memory_space<vmem>>, vector<1x16x16x4xf32>
    %20 = vector.shape_cast %19 : vector<1x16x16x4xf32> to vector<256x4xf32>
    %21 = arith.truncf %20 : vector<256x4xf32> to vector<256x4xbf16>
    %c2_30 = arith.constant 2 : index
    %c0_31 = arith.constant 0 : index
    %c0_32 = arith.constant 0 : index
    %22 = vector.load %arg2[%c2_30, %c0_31, %c0_32] : memref<9x4x4xbf16, #tpu.memory_space<vmem>>, vector<1x4x4xbf16>
    %23 = vector.shape_cast %22 : vector<1x4x4xbf16> to vector<4x4xbf16>
    %cst_33 = arith.constant dense<0.000000e+00> : vector<256x4xf32>
    %24 = tpu.matmul %21, %23, %cst_33 {dimension_numbers = #tpu.dot_dimension_numbers<[1], [0], [0], [1], [0, 0, 1, 1], [], []>} : vector<256x4xbf16>, vector<4x4xbf16>, vector<256x4xf32> -> vector<256x4xf32>
    %25 = arith.addf %18, %24 : vector<256x4xf32>
    %c0_34 = arith.constant 0 : index
    %c1_35 = arith.constant 1 : index
    %c0_36 = arith.constant 0 : index
    %c0_37 = arith.constant 0 : index
    %26 = vector.load %arg7[%c0_34, %c1_35, %c0_36, %c0_37] : memref<1x18x18x4xf32, #tpu.memory_space<vmem>>, vector<1x16x16x4xf32>
    %27 = vector.shape_cast %26 : vector<1x16x16x4xf32> to vector<256x4xf32>
    %28 = arith.truncf %27 : vector<256x4xf32> to vector<256x4xbf16>
    %c3 = arith.constant 3 : index
    %c0_38 = arith.constant 0 : index
    %c0_39 = arith.constant 0 : index
    %29 = vector.load %arg2[%c3, %c0_38, %c0_39] : memref<9x4x4xbf16, #tpu.memory_space<vmem>>, vector<1x4x4xbf16>
    %30 = vector.shape_cast %29 : vector<1x4x4xbf16> to vector<4x4xbf16>
    %cst_40 = arith.constant dense<0.000000e+00> : vector<256x4xf32>
    %31 = tpu.matmul %28, %30, %cst_40 {dimension_numbers = #tpu.dot_dimension_numbers<[1], [0], [0], [1], [0, 0, 1, 1], [], []>} : vector<256x4xbf16>, vector<4x4xbf16>, vector<256x4xf32> -> vector<256x4xf32>
    %32 = arith.addf %25, %31 : vector<256x4xf32>
    %c0_41 = arith.constant 0 : index
    %c1_42 = arith.constant 1 : index
    %c1_43 = arith.constant 1 : index
    %c0_44 = arith.constant 0 : index
    %33 = vector.load %arg7[%c0_41, %c1_42, %c1_43, %c0_44] : memref<1x18x18x4xf32, #tpu.memory_space<vmem>>, vector<1x16x16x4xf32>
    %34 = vector.shape_cast %33 : vector<1x16x16x4xf32> to vector<256x4xf32>
    %35 = arith.truncf %34 : vector<256x4xf32> to vector<256x4xbf16>
    %c4 = arith.constant 4 : index
    %c0_45 = arith.constant 0 : index
    %c0_46 = arith.constant 0 : index
    %36 = vector.load %arg2[%c4, %c0_45, %c0_46] : memref<9x4x4xbf16, #tpu.memory_space<vmem>>, vector<1x4x4xbf16>
    %37 = vector.shape_cast %36 : vector<1x4x4xbf16> to vector<4x4xbf16>
    %cst_47 = arith.constant dense<0.000000e+00> : vector<256x4xf32>
    %38 = tpu.matmul %35, %37, %cst_47 {dimension_numbers = #tpu.dot_dimension_numbers<[1], [0], [0], [1], [0, 0, 1, 1], [], []>} : vector<256x4xbf16>, vector<4x4xbf16>, vector<256x4xf32> -> vector<256x4xf32>
    %39 = arith.addf %32, %38 : vector<256x4xf32>
    %c0_48 = arith.constant 0 : index
    %c1_49 = arith.constant 1 : index
    %c2_50 = arith.constant 2 : index
    %c0_51 = arith.constant 0 : index
    %40 = vector.load %arg7[%c0_48, %c1_49, %c2_50, %c0_51] : memref<1x18x18x4xf32, #tpu.memory_space<vmem>>, vector<1x16x16x4xf32>
    %41 = vector.shape_cast %40 : vector<1x16x16x4xf32> to vector<256x4xf32>
    %42 = arith.truncf %41 : vector<256x4xf32> to vector<256x4xbf16>
    %c5 = arith.constant 5 : index
    %c0_52 = arith.constant 0 : index
    %c0_53 = arith.constant 0 : index
    %43 = vector.load %arg2[%c5, %c0_52, %c0_53] : memref<9x4x4xbf16, #tpu.memory_space<vmem>>, vector<1x4x4xbf16>
    %44 = vector.shape_cast %43 : vector<1x4x4xbf16> to vector<4x4xbf16>
    %cst_54 = arith.constant dense<0.000000e+00> : vector<256x4xf32>
    %45 = tpu.matmul %42, %44, %cst_54 {dimension_numbers = #tpu.dot_dimension_numbers<[1], [0], [0], [1], [0, 0, 1, 1], [], []>} : vector<256x4xbf16>, vector<4x4xbf16>, vector<256x4xf32> -> vector<256x4xf32>
    %46 = arith.addf %39, %45 : vector<256x4xf32>
    %c0_55 = arith.constant 0 : index
    %c2_56 = arith.constant 2 : index
    %c0_57 = arith.constant 0 : index
    %c0_58 = arith.constant 0 : index
    %47 = vector.load %arg7[%c0_55, %c2_56, %c0_57, %c0_58] : memref<1x18x18x4xf32, #tpu.memory_space<vmem>>, vector<1x16x16x4xf32>
    %48 = vector.shape_cast %47 : vector<1x16x16x4xf32> to vector<256x4xf32>
    %49 = arith.truncf %48 : vector<256x4xf32> to vector<256x4xbf16>
    %c6 = arith.constant 6 : index
    %c0_59 = arith.constant 0 : index
    %c0_60 = arith.constant 0 : index
    %50 = vector.load %arg2[%c6, %c0_59, %c0_60] : memref<9x4x4xbf16, #tpu.memory_space<vmem>>, vector<1x4x4xbf16>
    %51 = vector.shape_cast %50 : vector<1x4x4xbf16> to vector<4x4xbf16>
    %cst_61 = arith.constant dense<0.000000e+00> : vector<256x4xf32>
    %52 = tpu.matmul %49, %51, %cst_61 {dimension_numbers = #tpu.dot_dimension_numbers<[1], [0], [0], [1], [0, 0, 1, 1], [], []>} : vector<256x4xbf16>, vector<4x4xbf16>, vector<256x4xf32> -> vector<256x4xf32>
    %53 = arith.addf %46, %52 : vector<256x4xf32>
    %c0_62 = arith.constant 0 : index
    %c2_63 = arith.constant 2 : index
    %c1_64 = arith.constant 1 : index
    %c0_65 = arith.constant 0 : index
    %54 = vector.load %arg7[%c0_62, %c2_63, %c1_64, %c0_65] : memref<1x18x18x4xf32, #tpu.memory_space<vmem>>, vector<1x16x16x4xf32>
    %55 = vector.shape_cast %54 : vector<1x16x16x4xf32> to vector<256x4xf32>
    %56 = arith.truncf %55 : vector<256x4xf32> to vector<256x4xbf16>
    %c7 = arith.constant 7 : index
    %c0_66 = arith.constant 0 : index
    %c0_67 = arith.constant 0 : index
    %57 = vector.load %arg2[%c7, %c0_66, %c0_67] : memref<9x4x4xbf16, #tpu.memory_space<vmem>>, vector<1x4x4xbf16>
    %58 = vector.shape_cast %57 : vector<1x4x4xbf16> to vector<4x4xbf16>
    %cst_68 = arith.constant dense<0.000000e+00> : vector<256x4xf32>
    %59 = tpu.matmul %56, %58, %cst_68 {dimension_numbers = #tpu.dot_dimension_numbers<[1], [0], [0], [1], [0, 0, 1, 1], [], []>} : vector<256x4xbf16>, vector<4x4xbf16>, vector<256x4xf32> -> vector<256x4xf32>
    %60 = arith.addf %53, %59 : vector<256x4xf32>
    %c0_69 = arith.constant 0 : index
    %c2_70 = arith.constant 2 : index
    %c2_71 = arith.constant 2 : index
    %c0_72 = arith.constant 0 : index
    %61 = vector.load %arg7[%c0_69, %c2_70, %c2_71, %c0_72] : memref<1x18x18x4xf32, #tpu.memory_space<vmem>>, vector<1x16x16x4xf32>
    %62 = vector.shape_cast %61 : vector<1x16x16x4xf32> to vector<256x4xf32>
    %63 = arith.truncf %62 : vector<256x4xf32> to vector<256x4xbf16>
    %c8 = arith.constant 8 : index
    %c0_73 = arith.constant 0 : index
    %c0_74 = arith.constant 0 : index
    %64 = vector.load %arg2[%c8, %c0_73, %c0_74] : memref<9x4x4xbf16, #tpu.memory_space<vmem>>, vector<1x4x4xbf16>
    %65 = vector.shape_cast %64 : vector<1x4x4xbf16> to vector<4x4xbf16>
    %cst_75 = arith.constant dense<0.000000e+00> : vector<256x4xf32>
    %66 = tpu.matmul %63, %65, %cst_75 {dimension_numbers = #tpu.dot_dimension_numbers<[1], [0], [0], [1], [0, 0, 1, 1], [], []>} : vector<256x4xbf16>, vector<4x4xbf16>, vector<256x4xf32> -> vector<256x4xf32>
    %67 = arith.addf %60, %66 : vector<256x4xf32>
    %c0_76 = arith.constant 0 : index
    %c0_77 = arith.constant 0 : index
    %68 = vector.load %arg3[%c0_76, %c0_77] : memref<1x4xf32, #tpu.memory_space<vmem>>, vector<1x4xf32>
    %69 = vector.broadcast %68 : vector<1x4xf32> to vector<256x4xf32>
    %70 = arith.addf %67, %69 : vector<256x4xf32>
    %71 = vector.shape_cast %70 : vector<256x4xf32> to vector<1x16x16x4xf32>
    %c0_78 = arith.constant 0 : index
    %c0_79 = arith.constant 0 : index
    %c0_80 = arith.constant 0 : index
    %c0_81 = arith.constant 0 : index
    %72 = vector.load %arg4[%c0_78, %c0_79, %c0_80, %c0_81] : memref<1x16x16x4xf32, #tpu.memory_space<vmem>>, vector<1x16x16x4xf32>
    tpu.vector_store %arg4[%c0_78, %c0_79, %c0_80, %c0_81], %71 {strides = array<i32>} : memref<1x16x16x4xf32, #tpu.memory_space<vmem>>, vector<1x16x16x4xf32>,
    %cst_82 = arith.constant dense<0.000000e+00> : vector<4xf32>
    %73 = vector.multi_reduction <add>, %70, %cst_82 [0] : vector<256x4xf32> to vector<4xf32>
    %74 = vector.shape_cast %73 : vector<4xf32> to vector<1x4xf32>
    %75 = vector.shape_cast %74 : vector<1x4xf32> to vector<1x1x4xf32>
    %c0_83 = arith.constant 0 : index
    %c0_84 = arith.constant 0 : index
    %c0_85 = arith.constant 0 : index
    %76 = vector.load %arg5[%c0_83, %c0_84, %c0_85] : memref<1x1x4xf32, #tpu.memory_space<vmem>>, vector<1x1x4xf32>
    tpu.vector_store %arg5[%c0_83, %c0_84, %c0_85], %75 {strides = array<i32>} : memref<1x1x4xf32, #tpu.memory_space<vmem>>, vector<1x1x4xf32>,
    %77 = arith.mulf %70, %70 : vector<256x4xf32>
    %cst_86 = arith.constant dense<0.000000e+00> : vector<4xf32>
    %78 = vector.multi_reduction <add>, %77, %cst_86 [0] : vector<256x4xf32> to vector<4xf32>
    %79 = vector.shape_cast %78 : vector<4xf32> to vector<1x4xf32>
    %80 = vector.shape_cast %79 : vector<1x4xf32> to vector<1x1x4xf32>
    %c0_87 = arith.constant 0 : index
    %c0_88 = arith.constant 0 : index
    %c0_89 = arith.constant 0 : index
    %81 = vector.load %arg6[%c0_87, %c0_88, %c0_89] : memref<1x1x4xf32, #tpu.memory_space<vmem>>, vector<1x1x4xf32>
    tpu.vector_store %arg6[%c0_87, %c0_88, %c0_89], %80 {strides = array<i32>} : memref<1x1x4xf32, #tpu.memory_space<vmem>>, vector<1x1x4xf32>,
    return
  }
  func.func @transform_0(%arg0: i32) -> (i32, i32, i32, i32) {
    %c0_i32 = arith.constant 0 : i32
    %c0_i32_0 = arith.constant 0 : i32
    %c0_i32_1 = arith.constant 0 : i32
    %c0_i32_2 = arith.constant 0 : i32
    return %arg0, %c0_i32, %c0_i32_0, %c0_i32_1 : i32, i32, i32, i32
  }
  func.func @transform_1(%arg0: i32) -> (i32, i32, i32) {
    %c0_i32 = arith.constant 0 : i32
    %c0_i32_0 = arith.constant 0 : i32
    %c0_i32_1 = arith.constant 0 : i32
    %c0_i32_2 = arith.constant 0 : i32
    return %c0_i32, %c0_i32_0, %c0_i32_1 : i32, i32, i32
  }
  func.func @transform_2(%arg0: i32) -> (i32, i32) {
    %c0_i32 = arith.constant 0 : i32
    %c0_i32_0 = arith.constant 0 : i32
    %c0_i32_1 = arith.constant 0 : i32
    return %c0_i32, %c0_i32_0 : i32, i32
  }
  func.func @transform_3(%arg0: i32) -> (i32, i32, i32, i32) {
    %c0_i32 = arith.constant 0 : i32
    %c0_i32_0 = arith.constant 0 : i32
    %c0_i32_1 = arith.constant 0 : i32
    %c0_i32_2 = arith.constant 0 : i32
    return %arg0, %c0_i32, %c0_i32_0, %c0_i32_1 : i32, i32, i32, i32
  }
  func.func @transform_4(%arg0: i32) -> (i32, i32, i32) {
    %c0_i32 = arith.constant 0 : i32
    %c0_i32_0 = arith.constant 0 : i32
    %c0_i32_1 = arith.constant 0 : i32
    return %arg0, %c0_i32, %c0_i32_0 : i32, i32, i32
  }
  func.func @transform_5(%arg0: i32) -> (i32, i32, i32) {
    %c0_i32 = arith.constant 0 : i32
    %c0_i32_0 = arith.constant 0 : i32
    %c0_i32_1 = arith.constant 0 : i32
    return %arg0, %c0_i32, %c0_i32_0 : i32, i32, i32
  }
}

module attributes {stable_mosaic.version = 11 : i64} {
  func.func @stage2_kernel(%arg0: i32, %arg1: memref<1x16x16x4xf32, #tpu.memory_space<vmem>>, %arg2: memref<1x4xf32, #tpu.memory_space<vmem>>, %arg3: memref<1x4xf32, #tpu.memory_space<vmem>>, %arg4: memref<1x1xf32, #tpu.memory_space<smem>>, %arg5: memref<9x4x4xbf16, #tpu.memory_space<vmem>>, %arg6: memref<1x4xf32, #tpu.memory_space<vmem>>, %arg7: memref<1x16x16x4xf32, #tpu.memory_space<vmem>>, %arg8: memref<1x1x4xf32, #tpu.memory_space<vmem>>, %arg9: memref<1x1x4xf32, #tpu.memory_space<vmem>>, %arg10: memref<1x18x18x4xf32, #tpu.memory_space<vmem>>) attributes {dimension_semantics = [#tpu.dimension_semantics<parallel>], iteration_bounds = array<i64: 2>, scalar_prefetch = 0 : i64, scratch_operands = 1 : i64, tpu.core_type = #tpu.core_type<tc>, window_params = [{transform_indices = @transform_0, window_bounds = array<i64: 1, 16, 16, 4>}, {pipeline_mode = #tpu.pipeline_mode<synchronous>, transform_indices = @transform_1, window_bounds = array<i64: 1, 4>}, {pipeline_mode = #tpu.pipeline_mode<synchronous>, transform_indices = @transform_2, window_bounds = array<i64: 1, 4>}, {transform_indices = @transform_3, window_bounds = array<i64: 1, 1>}, {pipeline_mode = #tpu.pipeline_mode<synchronous>, transform_indices = @transform_4, window_bounds = array<i64: 9, 4, 4>}, {pipeline_mode = #tpu.pipeline_mode<synchronous>, transform_indices = @transform_5, window_bounds = array<i64: 1, 4>}, {transform_indices = @transform_6, window_bounds = array<i64: 1, 16, 16, 4>}, {transform_indices = @transform_7, window_bounds = array<i64: 1, 1, 4>}, {transform_indices = @transform_8, window_bounds = array<i64: 1, 1, 4>}]} {
    %c0 = arith.constant 0 : index
    %c0_0 = arith.constant 0 : index
    %0 = vector.load %arg2[%c0, %c0_0] : memref<1x4xf32, #tpu.memory_space<vmem>>, vector<1x4xf32>
    %1 = vector.shape_cast %0 : vector<1x4xf32> to vector<1x1x1x4xf32>
    %c0_1 = arith.constant 0 : index
    %c0_2 = arith.constant 0 : index
    %2 = vector.load %arg3[%c0_1, %c0_2] : memref<1x4xf32, #tpu.memory_space<vmem>>, vector<1x4xf32>
    %3 = vector.shape_cast %2 : vector<1x4xf32> to vector<1x1x1x4xf32>
    %c0_3 = arith.constant 0 : index
    %c0_4 = arith.constant 0 : index
    %c0_5 = arith.constant 0 : index
    %c0_6 = arith.constant 0 : index
    %4 = vector.load %arg1[%c0_3, %c0_4, %c0_5, %c0_6] : memref<1x16x16x4xf32, #tpu.memory_space<vmem>>, vector<1x16x16x4xf32>
    %5 = vector.broadcast %1 : vector<1x1x1x4xf32> to vector<1x16x16x4xf32>
    %6 = arith.mulf %4, %5 : vector<1x16x16x4xf32>
    %7 = vector.broadcast %3 : vector<1x1x1x4xf32> to vector<1x16x16x4xf32>
    %8 = arith.addf %6, %7 : vector<1x16x16x4xf32>
    %c0_7 = arith.constant 0 : index
    %c0_8 = arith.constant 0 : index
    %9 = memref.load %arg4[%c0_7, %c0_8] : memref<1x1xf32, #tpu.memory_space<smem>>
    %cst = arith.constant 0.000000e+00 : f32
    %10 = vector.broadcast %cst : f32 to vector<1x16x16x4xf32>
    %11 = arith.cmpf ogt, %8, %10 : vector<1x16x16x4xf32>
    %12 = vector.broadcast %9 : f32 to vector<1x16x16x4xf32>
    %13 = arith.mulf %8, %12 : vector<1x16x16x4xf32>
    %14 = arith.select %11, %8, %13 : vector<1x16x16x4xi1>, vector<1x16x16x4xf32>
    %cst_9 = arith.constant 0.000000e+00 : f32
    %15 = vector.broadcast %cst_9 : f32 to vector<1x18x18x4xf32>
    %c0_10 = arith.constant 0 : index
    %c0_11 = arith.constant 0 : index
    %c0_12 = arith.constant 0 : index
    %c0_13 = arith.constant 0 : index
    %16 = vector.load %arg10[%c0_10, %c0_11, %c0_12, %c0_13] : memref<1x18x18x4xf32, #tpu.memory_space<vmem>>, vector<1x18x18x4xf32>
    tpu.vector_store %arg10[%c0_10, %c0_11, %c0_12, %c0_13], %15 {strides = array<i32>} : memref<1x18x18x4xf32, #tpu.memory_space<vmem>>, vector<1x18x18x4xf32>,
    %c0_14 = arith.constant 0 : index
    %c1 = arith.constant 1 : index
    %c1_15 = arith.constant 1 : index
    %c0_16 = arith.constant 0 : index
    %17 = vector.load %arg10[%c0_14, %c1, %c1_15, %c0_16] : memref<1x18x18x4xf32, #tpu.memory_space<vmem>>, vector<1x16x16x4xf32>
    tpu.vector_store %arg10[%c0_14, %c1, %c1_15, %c0_16], %14 {strides = array<i32>} : memref<1x18x18x4xf32, #tpu.memory_space<vmem>>, vector<1x16x16x4xf32>,
    %cst_17 = arith.constant 0.000000e+00 : f32
    %18 = vector.broadcast %cst_17 : f32 to vector<256x4xf32>
    %c0_18 = arith.constant 0 : index
    %c0_19 = arith.constant 0 : index
    %c0_20 = arith.constant 0 : index
    %c0_21 = arith.constant 0 : index
    %19 = vector.load %arg10[%c0_18, %c0_19, %c0_20, %c0_21] : memref<1x18x18x4xf32, #tpu.memory_space<vmem>>, vector<1x16x16x4xf32>
    %20 = vector.shape_cast %19 : vector<1x16x16x4xf32> to vector<256x4xf32>
    %21 = arith.truncf %20 : vector<256x4xf32> to vector<256x4xbf16>
    %c0_22 = arith.constant 0 : index
    %c0_23 = arith.constant 0 : index
    %c0_24 = arith.constant 0 : index
    %22 = vector.load %arg5[%c0_22, %c0_23, %c0_24] : memref<9x4x4xbf16, #tpu.memory_space<vmem>>, vector<1x4x4xbf16>
    %23 = vector.shape_cast %22 : vector<1x4x4xbf16> to vector<4x4xbf16>
    %cst_25 = arith.constant dense<0.000000e+00> : vector<256x4xf32>
    %24 = tpu.matmul %21, %23, %cst_25 {dimension_numbers = #tpu.dot_dimension_numbers<[1], [0], [0], [1], [0, 0, 1, 1], [], []>} : vector<256x4xbf16>, vector<4x4xbf16>, vector<256x4xf32> -> vector<256x4xf32>
    %25 = arith.addf %18, %24 : vector<256x4xf32>
    %c0_26 = arith.constant 0 : index
    %c0_27 = arith.constant 0 : index
    %c1_28 = arith.constant 1 : index
    %c0_29 = arith.constant 0 : index
    %26 = vector.load %arg10[%c0_26, %c0_27, %c1_28, %c0_29] : memref<1x18x18x4xf32, #tpu.memory_space<vmem>>, vector<1x16x16x4xf32>
    %27 = vector.shape_cast %26 : vector<1x16x16x4xf32> to vector<256x4xf32>
    %28 = arith.truncf %27 : vector<256x4xf32> to vector<256x4xbf16>
    %c1_30 = arith.constant 1 : index
    %c0_31 = arith.constant 0 : index
    %c0_32 = arith.constant 0 : index
    %29 = vector.load %arg5[%c1_30, %c0_31, %c0_32] : memref<9x4x4xbf16, #tpu.memory_space<vmem>>, vector<1x4x4xbf16>
    %30 = vector.shape_cast %29 : vector<1x4x4xbf16> to vector<4x4xbf16>
    %cst_33 = arith.constant dense<0.000000e+00> : vector<256x4xf32>
    %31 = tpu.matmul %28, %30, %cst_33 {dimension_numbers = #tpu.dot_dimension_numbers<[1], [0], [0], [1], [0, 0, 1, 1], [], []>} : vector<256x4xbf16>, vector<4x4xbf16>, vector<256x4xf32> -> vector<256x4xf32>
    %32 = arith.addf %25, %31 : vector<256x4xf32>
    %c0_34 = arith.constant 0 : index
    %c0_35 = arith.constant 0 : index
    %c2 = arith.constant 2 : index
    %c0_36 = arith.constant 0 : index
    %33 = vector.load %arg10[%c0_34, %c0_35, %c2, %c0_36] : memref<1x18x18x4xf32, #tpu.memory_space<vmem>>, vector<1x16x16x4xf32>
    %34 = vector.shape_cast %33 : vector<1x16x16x4xf32> to vector<256x4xf32>
    %35 = arith.truncf %34 : vector<256x4xf32> to vector<256x4xbf16>
    %c2_37 = arith.constant 2 : index
    %c0_38 = arith.constant 0 : index
    %c0_39 = arith.constant 0 : index
    %36 = vector.load %arg5[%c2_37, %c0_38, %c0_39] : memref<9x4x4xbf16, #tpu.memory_space<vmem>>, vector<1x4x4xbf16>
    %37 = vector.shape_cast %36 : vector<1x4x4xbf16> to vector<4x4xbf16>
    %cst_40 = arith.constant dense<0.000000e+00> : vector<256x4xf32>
    %38 = tpu.matmul %35, %37, %cst_40 {dimension_numbers = #tpu.dot_dimension_numbers<[1], [0], [0], [1], [0, 0, 1, 1], [], []>} : vector<256x4xbf16>, vector<4x4xbf16>, vector<256x4xf32> -> vector<256x4xf32>
    %39 = arith.addf %32, %38 : vector<256x4xf32>
    %c0_41 = arith.constant 0 : index
    %c1_42 = arith.constant 1 : index
    %c0_43 = arith.constant 0 : index
    %c0_44 = arith.constant 0 : index
    %40 = vector.load %arg10[%c0_41, %c1_42, %c0_43, %c0_44] : memref<1x18x18x4xf32, #tpu.memory_space<vmem>>, vector<1x16x16x4xf32>
    %41 = vector.shape_cast %40 : vector<1x16x16x4xf32> to vector<256x4xf32>
    %42 = arith.truncf %41 : vector<256x4xf32> to vector<256x4xbf16>
    %c3 = arith.constant 3 : index
    %c0_45 = arith.constant 0 : index
    %c0_46 = arith.constant 0 : index
    %43 = vector.load %arg5[%c3, %c0_45, %c0_46] : memref<9x4x4xbf16, #tpu.memory_space<vmem>>, vector<1x4x4xbf16>
    %44 = vector.shape_cast %43 : vector<1x4x4xbf16> to vector<4x4xbf16>
    %cst_47 = arith.constant dense<0.000000e+00> : vector<256x4xf32>
    %45 = tpu.matmul %42, %44, %cst_47 {dimension_numbers = #tpu.dot_dimension_numbers<[1], [0], [0], [1], [0, 0, 1, 1], [], []>} : vector<256x4xbf16>, vector<4x4xbf16>, vector<256x4xf32> -> vector<256x4xf32>
    %46 = arith.addf %39, %45 : vector<256x4xf32>
    %c0_48 = arith.constant 0 : index
    %c1_49 = arith.constant 1 : index
    %c1_50 = arith.constant 1 : index
    %c0_51 = arith.constant 0 : index
    %47 = vector.load %arg10[%c0_48, %c1_49, %c1_50, %c0_51] : memref<1x18x18x4xf32, #tpu.memory_space<vmem>>, vector<1x16x16x4xf32>
    %48 = vector.shape_cast %47 : vector<1x16x16x4xf32> to vector<256x4xf32>
    %49 = arith.truncf %48 : vector<256x4xf32> to vector<256x4xbf16>
    %c4 = arith.constant 4 : index
    %c0_52 = arith.constant 0 : index
    %c0_53 = arith.constant 0 : index
    %50 = vector.load %arg5[%c4, %c0_52, %c0_53] : memref<9x4x4xbf16, #tpu.memory_space<vmem>>, vector<1x4x4xbf16>
    %51 = vector.shape_cast %50 : vector<1x4x4xbf16> to vector<4x4xbf16>
    %cst_54 = arith.constant dense<0.000000e+00> : vector<256x4xf32>
    %52 = tpu.matmul %49, %51, %cst_54 {dimension_numbers = #tpu.dot_dimension_numbers<[1], [0], [0], [1], [0, 0, 1, 1], [], []>} : vector<256x4xbf16>, vector<4x4xbf16>, vector<256x4xf32> -> vector<256x4xf32>
    %53 = arith.addf %46, %52 : vector<256x4xf32>
    %c0_55 = arith.constant 0 : index
    %c1_56 = arith.constant 1 : index
    %c2_57 = arith.constant 2 : index
    %c0_58 = arith.constant 0 : index
    %54 = vector.load %arg10[%c0_55, %c1_56, %c2_57, %c0_58] : memref<1x18x18x4xf32, #tpu.memory_space<vmem>>, vector<1x16x16x4xf32>
    %55 = vector.shape_cast %54 : vector<1x16x16x4xf32> to vector<256x4xf32>
    %56 = arith.truncf %55 : vector<256x4xf32> to vector<256x4xbf16>
    %c5 = arith.constant 5 : index
    %c0_59 = arith.constant 0 : index
    %c0_60 = arith.constant 0 : index
    %57 = vector.load %arg5[%c5, %c0_59, %c0_60] : memref<9x4x4xbf16, #tpu.memory_space<vmem>>, vector<1x4x4xbf16>
    %58 = vector.shape_cast %57 : vector<1x4x4xbf16> to vector<4x4xbf16>
    %cst_61 = arith.constant dense<0.000000e+00> : vector<256x4xf32>
    %59 = tpu.matmul %56, %58, %cst_61 {dimension_numbers = #tpu.dot_dimension_numbers<[1], [0], [0], [1], [0, 0, 1, 1], [], []>} : vector<256x4xbf16>, vector<4x4xbf16>, vector<256x4xf32> -> vector<256x4xf32>
    %60 = arith.addf %53, %59 : vector<256x4xf32>
    %c0_62 = arith.constant 0 : index
    %c2_63 = arith.constant 2 : index
    %c0_64 = arith.constant 0 : index
    %c0_65 = arith.constant 0 : index
    %61 = vector.load %arg10[%c0_62, %c2_63, %c0_64, %c0_65] : memref<1x18x18x4xf32, #tpu.memory_space<vmem>>, vector<1x16x16x4xf32>
    %62 = vector.shape_cast %61 : vector<1x16x16x4xf32> to vector<256x4xf32>
    %63 = arith.truncf %62 : vector<256x4xf32> to vector<256x4xbf16>
    %c6 = arith.constant 6 : index
    %c0_66 = arith.constant 0 : index
    %c0_67 = arith.constant 0 : index
    %64 = vector.load %arg5[%c6, %c0_66, %c0_67] : memref<9x4x4xbf16, #tpu.memory_space<vmem>>, vector<1x4x4xbf16>
    %65 = vector.shape_cast %64 : vector<1x4x4xbf16> to vector<4x4xbf16>
    %cst_68 = arith.constant dense<0.000000e+00> : vector<256x4xf32>
    %66 = tpu.matmul %63, %65, %cst_68 {dimension_numbers = #tpu.dot_dimension_numbers<[1], [0], [0], [1], [0, 0, 1, 1], [], []>} : vector<256x4xbf16>, vector<4x4xbf16>, vector<256x4xf32> -> vector<256x4xf32>
    %67 = arith.addf %60, %66 : vector<256x4xf32>
    %c0_69 = arith.constant 0 : index
    %c2_70 = arith.constant 2 : index
    %c1_71 = arith.constant 1 : index
    %c0_72 = arith.constant 0 : index
    %68 = vector.load %arg10[%c0_69, %c2_70, %c1_71, %c0_72] : memref<1x18x18x4xf32, #tpu.memory_space<vmem>>, vector<1x16x16x4xf32>
    %69 = vector.shape_cast %68 : vector<1x16x16x4xf32> to vector<256x4xf32>
    %70 = arith.truncf %69 : vector<256x4xf32> to vector<256x4xbf16>
    %c7 = arith.constant 7 : index
    %c0_73 = arith.constant 0 : index
    %c0_74 = arith.constant 0 : index
    %71 = vector.load %arg5[%c7, %c0_73, %c0_74] : memref<9x4x4xbf16, #tpu.memory_space<vmem>>, vector<1x4x4xbf16>
    %72 = vector.shape_cast %71 : vector<1x4x4xbf16> to vector<4x4xbf16>
    %cst_75 = arith.constant dense<0.000000e+00> : vector<256x4xf32>
    %73 = tpu.matmul %70, %72, %cst_75 {dimension_numbers = #tpu.dot_dimension_numbers<[1], [0], [0], [1], [0, 0, 1, 1], [], []>} : vector<256x4xbf16>, vector<4x4xbf16>, vector<256x4xf32> -> vector<256x4xf32>
    %74 = arith.addf %67, %73 : vector<256x4xf32>
    %c0_76 = arith.constant 0 : index
    %c2_77 = arith.constant 2 : index
    %c2_78 = arith.constant 2 : index
    %c0_79 = arith.constant 0 : index
    %75 = vector.load %arg10[%c0_76, %c2_77, %c2_78, %c0_79] : memref<1x18x18x4xf32, #tpu.memory_space<vmem>>, vector<1x16x16x4xf32>
    %76 = vector.shape_cast %75 : vector<1x16x16x4xf32> to vector<256x4xf32>
    %77 = arith.truncf %76 : vector<256x4xf32> to vector<256x4xbf16>
    %c8 = arith.constant 8 : index
    %c0_80 = arith.constant 0 : index
    %c0_81 = arith.constant 0 : index
    %78 = vector.load %arg5[%c8, %c0_80, %c0_81] : memref<9x4x4xbf16, #tpu.memory_space<vmem>>, vector<1x4x4xbf16>
    %79 = vector.shape_cast %78 : vector<1x4x4xbf16> to vector<4x4xbf16>
    %cst_82 = arith.constant dense<0.000000e+00> : vector<256x4xf32>
    %80 = tpu.matmul %77, %79, %cst_82 {dimension_numbers = #tpu.dot_dimension_numbers<[1], [0], [0], [1], [0, 0, 1, 1], [], []>} : vector<256x4xbf16>, vector<4x4xbf16>, vector<256x4xf32> -> vector<256x4xf32>
    %81 = arith.addf %74, %80 : vector<256x4xf32>
    %c0_83 = arith.constant 0 : index
    %c0_84 = arith.constant 0 : index
    %82 = vector.load %arg6[%c0_83, %c0_84] : memref<1x4xf32, #tpu.memory_space<vmem>>, vector<1x4xf32>
    %83 = vector.broadcast %82 : vector<1x4xf32> to vector<256x4xf32>
    %84 = arith.addf %81, %83 : vector<256x4xf32>
    %85 = vector.shape_cast %84 : vector<256x4xf32> to vector<1x16x16x4xf32>
    %c0_85 = arith.constant 0 : index
    %c0_86 = arith.constant 0 : index
    %c0_87 = arith.constant 0 : index
    %c0_88 = arith.constant 0 : index
    %86 = vector.load %arg7[%c0_85, %c0_86, %c0_87, %c0_88] : memref<1x16x16x4xf32, #tpu.memory_space<vmem>>, vector<1x16x16x4xf32>
    tpu.vector_store %arg7[%c0_85, %c0_86, %c0_87, %c0_88], %85 {strides = array<i32>} : memref<1x16x16x4xf32, #tpu.memory_space<vmem>>, vector<1x16x16x4xf32>,
    %cst_89 = arith.constant dense<0.000000e+00> : vector<4xf32>
    %87 = vector.multi_reduction <add>, %84, %cst_89 [0] : vector<256x4xf32> to vector<4xf32>
    %88 = vector.shape_cast %87 : vector<4xf32> to vector<1x4xf32>
    %89 = vector.shape_cast %88 : vector<1x4xf32> to vector<1x1x4xf32>
    %c0_90 = arith.constant 0 : index
    %c0_91 = arith.constant 0 : index
    %c0_92 = arith.constant 0 : index
    %90 = vector.load %arg8[%c0_90, %c0_91, %c0_92] : memref<1x1x4xf32, #tpu.memory_space<vmem>>, vector<1x1x4xf32>
    tpu.vector_store %arg8[%c0_90, %c0_91, %c0_92], %89 {strides = array<i32>} : memref<1x1x4xf32, #tpu.memory_space<vmem>>, vector<1x1x4xf32>,
    %91 = arith.mulf %84, %84 : vector<256x4xf32>
    %cst_93 = arith.constant dense<0.000000e+00> : vector<4xf32>
    %92 = vector.multi_reduction <add>, %91, %cst_93 [0] : vector<256x4xf32> to vector<4xf32>
    %93 = vector.shape_cast %92 : vector<4xf32> to vector<1x4xf32>
    %94 = vector.shape_cast %93 : vector<1x4xf32> to vector<1x1x4xf32>
    %c0_94 = arith.constant 0 : index
    %c0_95 = arith.constant 0 : index
    %c0_96 = arith.constant 0 : index
    %95 = vector.load %arg9[%c0_94, %c0_95, %c0_96] : memref<1x1x4xf32, #tpu.memory_space<vmem>>, vector<1x1x4xf32>
    tpu.vector_store %arg9[%c0_94, %c0_95, %c0_96], %94 {strides = array<i32>} : memref<1x1x4xf32, #tpu.memory_space<vmem>>, vector<1x1x4xf32>,
    return
  }
  func.func @transform_0(%arg0: i32) -> (i32, i32, i32, i32) {
    %c0_i32 = arith.constant 0 : i32
    %c0_i32_0 = arith.constant 0 : i32
    %c0_i32_1 = arith.constant 0 : i32
    %c0_i32_2 = arith.constant 0 : i32
    return %arg0, %c0_i32, %c0_i32_0, %c0_i32_1 : i32, i32, i32, i32
  }
  func.func @transform_1(%arg0: i32) -> (i32, i32) {
    %c0_i32 = arith.constant 0 : i32
    %c0_i32_0 = arith.constant 0 : i32
    %c0_i32_1 = arith.constant 0 : i32
    return %c0_i32, %c0_i32_0 : i32, i32
  }
  func.func @transform_2(%arg0: i32) -> (i32, i32) {
    %c0_i32 = arith.constant 0 : i32
    %c0_i32_0 = arith.constant 0 : i32
    %c0_i32_1 = arith.constant 0 : i32
    return %c0_i32, %c0_i32_0 : i32, i32
  }
  func.func @transform_3(%arg0: i32) -> (i32, i32) {
    %c0_i32 = arith.constant 0 : i32
    %c0_i32_0 = arith.constant 0 : i32
    %c0_i32_1 = arith.constant 0 : i32
    return %c0_i32, %c0_i32_0 : i32, i32
  }
  func.func @transform_4(%arg0: i32) -> (i32, i32, i32) {
    %c0_i32 = arith.constant 0 : i32
    %c0_i32_0 = arith.constant 0 : i32
    %c0_i32_1 = arith.constant 0 : i32
    %c0_i32_2 = arith.constant 0 : i32
    return %c0_i32, %c0_i32_0, %c0_i32_1 : i32, i32, i32
  }
  func.func @transform_5(%arg0: i32) -> (i32, i32) {
    %c0_i32 = arith.constant 0 : i32
    %c0_i32_0 = arith.constant 0 : i32
    %c0_i32_1 = arith.constant 0 : i32
    return %c0_i32, %c0_i32_0 : i32, i32
  }
  func.func @transform_6(%arg0: i32) -> (i32, i32, i32, i32) {
    %c0_i32 = arith.constant 0 : i32
    %c0_i32_0 = arith.constant 0 : i32
    %c0_i32_1 = arith.constant 0 : i32
    %c0_i32_2 = arith.constant 0 : i32
    return %arg0, %c0_i32, %c0_i32_0, %c0_i32_1 : i32, i32, i32, i32
  }
  func.func @transform_7(%arg0: i32) -> (i32, i32, i32) {
    %c0_i32 = arith.constant 0 : i32
    %c0_i32_0 = arith.constant 0 : i32
    %c0_i32_1 = arith.constant 0 : i32
    return %arg0, %c0_i32, %c0_i32_0 : i32, i32, i32
  }
  func.func @transform_8(%arg0: i32) -> (i32, i32, i32) {
    %c0_i32 = arith.constant 0 : i32
    %c0_i32_0 = arith.constant 0 : i32
    %c0_i32_1 = arith.constant 0 : i32
    return %arg0, %c0_i32, %c0_i32_0 : i32, i32, i32
  }
}

</mosaic_0001>

<bundles_post_ra>
// kernel: residual_block.5
= control target key start
LH: loop header
LB: loop body
LE: loop exit
PB: predicated region body
PF: predicated region fallthrough
CT: control target
= control target key end

     0   :  { %s551_s15 = smov 0   ;;  %s779_s0 = inlined_call_operand.vmem [shape: f32[2,16,16,4], index: 0, kind: input, shape index: {}]   ;;  %s780_s1 = inlined_call_operand.vmem [shape: f32[2,16,16,4], index: 1, kind: input, shape index: {}]   ;;  %s781_s2 = inlined_call_operand.vmem [shape: f32[1,4], index: 2, kind: input, shape index: {}]   ;;  %s782_s3 = inlined_call_operand.vmem [shape: f32[1,4], index: 3, kind: input, shape index: {}]   ;;  %s783_s4 = inlined_call_operand.vmem [shape: f32[2,16,16,4], index: 4, kind: output, shape index: {}]  }
   0x1 LB: > { %s492_s16 = sadd.s32 4294967295, %s524_s15   ;;  %p496_p0 = scmp.ge.s32.totalorder %s524_s15, 1  ;;  %s524_s15 = sphi %s551_s15, %s14_s15  }
   0x2   : > { %p172_p1 = scmp.lt.s32.totalorder %s524_s15, 3 }
   0x4   : > { %p173_p2 = pnand %p496_p0, %p172_p1 }
   0x5   : > { %p203_p3 = scmp.lt.s32.totalorder (!%p173_p2), %s492_s16, 1 }
   0x6   : > { %176 = sbr.rel (%p173_p2) target bundleno = 48 (0x30), region = 36 }
   0xb   : > { %s785_s16 = smov (!%p203_p3, %s492_s16), 1  ;;  %v562_v0 = vld [vmem:[%s781_s2] ss:$0 sm:$0xff]  ;;  %vm392_vm0 = vcmask 31744  }
   0xc   : > { %s507_s17 = sshll.u32 %s785_s16, 8  ;;  %v577_v1 = vld [vmem:[%s782_s3] ss:$0 sm:$0xff] }
   0xd   : > { %s567_s22 = scalar_lea.vmem %s779_s0, %s507_s17  ;;  %s572_s25 = scalar_lea.vmem %s780_s1, %s507_s17 }
   0xe   : > { %v220_v2 = vld [vmem:[%s567_s22] sm:$0xff]  ;;  %v221_v4 = vld [vmem:[%s567_s22 + $0x8] sm:$0xff]  ;;  %v222_v7 = vld [vmem:[%s567_s22 + $0x10] sm:$0xff]  ;;  %s598_s30 = scalar_lea.vmem %s783_s4, %s507_s17 }
   0xf   : > { %v252_v3 = vld [vmem:[%s572_s25] sm:$0xff]  ;;  %v253_v6 = vld [vmem:[%s572_s25 + $0x8] sm:$0xff]  ;;  %v254_v8 = vld [vmem:[%s572_s25 + $0x10] sm:$0xff] }
  0x10   : > { %v290_v5 = vmul.f32 %v562_v0, %v252_v3  ;;  %v291_v9 = vmul.f32 %v562_v0, %v253_v6  ;;  %v292_v10 = vmul.f32 %v562_v0, %v254_v8  ;;  %v223_v11 = vld [vmem:[%s567_s22 + $0x18] sm:$0xff]  ;;  %v224_v13 = vld [vmem:[%s567_s22 + $0x20] sm:$0xff]  ;;  %v225_v17 = vld [vmem:[%s567_s22 + $0x28] sm:$0xff] }
  0x11   : > { %v255_v12 = vld [vmem:[%s572_s25 + $0x18] sm:$0xff]  ;;  %v256_v16 = vld [vmem:[%s572_s25 + $0x20] sm:$0xff]  ;;  %v257_v18 = vld [vmem:[%s572_s25 + $0x28] sm:$0xff] }
  0x12   : > { %v322_v14 = vadd.f32 %v290_v5, %v220_v2  ;;  %v293_v15 = vmul.f32 %v562_v0, %v255_v12  ;;  %v323_v19 = vadd.f32 %v291_v9, %v221_v4  ;;  %v324_v20 = vadd.f32 %v292_v10, %v222_v7  ;;  %v226_v23 = vld [vmem:[%s567_s22 + $0x30] sm:$0xff]  ;;  %v227_v28 = vld [vmem:[%s567_s22 + $0x38] sm:$0xff]  ;;  %v260_v30 = vld [vmem:[%s572_s25 + $0x40] sm:$0xff] }
  0x13   : > { %v294_v21 = vmul.f32 %v562_v0, %v256_v16  ;;  %v295_v22 = vmul.f32 %v562_v0, %v257_v18  ;;  %v258_v24 = vld [vmem:[%s572_s25 + $0x30] sm:$0xff]  ;;  %v259_v29 = vld [vmem:[%s572_s25 + $0x38] sm:$0xff]  ;;  %v228_v35 = vld [vmem:[%s567_s22 + $0x40] sm:$0xff]  ;;  %v298_v41 = vmul.f32 %v562_v0, %v260_v30 }
  0x14   : > { %v360_v25 = vadd.f32 %v577_v1, %v322_v14  ;;  %v325_v26 = vadd.f32 %v293_v15, %v223_v11  ;;  %v296_v27 = vmul.f32 %v562_v0, %v258_v24  ;;  %v361_v31 = vadd.f32 %v577_v1, %v323_v19  ;;  %v229_v36 = vld [vmem:[%s567_s22 + $0x48] sm:$0xff]  ;;  %v230_v42 = vld [vmem:[%s567_s22 + $0x50] sm:$0xff]  ;;  %v263_v44 = vld [vmem:[%s572_s25 + $0x58] sm:$0xff] }
  0x15   : > { %v362_v32 = vadd.f32 %v577_v1, %v324_v20  ;;  %v326_v33 = vadd.f32 %v294_v21, %v224_v13  ;;  %v327_v34 = vadd.f32 %v295_v22, %v225_v17  ;;  %v261_v37 = vld [vmem:[%s572_s25 + $0x48] sm:$0xff]  ;;  %v297_v40 = vmul.f32 %v562_v0, %v259_v29  ;;  %v262_v43 = vld [vmem:[%s572_s25 + $0x50] sm:$0xff]  ;;  %v231_v49 = vld [vmem:[%s567_s22 + $0x58] sm:$0xff] }
  0x16   : > { %393 = vst.msk [vmem:[%s598_s30] sm:$0xff] %vm392_vm0, %v360_v25  ;;  %v363_v38 = vadd.f32 %v577_v1, %v325_v26  ;;  %v328_v39 = vadd.f32 %v296_v27, %v226_v23  ;;  %394 = vst.msk [vmem:[%s598_s30 + $0x8] sm:$0xff] %vm392_vm0, %v361_v31  ;;  %v299_v47 = vmul.f32 %v562_v0, %v261_v37  ;;  %v232_v50 = vld [vmem:[%s567_s22 + $0x60] sm:$0xff]  ;;  %v233_v56 = vld [vmem:[%s567_s22 + $0x68] sm:$0xff] }
  0x17   : > { %395 = vst.msk [vmem:[%s598_s30 + $0x10] sm:$0xff] %vm392_vm0, %v362_v32  ;;  %v364_v45 = vadd.f32 %v577_v1, %v326_v33  ;;  %v365_v46 = vadd.f32 %v577_v1, %v327_v34  ;;  %v300_v48 = vmul.f32 %v562_v0, %v262_v43  ;;  %v264_v51 = vld [vmem:[%s572_s25 + $0x60] sm:$0xff]  ;;  %v329_v53 = vadd.f32 %v297_v40, %v227_v28  ;;  %v265_v57 = vld [vmem:[%s572_s25 + $0x68] sm:$0xff]  ;;  %v266_v58 = vld [vmem:[%s572_s25 + $0x70] sm:$0xff] }
  0x18   : > { %396 = vst.msk [vmem:[%s598_s30 + $0x18] sm:$0xff] %vm392_vm0, %v363_v38  ;;  %v366_v52 = vadd.f32 %v577_v1, %v328_v39  ;;  %v330_v54 = vadd.f32 %v298_v41, %v228_v35  ;;  %v301_v55 = vmul.f32 %v562_v0, %v263_v44  ;;  %v331_v59 = vadd.f32 %v299_v47, %v229_v36  ;;  %v234_v63 = vld [vmem:[%s567_s22 + $0x70] sm:$0xff]  ;;  %v267_v2 = vld [vmem:[%s572_s25 + $0x78] sm:$0xff]  ;;  %v268_v8 = vld [vmem:[%s572_s25 + $0x80] sm:$0xff] }
  0x19   : > { %397 = vst.msk [vmem:[%s598_s30 + $0x20] sm:$0xff] %vm392_vm0, %v364_v45  ;;  %398 = vst.msk [vmem:[%s598_s30 + $0x28] sm:$0xff] %vm392_vm0, %v365_v46  ;;  %v332_v60 = vadd.f32 %v300_v48, %v230_v42  ;;  %v302_v61 = vmul.f32 %v562_v0, %v264_v51  ;;  %v303_v62 = vmul.f32 %v562_v0, %v265_v57  ;;  %v235_v7 = vld [vmem:[%s567_s22 + $0x78] sm:$0xff]  ;;  %v269_v9 = vld [vmem:[%s572_s25 + $0x88] sm:$0xff] }
  0x1a   : > { %399 = vst.msk [vmem:[%s598_s30 + $0x30] sm:$0xff] %vm392_vm0, %v366_v52  ;;  %v367_v3 = vadd.f32 %v577_v1, %v329_v53  ;;  %v368_v4 = vadd.f32 %v577_v1, %v330_v54  ;;  %v333_v5 = vadd.f32 %v301_v55, %v231_v49  ;;  %v304_v6 = vmul.f32 %v562_v0, %v266_v58  ;;  %v236_v14 = vld [vmem:[%s567_s22 + $0x80] sm:$0xff]  ;;  %v237_v15 = vld [vmem:[%s567_s22 + $0x88] sm:$0xff]  ;;  %v270_v16 = vld [vmem:[%s572_s25 + $0x90] sm:$0xff] }
  0x1b   : > { %v369_v10 = vadd.f32 %v577_v1, %v331_v59  ;;  %v370_v11 = vadd.f32 %v577_v1, %v332_v60  ;;  %v334_v12 = vadd.f32 %v302_v61, %v232_v50  ;;  %v335_v13 = vadd.f32 %v303_v62, %v233_v56  ;;  %v238_v21 = vld [vmem:[%s567_s22 + $0x90] sm:$0xff]  ;;  %v271_v22 = vld [vmem:[%s572_s25 + $0x98] sm:$0xff]  ;;  %v272_v23 = vld [vmem:[%s572_s25 + $0xa0] sm:$0xff] }
  0x1c   : > { %400 = vst.msk [vmem:[%s598_s30 + $0x38] sm:$0xff] %vm392_vm0, %v367_v3  ;;  %401 = vst.msk [vmem:[%s598_s30 + $0x40] sm:$0xff] %vm392_vm0, %v368_v4  ;;  %v371_v17 = vadd.f32 %v577_v1, %v333_v5  ;;  %v336_v18 = vadd.f32 %v304_v6, %v234_v63  ;;  %v305_v19 = vmul.f32 %v562_v0, %v267_v2  ;;  %v239_v28 = vld [vmem:[%s567_s22 + $0x98] sm:$0xff]  ;;  %v273_v29 = vld [vmem:[%s572_s25 + $0xa8] sm:$0xff] }
  0x1d   : > { %v306_v20 = vmul.f32 %v562_v0, %v268_v8  ;;  %402 = vst.msk [vmem:[%s598_s30 + $0x48] sm:$0xff] %vm392_vm0, %v369_v10  ;;  %403 = vst.msk [vmem:[%s598_s30 + $0x50] sm:$0xff] %vm392_vm0, %v370_v11  ;;  %v372_v24 = vadd.f32 %v577_v1, %v334_v12  ;;  %v373_v25 = vadd.f32 %v577_v1, %v335_v13  ;;  %v240_v34 = vld [vmem:[%s567_s22 + $0xa0] sm:$0xff]  ;;  %v241_v35 = vld [vmem:[%s567_s22 + $0xa8] sm:$0xff] }
  0x1e   : > { %v307_v26 = vmul.f32 %v562_v0, %v269_v9  ;;  %v308_v27 = vmul.f32 %v562_v0, %v270_v16  ;;  %404 = vst.msk [vmem:[%s598_s30 + $0x58] sm:$0xff] %vm392_vm0, %v371_v17  ;;  %v374_v30 = vadd.f32 %v577_v1, %v336_v18  ;;  %v337_v31 = vadd.f32 %v305_v19, %v235_v7  ;;  %v274_v36 = vld [vmem:[%s572_s25 + $0xb0] sm:$0xff]  ;;  %v275_v42 = vld [vmem:[%s572_s25 + $0xb8] sm:$0xff]  ;;  %v276_v43 = vld [vmem:[%s572_s25 + $0xc0] sm:$0xff] }
  0x1f   : > { %v338_v32 = vadd.f32 %v306_v20, %v236_v14  ;;  %v309_v33 = vmul.f32 %v562_v0, %v271_v22  ;;  %405 = vst.msk [vmem:[%s598_s30 + $0x60] sm:$0xff] %vm392_vm0, %v372_v24  ;;  %406 = vst.msk [vmem:[%s598_s30 + $0x68] sm:$0xff] %vm392_vm0, %v373_v25  ;;  %v310_v39 = vmul.f32 %v562_v0, %v272_v23  ;;  %v242_v41 = vld [vmem:[%s567_s22 + $0xb0] sm:$0xff]  ;;  %v243_v48 = vld [vmem:[%s567_s22 + $0xb8] sm:$0xff] }
  0x20   : > { %v339_v37 = vadd.f32 %v307_v26, %v237_v15  ;;  %v340_v38 = vadd.f32 %v308_v27, %v238_v21  ;;  %v311_v40 = vmul.f32 %v562_v0, %v273_v29  ;;  %407 = vst.msk [vmem:[%s598_s30 + $0x70] sm:$0xff] %vm392_vm0, %v374_v30  ;;  %v375_v44 = vadd.f32 %v577_v1, %v337_v31  ;;  %v277_v49 = vld [vmem:[%s572_s25 + $0xc8] sm:$0xff]  ;;  %v278_v50 = vld [vmem:[%s572_s25 + $0xd0] sm:$0xff]  ;;  %v244_v55 = vld [vmem:[%s567_s22 + $0xc0] sm:$0xff] }
  0x21   : > { %v376_v45 = vadd.f32 %v577_v1, %v338_v32  ;;  %v341_v46 = vadd.f32 %v309_v33, %v239_v28  ;;  %v312_v47 = vmul.f32 %v562_v0, %v274_v36  ;;  %v342_v53 = vadd.f32 %v310_v39, %v240_v34  ;;  %v245_v56 = vld [vmem:[%s567_s22 + $0xc8] sm:$0xff]  ;;  %v279_v57 = vld [vmem:[%s572_s25 + $0xd8] sm:$0xff]  ;;  %v246_v62 = vld [vmem:[%s567_s22 + $0xd0] sm:$0xff] }
  0x22   : > { %v377_v51 = vadd.f32 %v577_v1, %v339_v37  ;;  %v378_v52 = vadd.f32 %v577_v1, %v340_v38  ;;  %v343_v54 = vadd.f32 %v311_v40, %v241_v35  ;;  %408 = vst.msk [vmem:[%s598_s30 + $0x78] sm:$0xff] %vm392_vm0, %v375_v44  ;;  %v313_v60 = vmul.f32 %v562_v0, %v275_v42  ;;  %v280_v63 = vld [vmem:[%s572_s25 + $0xe0] sm:$0xff]  ;;  %v281_v2 = vld [vmem:[%s572_s25 + $0xe8] sm:$0xff]  ;;  %v247_v7 = vld [vmem:[%s567_s22 + $0xd8] sm:$0xff] }
  0x23   : > { %409 = vst.msk [vmem:[%s598_s30 + $0x80] sm:$0xff] %vm392_vm0, %v376_v45  ;;  %v379_v58 = vadd.f32 %v577_v1, %v341_v46  ;;  %v344_v59 = vadd.f32 %v312_v47, %v242_v41  ;;  %v314_v61 = vmul.f32 %v562_v0, %v276_v43  ;;  %v380_v3 = vadd.f32 %v577_v1, %v342_v53  ;;  %v282_v8 = vld [vmem:[%s572_s25 + $0xf0] sm:$0xff]  ;;  %v248_v13 = vld [vmem:[%s567_s22 + $0xe0] sm:$0xff]  ;;  %v249_v14 = vld [vmem:[%s567_s22 + $0xe8] sm:$0xff] }
  0x24   : > { %410 = vst.msk [vmem:[%s598_s30 + $0x88] sm:$0xff] %vm392_vm0, %v377_v51  ;;  %411 = vst.msk [vmem:[%s598_s30 + $0x90] sm:$0xff] %vm392_vm0, %v378_v52  ;;  %v381_v4 = vadd.f32 %v577_v1, %v343_v54  ;;  %v315_v5 = vmul.f32 %v562_v0, %v277_v49  ;;  %v316_v6 = vmul.f32 %v562_v0, %v278_v50  ;;  %v250_v19 = vld [vmem:[%s567_s22 + $0xf0] sm:$0xff]  ;;  %v283_v20 = vld [vmem:[%s572_s25 + $0xf8] sm:$0xff] }
  0x25   : > { %412 = vst.msk [vmem:[%s598_s30 + $0x98] sm:$0xff] %vm392_vm0, %v379_v58  ;;  %v382_v9 = vadd.f32 %v577_v1, %v344_v59  ;;  %v345_v10 = vadd.f32 %v313_v60, %v243_v48  ;;  %v346_v11 = vadd.f32 %v314_v61, %v244_v55  ;;  %v317_v12 = vmul.f32 %v562_v0, %v279_v57  ;;  %v251_v29 = vld [vmem:[%s567_s22 + $0xf8] sm:$0xff] }
  0x26   : > { %413 = vst.msk [vmem:[%s598_s30 + $0xa0] sm:$0xff] %vm392_vm0, %v380_v3  ;;  %414 = vst.msk [vmem:[%s598_s30 + $0xa8] sm:$0xff] %vm392_vm0, %v381_v4  ;;  %v347_v15 = vadd.f32 %v315_v5, %v245_v56  ;;  %v348_v16 = vadd.f32 %v316_v6, %v246_v62  ;;  %v318_v17 = vmul.f32 %v562_v0, %v280_v63 }
  0x27   : > { %v319_v18 = vmul.f32 %v562_v0, %v281_v2  ;;  %415 = vst.msk [vmem:[%s598_s30 + $0xb0] sm:$0xff] %vm392_vm0, %v382_v9  ;;  %v383_v21 = vadd.f32 %v577_v1, %v345_v10  ;;  %v384_v22 = vadd.f32 %v577_v1, %v346_v11  ;;  %v349_v23 = vadd.f32 %v317_v12, %v247_v7 }
  0x28   : > { %v320_v24 = vmul.f32 %v562_v0, %v282_v8  ;;  %v385_v25 = vadd.f32 %v577_v1, %v347_v15  ;;  %v386_v26 = vadd.f32 %v577_v1, %v348_v16  ;;  %v350_v27 = vadd.f32 %v318_v17, %v248_v13 }
  0x29   : > { %v351_v28 = vadd.f32 %v319_v18, %v249_v14  ;;  %416 = vst.msk [vmem:[%s598_s30 + $0xb8] sm:$0xff] %vm392_vm0, %v383_v21  ;;  %417 = vst.msk [vmem:[%s598_s30 + $0xc0] sm:$0xff] %vm392_vm0, %v384_v22  ;;  %v387_v30 = vadd.f32 %v577_v1, %v349_v23  ;;  %v321_v32 = vmul.f32 %v562_v0, %v283_v20 }
  0x2a   : > { %v352_v31 = vadd.f32 %v320_v24, %v250_v19  ;;  %418 = vst.msk [vmem:[%s598_s30 + $0xc8] sm:$0xff] %vm392_vm0, %v385_v25  ;;  %419 = vst.msk [vmem:[%s598_s30 + $0xd0] sm:$0xff] %vm392_vm0, %v386_v26  ;;  %v388_v33 = vadd.f32 %v577_v1, %v350_v27 }
  0x2b   : > { %v389_v34 = vadd.f32 %v577_v1, %v351_v28  ;;  %420 = vst.msk [vmem:[%s598_s30 + $0xd8] sm:$0xff] %vm392_vm0, %v387_v30  ;;  %v353_v36 = vadd.f32 %v321_v32, %v251_v29 }
  0x2c   : > { %v390_v35 = vadd.f32 %v577_v1, %v352_v31  ;;  %421 = vst.msk [vmem:[%s598_s30 + $0xe0] sm:$0xff] %vm392_vm0, %v388_v33 }
  0x2d   : > { %422 = vst.msk [vmem:[%s598_s30 + $0xe8] sm:$0xff] %vm392_vm0, %v389_v34  ;;  %v391_v0 = vadd.f32 %v577_v1, %v353_v36 }
  0x2e   : > { %423 = vst.msk [vmem:[%s598_s30 + $0xf0] sm:$0xff] %vm392_vm0, %v390_v35 }
  0x2f   : > { %424 = vst.msk [vmem:[%s598_s30 + $0xf8] sm:$0xff] %vm392_vm0, %v391_v0 }
  0x30 PF: > { %s14_s15 = sadd.s32 1, %s524_s15  }
  0x31   : > { %p11_p4 = scmp.ge.s32.totalorder %s14_s15, 4  }
  0x33   :  { %13 = sbr.rel (!%p11_p4) target bundleno = 1 (0x1), region = 69 }

// kernel: residual_block.3
= control target key start
LH: loop header
LB: loop body
LE: loop exit
PB: predicated region body
PF: predicated region fallthrough
CT: control target
= control target key end

     0   :  { %s3981_s18 = smov 0   ;;  %s5231_s0 = inlined_call_operand.vmem [shape: f32[2,16,16,4], index: 0, kind: input, shape index: {}]   ;;  %s5232_s1 = inlined_call_operand.vmem [shape: bf16[9,4,4], index: 1, kind: input, shape index: {}]   ;;  %s5233_s2 = inlined_call_operand.vmem [shape: f32[1,4], index: 2, kind: input, shape index: {}]   ;;  %s5234_s3 = inlined_call_operand.vmem [shape: f32[2,16,16,4], index: 3, kind: output, shape index: {0}]   ;;  %s5235_s4 = inlined_call_operand.vmem [shape: f32[2,1,4], index: 4, kind: output, shape index: {1}]   ;;  %s5236_s5 = inlined_call_operand.vmem [shape: f32[2,1,4], index: 5, kind: output, shape index: {2}]  }
   0x1 LB: > { %s3296_s19 = sadd.s32 4294967295, %s3948_s18   ;;  %p3300_p0 = scmp.ge.s32.totalorder %s3948_s18, 1  ;;  %s3948_s18 = sphi %s3981_s18, %s16_s18  }
   0x2   : > { %p192_p1 = scmp.lt.s32.totalorder %s3948_s18, 3 }
   0x4   : > { %p193_p2 = pnand %p3300_p0, %p192_p1 }
   0x6   : > { %196 = sbr.rel (%p193_p2) target bundleno = 558 (0x22e), region = 32 }
   0xb   : > { %v3305_v0 = vld [vmem:[%s5232_s1 + $0x2] sm:$0x3]  ;;  %vm511_vm0 = vcmask 1041408   ;;  %vm243_vm1 = vcmask 31744   ;;  %vm246_vm2 = vcmask 25600   ;;  %v3950_v2 = vmov 0.0  }
   0xc   : > { %3923 = vmatprep.subr.msk.bf16.mxu0 %vm511_vm0, %v3305_v0  ;;  %3924 = vmatprep.subr.msk.bf16.mxu1 %vm511_vm0, %v3305_v0  ;;  %v513_v1 = vsel %vm511_vm0, %v3305_v0, 0  ;;  %244 = vst.msk [vmem:[#allocation2] sm:$0xff] %vm243_vm1, %v3950_v2  ;;  %245 = vst.msk [vmem:[#allocation2 + $0x8] sm:$0xff] %vm243_vm1, %v3950_v2  ;;  %p226_p3 = scmp.lt.s32.totalorder %s3296_s19, 1  ;;  %v4054_v3 = vld [vmem:[%s5232_s1] sm:$0x3] }
   0xd   : > { %247 = vst.msk [vmem:[#allocation2 + $0x10] sm:$0x3] %vm246_vm2, %v3950_v2  ;;  %250 = vst.msk [vmem:[#allocation2 + $0x28] sm:$0x3] %vm246_vm2, %v3950_v2  ;;  %v3338_v4 = vld [vmem:[%s5232_s1 + $0x4] sm:$0x3]  ;;  %3616 = vmatpush3.bf16.msra.mxu0 %v513_v1  ;;  %3922 = vmatpush3.bf16.msra.mxu1 %v513_v1 }
   0xe   : > { %248 = vst.msk [vmem:[#allocation2 + $0x18] sm:$0xff] %vm243_vm1, %v3950_v2  ;;  %249 = vst.msk [vmem:[#allocation2 + $0x20] sm:$0xff] %vm243_vm1, %v3950_v2  ;;  %s5306_s19 = smov (!%p226_p3, %s3296_s19), 1  ;;  %3925 = vmatprep.subr.msk.bf16.mxu1 %vm511_vm0, %v4054_v3  ;;  %3926 = vmatprep.subr.msk.bf16.mxu0 %vm511_vm0, %v3338_v4  ;;  %v4122_v33 = vld [vmem:[%s5232_s1 + $0x8] sm:$0x3]  ;;  %v987_v36 = vsel %vm511_vm0, %v3338_v4, 0 }
   0xf   : > { %251 = vst.msk [vmem:[#allocation2 + $0x30] sm:$0xff] %vm243_vm1, %v3950_v2  ;;  %252 = vst.msk [vmem:[#allocation2 + $0x38] sm:$0xff] %vm243_vm1, %v3950_v2  ;;  %s3460_s26 = sshll.u32 %s5306_s19, 8  ;;  %v725_v44 = vsel %vm511_vm0, %v4054_v3, 0  ;;  %v4142_v47 = vld [vmem:[%s5232_s1 + $0x6] sm:$0x3] }
  0x10   : > { %253 = vst.msk [vmem:[#allocation2 + $0x40] sm:$0x3] %vm246_vm2, %v3950_v2  ;;  %256 = vst.msk [vmem:[#allocation2 + $0x58] sm:$0x3] %vm246_vm2, %v3950_v2  ;;  %s4072_s29 = scalar_lea.vmem %s5231_s0, %s3460_s26  ;;  %s4978_s23 = scalar_lea.vmem %s5234_s3, %s3460_s26  ;;  %vm3087_vm3 = vcmask 24576  }
  0x11   : > { %254 = vst.msk [vmem:[#allocation2 + $0x48] sm:$0xff] %vm243_vm1, %v3950_v2  ;;  %255 = vst.msk [vmem:[#allocation2 + $0x50] sm:$0xff] %vm243_vm1, %v3950_v2  ;;  %v299_v5 = vld [vmem:[%s4072_s29] sm:$0xff]  ;;  %v300_v6 = vld [vmem:[%s4072_s29 + $0x8] sm:$0xff]  ;;  %s238_s26 = scalar_lea.vmem %s5235_s4, %s5306_s19 }
  0x12   : > { %257 = vst.msk [vmem:[#allocation2 + $0x60] sm:$0xff] %vm243_vm1, %v3950_v2  ;;  %258 = vst.msk [vmem:[#allocation2 + $0x68] sm:$0xff] %vm243_vm1, %v3950_v2  ;;  %v313_v7 = vld [vmem:[%s4072_s29 + $0x70] sm:$0xff]  ;;  %v314_v10 = vld [vmem:[%s4072_s29 + $0x78] sm:$0xff] }
  0x13   : > { %259 = vst.msk [vmem:[#allocation2 + $0x70] sm:$0x3] %vm246_vm2, %v3950_v2  ;;  %262 = vst.msk [vmem:[#allocation2 + $0x88] sm:$0x3] %vm246_vm2, %v3950_v2  ;;  %v413_v8 = vld [vmem:[#allocation2 + $0x1] sm:$0xff]  ;;  %v301_v14 = vld [vmem:[%s4072_s29 + $0x10] sm:$0xff] }
  0x14   : > { %260 = vst.msk [vmem:[#allocation2 + $0x78] sm:$0xff] %vm243_vm1, %v3950_v2  ;;  %261 = vst.msk [vmem:[#allocation2 + $0x80] sm:$0xff] %vm243_vm1, %v3950_v2  ;;  %v414_v9 = vld [vmem:[#allocation2 + $0x9] sm:$0xff]  ;;  %v315_v12 = vld [vmem:[%s4072_s29 + $0x80] sm:$0xff] }
  0x15   : > { %263 = vst.msk [vmem:[#allocation2 + $0x90] sm:$0xff] %vm243_vm1, %v3950_v2  ;;  %264 = vst.msk [vmem:[#allocation2 + $0x98] sm:$0xff] %vm243_vm1, %v3950_v2  ;;  %v445_v11 = vpack.c.bf16 %v414_v9, %v413_v8  ;;  %v316_v13 = vld [vmem:[%s4072_s29 + $0x88] sm:$0xff]  ;;  %v302_v15 = vld [vmem:[%s4072_s29 + $0x18] sm:$0xff] }
  0x16   : > { %265 = vst.msk [vmem:[#allocation2 + $0xa0] sm:$0x3] %vm246_vm2, %v3950_v2  ;;  %268 = vst.msk [vmem:[#allocation2 + $0xb8] sm:$0x3] %vm246_vm2, %v3950_v2  ;;  %v303_v16 = vld [vmem:[%s4072_s29 + $0x20] sm:$0xff]  ;;  %v304_v17 = vld [vmem:[%s4072_s29 + $0x28] sm:$0xff] }
  0x17   : > { %266 = vst.msk [vmem:[#allocation2 + $0xa8] sm:$0xff] %vm243_vm1, %v3950_v2  ;;  %267 = vst.msk [vmem:[#allocation2 + $0xb0] sm:$0xff] %vm243_vm1, %v3950_v2  ;;  %3617 = vmatprep.mubr.msk.bf16.mxu0 %vm243_vm1, %v445_v11  ;;  %v317_v18 = vld [vmem:[%s4072_s29 + $0x90] sm:$0xff]  ;;  %v318_v19 = vld [vmem:[%s4072_s29 + $0x98] sm:$0xff] }
  0x18   : > { %269 = vst.msk [vmem:[#allocation2 + $0xc0] sm:$0xff] %vm243_vm1, %v3950_v2  ;;  %270 = vst.msk [vmem:[#allocation2 + $0xc8] sm:$0xff] %vm243_vm1, %v3950_v2  ;;  %v319_v20 = vld [vmem:[%s4072_s29 + $0xa0] sm:$0xff]  ;;  %v320_v21 = vld [vmem:[%s4072_s29 + $0xa8] sm:$0xff] }
  0x19   : > { %271 = vst.msk [vmem:[#allocation2 + $0xd0] sm:$0x3] %vm246_vm2, %v3950_v2  ;;  %274 = vst.msk [vmem:[#allocation2 + $0xe8] sm:$0x3] %vm246_vm2, %v3950_v2  ;;  %v305_v22 = vld [vmem:[%s4072_s29 + $0x30] sm:$0xff]  ;;  %v306_v23 = vld [vmem:[%s4072_s29 + $0x38] sm:$0xff] }
  0x1a   : > { %272 = vst.msk [vmem:[#allocation2 + $0xd8] sm:$0xff] %vm243_vm1, %v3950_v2  ;;  %273 = vst.msk [vmem:[#allocation2 + $0xe0] sm:$0xff] %vm243_vm1, %v3950_v2  ;;  %v307_v24 = vld [vmem:[%s4072_s29 + $0x40] sm:$0xff]  ;;  %v308_v25 = vld [vmem:[%s4072_s29 + $0x48] sm:$0xff] }
  0x1b   : > { %275 = vst.msk [vmem:[#allocation2 + $0xf0] sm:$0xff] %vm243_vm1, %v3950_v2  ;;  %276 = vst.msk [vmem:[#allocation2 + $0xf8] sm:$0xff] %vm243_vm1, %v3950_v2  ;;  %v321_v26 = vld [vmem:[%s4072_s29 + $0xb0] sm:$0xff]  ;;  %v322_v27 = vld [vmem:[%s4072_s29 + $0xb8] sm:$0xff] }
  0x1c   : > { %277 = vst.msk [vmem:[#allocation2 + $0x100] sm:$0x3] %vm246_vm2, %v3950_v2  ;;  %280 = vst.msk [vmem:[#allocation2 + $0x118] sm:$0x3] %vm246_vm2, %v3950_v2  ;;  %v323_v28 = vld [vmem:[%s4072_s29 + $0xc0] sm:$0xff]  ;;  %v324_v29 = vld [vmem:[%s4072_s29 + $0xc8] sm:$0xff] }
  0x1d   : > { %278 = vst.msk [vmem:[#allocation2 + $0x108] sm:$0xff] %vm243_vm1, %v3950_v2  ;;  %279 = vst.msk [vmem:[#allocation2 + $0x110] sm:$0xff] %vm243_vm1, %v3950_v2  ;;  %v309_v37 = vld [vmem:[%s4072_s29 + $0x50] sm:$0xff]  ;;  %v310_v38 = vld [vmem:[%s4072_s29 + $0x58] sm:$0xff] }
  0x1e   : > { %281 = vst.msk [vmem:[#allocation2 + $0x120] sm:$0xff] %vm243_vm1, %v3950_v2  ;;  %282 = vst.msk [vmem:[#allocation2 + $0x128] sm:$0xff] %vm243_vm1, %v3950_v2  ;;  %v311_v61 = vld [vmem:[%s4072_s29 + $0x60] sm:$0xff]  ;;  %v312_v62 = vld [vmem:[%s4072_s29 + $0x68] sm:$0xff] }
  0x1f   : > { %283 = vst.msk [vmem:[#allocation2 + $0x130] sm:$0x3] %vm246_vm2, %v3950_v2  ;;  %286 = vst.msk [vmem:[#allocation2 + $0x148] sm:$0x3] %vm246_vm2, %v3950_v2  ;;  %v325_v63 = vld [vmem:[%s4072_s29 + $0xd0] sm:$0xff]  ;;  %v326_v1 = vld [vmem:[%s4072_s29 + $0xd8] sm:$0xff] }
  0x20   : > { %284 = vst.msk [vmem:[#allocation2 + $0x138] sm:$0xff] %vm243_vm1, %v3950_v2  ;;  %285 = vst.msk [vmem:[#allocation2 + $0x140] sm:$0xff] %vm243_vm1, %v3950_v2  ;;  %v327_v3 = vld [vmem:[%s4072_s29 + $0xe0] sm:$0xff]  ;;  %v328_v4 = vld [vmem:[%s4072_s29 + $0xe8] sm:$0xff] }
  0x21   : > { %287 = vst.msk [vmem:[#allocation2 + $0x150] sm:$0xff] %vm243_vm1, %v3950_v2  ;;  %288 = vst.msk [vmem:[#allocation2 + $0x158] sm:$0xff] %vm243_vm1, %v3950_v2 }
  0x22   : > { %289 = vst.msk [vmem:[#allocation2 + $0x160] sm:$0x3] %vm246_vm2, %v3950_v2  ;;  %292 = vst.msk [vmem:[#allocation2 + $0x178] sm:$0x3] %vm246_vm2, %v3950_v2 }
  0x23   : > { %290 = vst.msk [vmem:[#allocation2 + $0x168] sm:$0xff] %vm243_vm1, %v3950_v2  ;;  %291 = vst.msk [vmem:[#allocation2 + $0x170] sm:$0xff] %vm243_vm1, %v3950_v2 }
  0x24   : > { %293 = vst.msk [vmem:[#allocation2 + $0x180] sm:$0xff] %vm243_vm1, %v3950_v2  ;;  %294 = vst.msk [vmem:[#allocation2 + $0x188] sm:$0xff] %vm243_vm1, %v3950_v2 }
  0x25   : > { %295 = vst.msk [vmem:[#allocation2 + $0x190] sm:$0x3] %vm246_vm2, %v3950_v2  ;;  %298 = vst.msk [vmem:[#allocation2 + $0x1a8] sm:$0x3] %vm246_vm2, %v3950_v2 }
  0x26   : > { %296 = vst.msk [vmem:[#allocation2 + $0x198] sm:$0xff] %vm243_vm1, %v3950_v2  ;;  %297 = vst.msk [vmem:[#allocation2 + $0x1a0] sm:$0xff] %vm243_vm1, %v3950_v2 }
  0x27   : > { %332 = vst.msk [vmem:[#allocation2 + $0x19] sm:$0xff] %vm243_vm1, %v299_v5  ;;  %333 = vst.msk [vmem:[#allocation2 + $0x21] sm:$0xff] %vm243_vm1, %v300_v6 }
  0x28   : > { %346 = vst.msk [vmem:[#allocation2 + $0xc1] sm:$0xff] %vm243_vm1, %v313_v7  ;;  %347 = vst.msk [vmem:[#allocation2 + $0xc9] sm:$0xff] %vm243_vm1, %v314_v10 }
  0x29   : > { %348 = vst.msk [vmem:[#allocation2 + $0xd9] sm:$0xff] %vm243_vm1, %v315_v12  ;;  %349 = vst.msk [vmem:[#allocation2 + $0xe1] sm:$0xff] %vm243_vm1, %v316_v13 }
  0x2a   : > { %334 = vst.msk [vmem:[#allocation2 + $0x31] sm:$0xff] %vm243_vm1, %v301_v14  ;;  %335 = vst.msk [vmem:[#allocation2 + $0x39] sm:$0xff] %vm243_vm1, %v302_v15 }
  0x2b   : > { %336 = vst.msk [vmem:[#allocation2 + $0x49] sm:$0xff] %vm243_vm1, %v303_v16  ;;  %337 = vst.msk [vmem:[#allocation2 + $0x51] sm:$0xff] %vm243_vm1, %v304_v17 }
  0x2c   : > { %350 = vst.msk [vmem:[#allocation2 + $0xf1] sm:$0xff] %vm243_vm1, %v317_v18  ;;  %351 = vst.msk [vmem:[#allocation2 + $0xf9] sm:$0xff] %vm243_vm1, %v318_v19  ;;  %v888_v19 = vld [vmem:[#allocation2 + $0x2] sm:$0xff] }
  0x2d   : > { %352 = vst.msk [vmem:[#allocation2 + $0x109] sm:$0xff] %vm243_vm1, %v319_v20  ;;  %353 = vst.msk [vmem:[#allocation2 + $0x111] sm:$0xff] %vm243_vm1, %v320_v21  ;;  %v889_v20 = vld [vmem:[#allocation2 + $0xa] sm:$0xff] }
  0x2e   : > { %338 = vst.msk [vmem:[#allocation2 + $0x61] sm:$0xff] %vm243_vm1, %v305_v22  ;;  %339 = vst.msk [vmem:[#allocation2 + $0x69] sm:$0xff] %vm243_vm1, %v306_v23  ;;  %v415_v30 = vld [vmem:[#allocation2 + $0x19] sm:$0xff]  ;;  %v416_v31 = vld [vmem:[#allocation2 + $0x21] sm:$0xff] }
  0x2f   : > { %340 = vst.msk [vmem:[#allocation2 + $0x79] sm:$0xff] %vm243_vm1, %v307_v24  ;;  %341 = vst.msk [vmem:[#allocation2 + $0x81] sm:$0xff] %vm243_vm1, %v308_v25  ;;  %v429_v32 = vld [vmem:[#allocation2 + $0xc1] sm:$0xff]  ;;  %v4124_v34 = vpack.c.bf16 %v416_v31, %v415_v30  ;;  %v430_v35 = vld [vmem:[#allocation2 + $0xc9] sm:$0xff] }
  0x30   : > { %354 = vst.msk [vmem:[#allocation2 + $0x121] sm:$0xff] %vm243_vm1, %v321_v26  ;;  %355 = vst.msk [vmem:[#allocation2 + $0x129] sm:$0xff] %vm243_vm1, %v322_v27  ;;  %v4129_v39 = vpack.c.bf16 %v430_v35, %v429_v32  ;;  %v431_v40 = vld [vmem:[#allocation2 + $0xd9] sm:$0xff]  ;;  %v432_v41 = vld [vmem:[#allocation2 + $0xe1] sm:$0xff]  ;;  %v920_v26 = vpack.c.bf16 %v889_v20, %v888_v19 }
  0x31   : > { %356 = vst.msk [vmem:[#allocation2 + $0x139] sm:$0xff] %vm243_vm1, %v323_v28  ;;  %357 = vst.msk [vmem:[#allocation2 + $0x141] sm:$0xff] %vm243_vm1, %v324_v29  ;;  %v417_v42 = vld [vmem:[#allocation2 + $0x31] sm:$0xff]  ;;  %3618 = vmatmul.mubr.msk.bf16.vlgmr.msra.gmra.mxu0 %vm243_vm1, %v4124_v34  ;;  %v4135_v43 = vpack.c.bf16 %v432_v41, %v431_v40  ;;  %v418_v45 = vld [vmem:[#allocation2 + $0x39] sm:$0xff] }
  0x32   : > { %342 = vst.msk [vmem:[#allocation2 + $0x91] sm:$0xff] %vm243_vm1, %v309_v37  ;;  %343 = vst.msk [vmem:[#allocation2 + $0x99] sm:$0xff] %vm243_vm1, %v310_v38  ;;  %v419_v46 = vld [vmem:[#allocation2 + $0x49] sm:$0xff]  ;;  %3633 = vmatprep.mubr.msk.bf16.mxu1 %vm243_vm1, %v4129_v39  ;;  %3684 = vmatpush3.bf16.msra.mxu0 %v987_v36  ;;  %v4146_v48 = vpack.c.bf16 %v418_v45, %v417_v42  ;;  %v420_v49 = vld [vmem:[#allocation2 + $0x51] sm:$0xff] }
  0x33   : > { %v433_v50 = vld [vmem:[#allocation2 + $0xf1] sm:$0xff]  ;;  %v434_v51 = vld [vmem:[#allocation2 + $0xf9] sm:$0xff]  ;;  %3634 = vmatmul.mubr.msk.bf16.vlgmr.msra.gmra.mxu1 %vm243_vm1, %v4135_v43  ;;  %3928 = vmatprep.subr.msk.bf16.mxu0 %vm511_vm0, %v4122_v33  ;;  %v4156_v57 = vpack.c.bf16 %v420_v49, %v419_v46  ;;  %344 = vst.msk [vmem:[#allocation2 + $0xa9] sm:$0xff] %vm243_vm1, %v311_v61  ;;  %345 = vst.msk [vmem:[#allocation2 + $0xb1] sm:$0xff] %vm243_vm1, %v312_v62 }
  0x34   : > { %v4150_v52 = vpack.c.bf16 %v434_v51, %v433_v50  ;;  %3650 = vmatpush3.bf16.msra.mxu1 %v725_v44  ;;  %3621 = vmatprep.mubr.msk.bf16.mxu0 %vm243_vm1, %v4146_v48  ;;  %v435_v55 = vld [vmem:[#allocation2 + $0x109] sm:$0xff]  ;;  %v436_v56 = vld [vmem:[#allocation2 + $0x111] sm:$0xff]  ;;  %358 = vst.msk [vmem:[#allocation2 + $0x151] sm:$0xff] %vm243_vm1, %v325_v63  ;;  %359 = vst.msk [vmem:[#allocation2 + $0x159] sm:$0xff] %vm243_vm1, %v326_v1  ;;  %v1575_v44 = vsel %vm511_vm0, %v4122_v33, 0  ;;  %v1281_v51 = vsel %vm511_vm0, %v4142_v47, 0 }
  0x35   : > { %v421_v53 = vld [vmem:[#allocation2 + $0x61] sm:$0xff]  ;;  %v422_v54 = vld [vmem:[#allocation2 + $0x69] sm:$0xff]  ;;  %3927 = vmatprep.subr.msk.bf16.mxu1 %vm511_vm0, %v4142_v47  ;;  %v4167_v0 = vpack.c.bf16 %v436_v56, %v435_v55  ;;  %360 = vst.msk [vmem:[#allocation2 + $0x169] sm:$0xff] %vm243_vm1, %v327_v3  ;;  %361 = vst.msk [vmem:[#allocation2 + $0x171] sm:$0xff] %vm243_vm1, %v328_v4 }
  0x36   : > { %3637 = vmatprep.mubr.msk.bf16.mxu1 %vm243_vm1, %v4150_v52  ;;  %v4162_v60 = vpack.c.bf16 %v422_v54, %v421_v53  ;;  %v423_v5 = vld [vmem:[#allocation2 + $0x79] sm:$0xff]  ;;  %v424_v6 = vld [vmem:[#allocation2 + $0x81] sm:$0xff]  ;;  %v368_v38 = vld [vmem:[#allocation2 + $0x30] sm:$0xff] }
  0x37   : > { %v437_v58 = vld [vmem:[#allocation2 + $0x121] sm:$0xff]  ;;  %v438_v59 = vld [vmem:[#allocation2 + $0x129] sm:$0xff]  ;;  %v4188_v11 = vpack.c.bf16 %v424_v6, %v423_v5  ;;  %v892_v31 = vld [vmem:[#allocation2 + $0x32] sm:$0xff] }
  0x38   : > { %v4173_v2 = vpack.c.bf16 %v438_v59, %v437_v58  ;;  %v439_v9 = vld [vmem:[#allocation2 + $0x139] sm:$0xff]  ;;  %v440_v10 = vld [vmem:[#allocation2 + $0x141] sm:$0xff]  ;;  %v4227_v46 = vld [vmem:[%s5232_s1 + $0xc] sm:$0x3] }
  0x39   : > { %3622 = vmatmul.mubr.msk.bf16.gmra.mxu0 %vm243_vm1, %v4156_v57  ;;  %v425_v7 = vld [vmem:[#allocation2 + $0x91] sm:$0xff]  ;;  %v426_v8 = vld [vmem:[#allocation2 + $0x99] sm:$0xff]  ;;  %v4192_v14 = vpack.c.bf16 %v440_v10, %v439_v9  ;;  %v365_v25 = vld [vmem:[#allocation2 + $0x8] sm:$0xff] }
  0x3a   : > { %3625 = vmatprep.mubr.msk.bf16.mxu0 %vm243_vm1, %v4162_v60  ;;  %v4190_v12 = vpack.c.bf16 %v426_v8, %v425_v7  ;;  %v427_v17 = vld [vmem:[#allocation2 + $0xa9] sm:$0xff]  ;;  %v428_v18 = vld [vmem:[#allocation2 + $0xb1] sm:$0xff]  ;;  %v364_v24 = vld [vmem:[#allocation2] sm:$0xff] }
  0x3b   : > { %3638 = vmatmul.mubr.msk.bf16.gmra.mxu1 %vm243_vm1, %v4167_v0  ;;  %v441_v13 = vld [vmem:[#allocation2 + $0x151] sm:$0xff]  ;;  %v442_v15 = vld [vmem:[#allocation2 + $0x159] sm:$0xff]  ;;  %v4204_v23 = vpack.c.bf16 %v428_v18, %v427_v17  ;;  %v396_v28 = vpack.c.bf16 %v365_v25, %v364_v24  ;;  %v891_v30 = vld [vmem:[#allocation2 + $0x22] sm:$0xff] }
  0x3c   : > { %3641 = vmatprep.mubr.msk.bf16.mxu1 %vm243_vm1, %v4173_v2  ;;  %v4194_v16 = vpack.c.bf16 %v442_v15, %v441_v13  ;;  %v443_v21 = vld [vmem:[#allocation2 + $0x169] sm:$0xff]  ;;  %v444_v22 = vld [vmem:[#allocation2 + $0x171] sm:$0xff]  ;;  %v890_v29 = vld [vmem:[#allocation2 + $0x1a] sm:$0xff] }
  0x3d   : > { %v4206_v27 = vpack.c.bf16 %v444_v22, %v443_v21  ;;  %v893_v32 = vld [vmem:[#allocation2 + $0x3a] sm:$0xff]  ;;  %v4214_v37 = vpack.c.bf16 %v891_v30, %v890_v29  ;;  %v329_v49 = vld [vmem:[%s4072_s29 + $0xf0] sm:$0xff]  ;;  %v4242_v54 = vld [vmem:[%s5232_s1 + $0xa] sm:$0x3] }
  0x3e   : > { %v366_v35 = vld [vmem:[#allocation2 + $0x18] sm:$0xff]  ;;  %v367_v36 = vld [vmem:[#allocation2 + $0x20] sm:$0xff]  ;;  %v4216_v41 = vpack.c.bf16 %v893_v32, %v892_v31  ;;  %362 = vst.msk [vmem:[#allocation2 + $0x181] sm:$0xff] %vm243_vm1, %v329_v49  ;;  %v894_v33 = vld [vmem:[#allocation2 + $0x4a] sm:$0xff] }
  0x3f   : > { %v369_v40 = vld [vmem:[#allocation2 + $0x38] sm:$0xff]  ;;  %v4218_v42 = vpack.c.bf16 %v367_v36, %v366_v35  ;;  %v896_v55 = vld [vmem:[#allocation2 + $0x62] sm:$0xff]  ;;  %v897_v47 = vld [vmem:[#allocation2 + $0x6a] sm:$0xff] }
  0x40   : > { %v4222_v45 = vpack.c.bf16 %v369_v40, %v368_v38  ;;  %v330_v50 = vld [vmem:[%s4072_s29 + $0xf8] sm:$0xff]  ;;  %v370_v56 = vld [vmem:[#allocation2 + $0x48] sm:$0xff]  ;;  %v371_v58 = vld [vmem:[#allocation2 + $0x50] sm:$0xff]  ;;  %v4254_v63 = vpack.c.bf16 %v897_v47, %v896_v55  ;;  %s241_s29 = scalar_lea.vmem %s5236_s5, %s5306_s19 }
  0x41   : > { %3626 = vmatmul.mubr.msk.bf16.gmra.mxu0 %vm243_vm1, %v4188_v11  ;;  %363 = vst.msk [vmem:[#allocation2 + $0x189] sm:$0xff] %vm243_vm1, %v330_v50  ;;  %v895_v53 = vld [vmem:[#allocation2 + $0x52] sm:$0xff]  ;;  %v372_v61 = vld [vmem:[#allocation2 + $0x60] sm:$0xff]  ;;  %v373_v62 = vld [vmem:[#allocation2 + $0x68] sm:$0xff]  ;;  %v4256_v1 = vpack.c.bf16 %v371_v58, %v370_v56 }
  0x42   : > { %3629 = vmatprep.mubr.msk.bf16.mxu0 %vm243_vm1, %v4190_v12  ;;  %v4250_v59 = vpack.c.bf16 %v895_v53, %v894_v33  ;;  %v4258_v3 = vpack.c.bf16 %v373_v62, %v372_v61  ;;  %v898_v4 = vld [vmem:[#allocation2 + $0x7a] sm:$0xff]  ;;  %v899_v5 = vld [vmem:[#allocation2 + $0x82] sm:$0xff]  ;;  %v900_v6 = vld [vmem:[#allocation2 + $0x92] sm:$0xff] }
  0x43   : > { %3642 = vmatmul.mubr.msk.bf16.gmra.mxu1 %vm243_vm1, %v4192_v14  ;;  %v901_v7 = vld [vmem:[#allocation2 + $0x9a] sm:$0xff]  ;;  %v4268_v10 = vpack.c.bf16 %v899_v5, %v898_v4  ;;  %v376_v13 = vld [vmem:[#allocation2 + $0x90] sm:$0xff]  ;;  %v904_v22 = vld [vmem:[#allocation2 + $0xc2] sm:$0xff] }
  0x44   : > { %3645 = vmatprep.mubr.msk.bf16.mxu1 %vm243_vm1, %v4194_v16  ;;  %v374_v8 = vld [vmem:[#allocation2 + $0x78] sm:$0xff]  ;;  %v375_v9 = vld [vmem:[#allocation2 + $0x80] sm:$0xff]  ;;  %v4270_v17 = vpack.c.bf16 %v901_v7, %v900_v6  ;;  %v902_v20 = vld [vmem:[#allocation2 + $0xaa] sm:$0xff] }
  0x45   : > { %v377_v15 = vld [vmem:[#allocation2 + $0x98] sm:$0xff]  ;;  %v4272_v18 = vpack.c.bf16 %v375_v9, %v374_v8  ;;  %v905_v24 = vld [vmem:[#allocation2 + $0xca] sm:$0xff]  ;;  %v380_v29 = vld [vmem:[#allocation2 + $0xc0] sm:$0xff] }
  0x46   : > { %v4274_v19 = vpack.c.bf16 %v377_v15, %v376_v13  ;;  %v903_v21 = vld [vmem:[#allocation2 + $0xb2] sm:$0xff]  ;;  %v378_v25 = vld [vmem:[#allocation2 + $0xa8] sm:$0xff]  ;;  %v4286_v31 = vpack.c.bf16 %v905_v24, %v904_v22  ;;  %v906_v36 = vld [vmem:[#allocation2 + $0xda] sm:$0xff] }
  0x47   : > { %v381_v30 = vld [vmem:[#allocation2 + $0xc8] sm:$0xff]  ;;  %v908_v40 = vld [vmem:[#allocation2 + $0xf2] sm:$0xff]  ;;  %v383_v50 = vld [vmem:[#allocation2 + $0xe0] sm:$0xff] }
  0x48   : > { %v4290_v35 = vpack.c.bf16 %v381_v30, %v380_v29  ;;  %v907_v38 = vld [vmem:[#allocation2 + $0xe2] sm:$0xff]  ;;  %v382_v49 = vld [vmem:[#allocation2 + $0xd8] sm:$0xff]  ;;  %v384_v33 = vld [vmem:[#allocation2 + $0xf0] sm:$0xff] }
  0x49   : > { %3630 = vmatmul.mubr.msk.bf16.gmra.mxu0 %vm243_vm1, %v4204_v23  ;;  %v385_v53 = vld [vmem:[#allocation2 + $0xf8] sm:$0xff]  ;;  %v4304_v47 = vpack.c.bf16 %v383_v50, %v382_v49  ;;  %v910_v58 = vld [vmem:[#allocation2 + $0x10a] sm:$0xff]  ;;  %v912_v62 = vld [vmem:[#allocation2 + $0x122] sm:$0xff] }
  0x4a   : > { %3685 = vmatprep.mubr.msk.bf16.mxu0 %vm243_vm1, %v920_v26  ;;  %v379_v26 = vld [vmem:[#allocation2 + $0xb0] sm:$0xff]  ;;  %v4306_v56 = vpack.c.bf16 %v385_v53, %v384_v33  ;;  %v386_v5 = vld [vmem:[#allocation2 + $0x108] sm:$0xff]  ;;  %v388_v8 = vld [vmem:[#allocation2 + $0x120] sm:$0xff] }
  0x4b   : > { %3646 = vmatmul.mubr.msk.bf16.gmra.mxu1 %vm243_vm1, %v4206_v27  ;;  %v4288_v32 = vpack.c.bf16 %v379_v26, %v378_v25  ;;  %v911_v61 = vld [vmem:[#allocation2 + $0x112] sm:$0xff]  ;;  %v913_v4 = vld [vmem:[#allocation2 + $0x12a] sm:$0xff]  ;;  %v915_v22 = vld [vmem:[#allocation2 + $0x142] sm:$0xff] }
  0x4c   : > { %3651 = vmatprep.mubr.msk.bf16.mxu1 %vm243_vm1, %v396_v28  ;;  %v4284_v28 = vpack.c.bf16 %v903_v21, %v902_v20  ;;  %v387_v6 = vld [vmem:[#allocation2 + $0x110] sm:$0xff]  ;;  %v4316_v7 = vpack.c.bf16 %v911_v61, %v910_v58  ;;  %v389_v9 = vld [vmem:[#allocation2 + $0x128] sm:$0xff]  ;;  %v4318_v13 = vpack.c.bf16 %v913_v4, %v912_v62  ;;  %v914_v21 = vld [vmem:[#allocation2 + $0x13a] sm:$0xff]  ;;  %v2164_v4 = vsel %vm511_vm0, %v4227_v46, 0 }
  0x4d   : > { %v4320_v15 = vpack.c.bf16 %v387_v6, %v386_v5  ;;  %v4322_v20 = vpack.c.bf16 %v389_v9, %v388_v8  ;;  %v916_v24 = vld [vmem:[#allocation2 + $0x152] sm:$0xff]  ;;  %v917_v25 = vld [vmem:[#allocation2 + $0x15a] sm:$0xff]  ;;  %v4332_v30 = vpack.c.bf16 %v915_v22, %v914_v21  ;;  %v918_v50 = vld [vmem:[#allocation2 + $0x16a] sm:$0xff]  ;;  %v1869_v6 = vsel %vm511_vm0, %v4242_v54, 0 }
  0x4e   : > { %v390_v26 = vld [vmem:[#allocation2 + $0x138] sm:$0xff]  ;;  %v391_v29 = vld [vmem:[#allocation2 + $0x140] sm:$0xff]  ;;  %v394_v53 = vld [vmem:[#allocation2 + $0x168] sm:$0xff] }
  0x4f   : > { %v919_v33 = vld [vmem:[#allocation2 + $0x172] sm:$0xff]  ;;  %v3440_v5 = vld [vmem:[%s5232_s1 + $0x10] sm:$0x3] }
  0x50   : > { %v395_v58 = vld [vmem:[#allocation2 + $0x170] sm:$0xff]  ;;  %v4348_v61 = vpack.c.bf16 %v919_v33, %v918_v50 }
  0x51   : > { %3686 = vmatmul.mubr.msk.bf16.vlgmr.msra.gmra.mxu0 %vm243_vm1, %v4214_v37  ;;  %v4350_v62 = vpack.c.bf16 %v395_v58, %v394_v53  ;;  %v2361_v58 = vld [vmem:[#allocation2 + $0x49] sm:$0xff] }
  0x52   : > { %3752 = vmatpush3.bf16.msra.mxu0 %v1575_v44  ;;  %3689 = vmatprep.mubr.msk.bf16.mxu0 %vm243_vm1, %v4216_v41  ;;  %v909_v44 = vld [vmem:[#allocation2 + $0xfa] sm:$0xff] }
  0x53   : > { %3652 = vmatmul.mubr.msk.bf16.vlgmr.msra.gmra.mxu1 %vm243_vm1, %v4218_v42  ;;  %3930 = vmatprep.subr.msk.bf16.mxu0 %vm511_vm0, %v4227_v46  ;;  %v4302_v55 = vpack.c.bf16 %v909_v44, %v908_v40  ;;  %v4334_v40 = vpack.c.bf16 %v917_v25, %v916_v24  ;;  %v4336_v44 = vpack.c.bf16 %v391_v29, %v390_v26  ;;  %v2359_v25 = vld [vmem:[#allocation2 + $0x31] sm:$0xff]  ;;  %v2360_v26 = vld [vmem:[#allocation2 + $0x39] sm:$0xff] }
  0x54   : > { %3718 = vmatpush3.bf16.msra.mxu1 %v1281_v51  ;;  %3655 = vmatprep.mubr.msk.bf16.mxu1 %vm243_vm1, %v4222_v45  ;;  %v4300_v51 = vpack.c.bf16 %v907_v38, %v906_v36  ;;  %v392_v36 = vld [vmem:[#allocation2 + $0x150] sm:$0xff]  ;;  %v393_v38 = vld [vmem:[#allocation2 + $0x158] sm:$0xff] }
  0x55   : > { %3929 = vmatprep.subr.msk.bf16.mxu1 %vm511_vm0, %v4242_v54  ;;  %v4338_v49 = vpack.c.bf16 %v393_v38, %v392_v36 }
  0x59   : > { %3690 = vmatmul.mubr.msk.bf16.gmra.mxu0 %vm243_vm1, %v4250_v59 }
  0x5a   : > { %3693 = vmatprep.mubr.msk.bf16.mxu0 %vm243_vm1, %v4254_v63 }
  0x5b   : > { %3656 = vmatmul.mubr.msk.bf16.gmra.mxu1 %vm243_vm1, %v4256_v1 }
  0x5c   : > { %3659 = vmatprep.mubr.msk.bf16.mxu1 %vm243_vm1, %v4258_v3 }
  0x61   : > { %3694 = vmatmul.mubr.msk.bf16.gmra.mxu0 %vm243_vm1, %v4268_v10 }
  0x62   : > { %3697 = vmatprep.mubr.msk.bf16.mxu0 %vm243_vm1, %v4270_v17 }
  0x63   : > { %3660 = vmatmul.mubr.msk.bf16.gmra.mxu1 %vm243_vm1, %v4272_v18 }
  0x64   : > { %3663 = vmatprep.mubr.msk.bf16.mxu1 %vm243_vm1, %v4274_v19 }
  0x69   : > { %3698 = vmatmul.mubr.msk.bf16.gmra.mxu0 %vm243_vm1, %v4284_v28 }
  0x6a   : > { %3701 = vmatprep.mubr.msk.bf16.mxu0 %vm243_vm1, %v4286_v31 }
  0x6b   : > { %3664 = vmatmul.mubr.msk.bf16.gmra.mxu1 %vm243_vm1, %v4288_v32 }
  0x6c   : > { %3667 = vmatprep.mubr.msk.bf16.mxu1 %vm243_vm1, %v4290_v35 }
  0x71   : > { %3702 = vmatmul.mubr.msk.bf16.gmra.mxu0 %vm243_vm1, %v4300_v51 }
  0x72   : > { %3705 = vmatprep.mubr.msk.bf16.mxu0 %vm243_vm1, %v4302_v55 }
  0x73   : > { %3668 = vmatmul.mubr.msk.bf16.gmra.mxu1 %vm243_vm1, %v4304_v47 }
  0x74   : > { %3671 = vmatprep.mubr.msk.bf16.mxu1 %vm243_vm1, %v4306_v56 }
  0x79   : > { %3706 = vmatmul.mubr.msk.bf16.gmra.mxu0 %vm243_vm1, %v4316_v7 }
  0x7a   : > { %3709 = vmatprep.mubr.msk.bf16.mxu0 %vm243_vm1, %v4318_v13 }
  0x7b   : > { %3672 = vmatmul.mubr.msk.bf16.gmra.mxu1 %vm243_vm1, %v4320_v15 }
  0x7c   : > { %3675 = vmatprep.mubr.msk.bf16.mxu1 %vm243_vm1, %v4322_v20 }
  0x81   : > { %3710 = vmatmul.mubr.msk.bf16.gmra.mxu0 %vm243_vm1, %v4332_v30 }
  0x82   : > { %3713 = vmatprep.mubr.msk.bf16.mxu0 %vm243_vm1, %v4334_v40 }
  0x83   : > { %3676 = vmatmul.mubr.msk.bf16.gmra.mxu1 %vm243_vm1, %v4336_v44 }
  0x84   : > { %3679 = vmatprep.mubr.msk.bf16.mxu1 %vm243_vm1, %v4338_v49 }
  0x89   : > { %3714 = vmatmul.mubr.msk.bf16.gmra.mxu0 %vm243_vm1, %v4348_v61 }
  0x8a   : > { %3753 = vmatprep.mubr.msk.bf16.mxu0 %vm243_vm1, %v4124_v34  ;;  %v3423_v34 = vld [vmem:[%s5232_s1 + $0xe] sm:$0x3] }
  0x8b   : > { %3680 = vmatmul.mubr.msk.bf16.gmra.mxu1 %vm243_vm1, %v4350_v62 }
  0x8c   : > { %3719 = vmatprep.mubr.msk.bf16.mxu1 %vm243_vm1, %v4218_v42 }
  0x91   : > { %3754 = vmatmul.mubr.msk.bf16.vlgmr.msra.gmra.mxu0 %vm243_vm1, %v4146_v48  ;;  %v1212_v48 = vld [vmem:[#allocation2 + $0x180] sm:$0xff] }
  0x92   : > { %3820 = vmatpush3.bf16.msra.mxu0 %v2164_v4  ;;  %3757 = vmatprep.mubr.msk.bf16.mxu0 %vm243_vm1, %v4156_v57 }
  0x93   : > { %3720 = vmatmul.mubr.msk.bf16.vlgmr.msra.gmra.mxu1 %vm243_vm1, %v4222_v45  ;;  %3932 = vmatprep.subr.msk.bf16.mxu0 %vm511_vm0, %v3440_v5 }
  0x94   : > { %3786 = vmatpush3.bf16.msra.mxu1 %v1869_v6  ;;  %3723 = vmatprep.mubr.msk.bf16.mxu1 %vm243_vm1, %v4256_v1  ;;  %v2363_v6 = vld [vmem:[#allocation2 + $0x61] sm:$0xff] }
  0x95   : > { %3931 = vmatprep.subr.msk.bf16.mxu1 %vm511_vm0, %v3423_v34 }
  0x99   : > { %3758 = vmatmul.mubr.msk.bf16.gmra.mxu0 %vm243_vm1, %v4162_v60 }
  0x9a   : > { %3761 = vmatprep.mubr.msk.bf16.mxu0 %vm243_vm1, %v4188_v11 }
  0x9b   : > { %3724 = vmatmul.mubr.msk.bf16.gmra.mxu1 %vm243_vm1, %v4258_v3 }
  0x9c   : > { %3727 = vmatprep.mubr.msk.bf16.mxu1 %vm243_vm1, %v4272_v18 }
  0xa1   : > { %3762 = vmatmul.mubr.msk.bf16.gmra.mxu0 %vm243_vm1, %v4190_v12 }
  0xa2   : > { %3765 = vmatprep.mubr.msk.bf16.mxu0 %vm243_vm1, %v4204_v23 }
  0xa3   : > { %3728 = vmatmul.mubr.msk.bf16.gmra.mxu1 %vm243_vm1, %v4274_v19 }
  0xa4   : > { %3731 = vmatprep.mubr.msk.bf16.mxu1 %vm243_vm1, %v4288_v32 }
  0xa9   : > { %3766 = vmatmul.mubr.msk.bf16.gmra.mxu0 %vm243_vm1, %v4129_v39  ;;  %v1506_v39 = vld [vmem:[#allocation2 + $0x181] sm:$0xff] }
  0xaa   : > { %3769 = vmatprep.mubr.msk.bf16.mxu0 %vm243_vm1, %v4135_v43  ;;  %v1507_v43 = vld [vmem:[#allocation2 + $0x189] sm:$0xff] }
  0xab   : > { %3732 = vmatmul.mubr.msk.bf16.gmra.mxu1 %vm243_vm1, %v4290_v35  ;;  %v4428_v57 = vpack.c.bf16 %v1507_v43, %v1506_v39 }
  0xac   : > { %3735 = vmatprep.mubr.msk.bf16.mxu1 %vm243_vm1, %v4304_v47 }
  0xb1   : > { %3770 = vmatmul.mubr.msk.bf16.gmra.mxu0 %vm243_vm1, %v4150_v52  ;;  %v1213_v52 = vld [vmem:[#allocation2 + $0x188] sm:$0xff] }
  0xb2   : > { %3773 = vmatprep.mubr.msk.bf16.mxu0 %vm243_vm1, %v4167_v0  ;;  %v1229_v60 = vpack.c.bf16 %v1213_v52, %v1212_v48  ;;  %v2752_v0 = vsel %vm511_vm0, %v3440_v5, 0 }
  0xb3   : > { %3736 = vmatmul.mubr.msk.bf16.gmra.mxu1 %vm243_vm1, %v4306_v56 }
  0xb4   : > { %3739 = vmatprep.mubr.msk.bf16.mxu1 %vm243_vm1, %v4320_v15 }
  0xb9   : > { %3774 = vmatmul.mubr.msk.bf16.gmra.mxu0 %vm243_vm1, %v4173_v2  ;;  %v2458_v2 = vsel %vm511_vm0, %v3423_v34, 0  ;;  %v2364_v34 = vld [vmem:[#allocation2 + $0x69] sm:$0xff] }
  0xba   : > { %3777 = vmatprep.mubr.msk.bf16.mxu0 %vm243_vm1, %v4192_v14  ;;  %v2393_v48 = vpack.c.bf16 %v2364_v34, %v2363_v6 }
  0xbb   : > { %3740 = vmatmul.mubr.msk.bf16.gmra.mxu1 %vm243_vm1, %v4322_v20 }
  0xbc   : > { %3743 = vmatprep.mubr.msk.bf16.mxu1 %vm243_vm1, %v4336_v44 }
  0xc1   : > { %3778 = vmatmul.mubr.msk.bf16.gmra.mxu0 %vm243_vm1, %v4194_v16 }
  0xc2   : > { %3781 = vmatprep.mubr.msk.bf16.mxu0 %vm243_vm1, %v4206_v27 }
  0xc3   : > { %3744 = vmatmul.mubr.msk.bf16.gmra.mxu1 %vm243_vm1, %v4338_v49 }
  0xc4   : > { %3747 = vmatprep.mubr.msk.bf16.mxu1 %vm243_vm1, %v4350_v62 }
  0xc9   : > { %3782 = vmatmul.mubr.msk.bf16.gmra.mxu0 %vm243_vm1, %v4428_v57 }
  0xca   : > { %3821 = vmatprep.mubr.msk.bf16.mxu0 %vm243_vm1, %v4222_v45 }
  0xcb   : > { %3748 = vmatmul.mubr.msk.bf16.gmra.mxu1 %vm243_vm1, %v1229_v60 }
  0xcc   : > { %3787 = vmatprep.mubr.msk.bf16.mxu1 %vm243_vm1, %v4214_v37 }
  0xd1   : > { %3822 = vmatmul.mubr.msk.bf16.vlgmr.msra.gmra.mxu0 %vm243_vm1, %v4256_v1 }
  0xd2   : > { %3888 = vmatpush3.bf16.msra.mxu0 %v2752_v0  ;;  %3825 = vmatprep.mubr.msk.bf16.mxu0 %vm243_vm1, %v4258_v3 }
  0xd3   : > { %3788 = vmatmul.mubr.msk.bf16.vlgmr.msra.gmra.mxu1 %vm243_vm1, %v4216_v41 }
  0xd4   : > { %3854 = vmatpush3.bf16.msra.mxu1 %v2458_v2  ;;  %3791 = vmatprep.mubr.msk.bf16.mxu1 %vm243_vm1, %v4250_v59 }
  0xd9   : > { %3826 = vmatmul.mubr.msk.bf16.gmra.mxu0 %vm243_vm1, %v4272_v18 }
  0xda   : > { %3829 = vmatprep.mubr.msk.bf16.mxu0 %vm243_vm1, %v4274_v19 }
  0xdb   : > { %3792 = vmatmul.mubr.msk.bf16.gmra.mxu1 %vm243_vm1, %v4254_v63 }
  0xdc   : > { %3795 = vmatprep.mubr.msk.bf16.mxu1 %vm243_vm1, %v4268_v10 }
  0xe1   : > { %3830 = vmatmul.mubr.msk.bf16.gmra.mxu0 %vm243_vm1, %v4288_v32 }
  0xe2   : > { %3833 = vmatprep.mubr.msk.bf16.mxu0 %vm243_vm1, %v4290_v35 }
  0xe3   : > { %3796 = vmatmul.mubr.msk.bf16.gmra.mxu1 %vm243_vm1, %v4270_v17 }
  0xe4   : > { %3799 = vmatprep.mubr.msk.bf16.mxu1 %vm243_vm1, %v4284_v28 }
  0xe9   : > { %3834 = vmatmul.mubr.msk.bf16.gmra.mxu0 %vm243_vm1, %v4304_v47  ;;  %v2095_v47 = vld [vmem:[#allocation2 + $0x198] sm:$0xff] }
  0xea   : > { %3837 = vmatprep.mubr.msk.bf16.mxu0 %vm243_vm1, %v4306_v56  ;;  %v2096_v56 = vld [vmem:[#allocation2 + $0x1a0] sm:$0xff] }
  0xeb   : > { %3800 = vmatmul.mubr.msk.bf16.gmra.mxu1 %vm243_vm1, %v4286_v31  ;;  %v2112_v24 = vpack.c.bf16 %v2096_v56, %v2095_v47  ;;  %v2365_v56 = vld [vmem:[#allocation2 + $0x79] sm:$0xff] }
  0xec   : > { %3803 = vmatprep.mubr.msk.bf16.mxu1 %vm243_vm1, %v4300_v51 }
  0xf1   : > { %v4471_v11 = vpop.f32.mrf.mxu0  ;;  %3838 = vmatmul.mubr.msk.bf16.gmra.mxu0 %vm243_vm1, %v4320_v15  ;;  %v1800_v15 = vld [vmem:[#allocation2 + $0x182] sm:$0xff] }
  0xf2   : > { %3841 = vmatprep.mubr.msk.bf16.mxu0 %vm243_vm1, %v4322_v20  ;;  %v1801_v20 = vld [vmem:[#allocation2 + $0x18a] sm:$0xff] }
  0xf3   : > { %v4477_v12 = vpop.f32.mrf.mxu1  ;;  %3804 = vmatmul.mubr.msk.bf16.gmra.mxu1 %vm243_vm1, %v4302_v55  ;;  %v4481_v14 = vpop.f32.mrf.mxu0  ;;  %v4540_v38 = vpack.c.bf16 %v1801_v20, %v1800_v15  ;;  %v2366_v15 = vld [vmem:[#allocation2 + $0x81] sm:$0xff] }
  0xf4   : > { %3807 = vmatprep.mubr.msk.bf16.mxu1 %vm243_vm1, %v4316_v7 }
  0xf5   : > { %v4485_v16 = vpop.f32.mrf.mxu1  ;;  %v4487_v23 = vpop.f32.mrf.mxu0 }
  0xf7   : > { %v4489_v27 = vpop.f32.mrf.mxu1  ;;  %v4491_v37 = vpop.f32.mrf.mxu0 }
  0xf9   : > { %v4493_v42 = vpop.f32.mrf.mxu1  ;;  %v4495_v45 = vpop.f32.mrf.mxu0  ;;  %3842 = vmatmul.mubr.msk.bf16.gmra.mxu0 %vm243_vm1, %v4336_v44  ;;  %v2391_v44 = vpack.c.bf16 %v2360_v26, %v2359_v25  ;;  %v2367_v25 = vld [vmem:[#allocation2 + $0x91] sm:$0xff]  ;;  %v2368_v26 = vld [vmem:[#allocation2 + $0x99] sm:$0xff] }
  0xfa   : > { %3845 = vmatprep.mubr.msk.bf16.mxu0 %vm243_vm1, %v4338_v49  ;;  %v2395_v34 = vpack.c.bf16 %v2368_v26, %v2367_v25  ;;  %v2372_v25 = vld [vmem:[#allocation2 + $0xc9] sm:$0xff] }
  0xfb   : > { %v4501_v46 = vpop.f32.mrf.mxu1  ;;  %3808 = vmatmul.mubr.msk.bf16.gmra.mxu1 %vm243_vm1, %v4318_v13  ;;  %v4505_v54 = vpop.f32.mrf.mxu0 }
  0xfc   : > { %3811 = vmatprep.mubr.msk.bf16.mxu1 %vm243_vm1, %v4332_v30 }
  0xfd   : > { %v4509_v1 = vpop.f32.mrf.mxu1  ;;  %v4511_v3 = vpop.f32.mrf.mxu0 }
  0xff   : > { %v4513_v18 = vpop.f32.mrf.mxu1  ;;  %v4515_v19 = vpop.f32.mrf.mxu0 }
 0x101   : > { %v4517_v32 = vpop.f32.mrf.mxu1  ;;  %v4519_v35 = vpop.f32.mrf.mxu0  ;;  %3846 = vmatmul.mubr.msk.bf16.gmra.mxu0 %vm243_vm1, %v4350_v62  ;;  %v2362_v62 = vld [vmem:[#allocation2 + $0x51] sm:$0xff] }
 0x102   : > { %3849 = vmatprep.mubr.msk.bf16.mxu0 %vm243_vm1, %v1229_v60  ;;  %v2392_v43 = vpack.c.bf16 %v2362_v62, %v2361_v58  ;;  %v2394_v62 = vpack.c.bf16 %v2366_v15, %v2365_v56  ;;  %v2370_v56 = vld [vmem:[#allocation2 + $0xb1] sm:$0xff] }
 0x103   : > { %v4524_v8 = vpop.f32.mrf.mxu1  ;;  %3812 = vmatmul.mubr.msk.bf16.gmra.mxu1 %vm243_vm1, %v4334_v40  ;;  %v4528_v9 = vpop.f32.mrf.mxu0 }
 0x104   : > { %3815 = vmatprep.mubr.msk.bf16.mxu1 %vm243_vm1, %v4348_v61 }
 0x105   : > { %v4532_v21 = vpop.f32.mrf.mxu1  ;;  %v4534_v22 = vpop.f32.mrf.mxu0 }
 0x107   : > { %v4536_v29 = vpop.f32.mrf.mxu1  ;;  %v4538_v36 = vpop.f32.mrf.mxu0 }
 0x109   : > { %v4542_v49 = vpop.f32.mrf.mxu1  ;;  %v4544_v50 = vpop.f32.mrf.mxu0  ;;  %3850 = vmatmul.mubr.msk.bf16.gmra.mxu0 %vm243_vm1, %v2112_v24 }
 0x10a   : > { %3889 = vmatprep.mubr.msk.bf16.mxu0 %vm243_vm1, %v4216_v41 }
 0x10b   : > { %v4549_v33 = vpop.f32.mrf.mxu1  ;;  %3816 = vmatmul.mubr.msk.bf16.gmra.mxu1 %vm243_vm1, %v4540_v38  ;;  %v4553_v53 = vpop.f32.mrf.mxu0 }
 0x10c   : > { %3855 = vmatprep.mubr.msk.bf16.mxu1 %vm243_vm1, %v2391_v44 }
 0x10d   : > { %v4556_v4 = vpop.f32.mrf.mxu1  ;;  %v4558_v5 = vpop.f32.mrf.mxu0 }
 0x10f   : > { %v4560_v39 = vpop.f32.mrf.mxu1  ;;  %v4562_v41 = vpop.f32.mrf.mxu0 }
 0x111   : > { %v4564_v52 = vpop.f32.mrf.mxu1  ;;  %v3687_v60 = vpop.f32.mrf.mxu0  ;;  %3890 = vmatmul.mubr.msk.bf16.vlgmr.msra.gmra.mxu0 %vm243_vm1, %v4250_v59 }
 0x112   : > { %3893 = vmatprep.mubr.msk.bf16.mxu0 %vm243_vm1, %v4254_v63 }
 0x113   : > { %v3653_v0 = vpop.f32.mrf.mxu1  ;;  %3856 = vmatmul.mubr.msk.bf16.vlgmr.msra.gmra.mxu1 %vm243_vm1, %v2392_v43  ;;  %v1023_v2 = vpop.f32.mrf.mxu0 }
 0x114   : > { %v770_v47 = vadd.f32 %v3653_v0, %v4471_v11  ;;  %3859 = vmatprep.mubr.msk.bf16.mxu1 %vm243_vm1, %v2393_v48 }
 0x115   : > { %v761_v20 = vpop.f32.mrf.mxu1  ;;  %v3688_v24 = vpop.f32.mrf.mxu0 }
 0x116   : > { %v762_v44 = vadd.f32 %v761_v20, %v4481_v14  ;;  %v4574_v59 = vadd.f32 %v3687_v60, %v770_v47 }
 0x117   : > { %v3654_v58 = vpop.f32.mrf.mxu1  ;;  %v1026_v63 = vpop.f32.mrf.mxu0 }
 0x118   : > { %v773_v6 = vadd.f32 %v3654_v58, %v4487_v23  ;;  %v4577_v43 = vadd.f32 %v1023_v2, %v762_v44  ;;  %v2369_v2 = vld [vmem:[#allocation2 + $0xa9] sm:$0xff] }
 0x119   : > { %v764_v11 = vpop.f32.mrf.mxu1  ;;  %v3691_v48 = vpop.f32.mrf.mxu0  ;;  %3894 = vmatmul.mubr.msk.bf16.gmra.mxu0 %vm243_vm1, %v4268_v10  ;;  %v2396_v58 = vpack.c.bf16 %v2370_v56, %v2369_v2  ;;  %v2376_v56 = vld [vmem:[#allocation2 + $0xf9] sm:$0xff] }
 0x11a   : > { %v765_v0 = vadd.f32 %v764_v11, %v4491_v37  ;;  %3897 = vmatprep.mubr.msk.bf16.mxu0 %vm243_vm1, %v4270_v17  ;;  %v4584_v14 = vadd.f32 %v3688_v24, %v773_v6  ;;  %v2371_v37 = vld [vmem:[#allocation2 + $0xc1] sm:$0xff] }
 0x11b   : > { %v3657_v60 = vpop.f32.mrf.mxu1  ;;  %3860 = vmatmul.mubr.msk.bf16.gmra.mxu1 %vm243_vm1, %v2394_v62  ;;  %v1039_v47 = vpop.f32.mrf.mxu0 }
 0x11c   : > { %v786_v23 = vadd.f32 %v3657_v60, %v4495_v45  ;;  %3863 = vmatprep.mubr.msk.bf16.mxu1 %vm243_vm1, %v2395_v34  ;;  %v4589_v15 = vadd.f32 %v1026_v63, %v765_v0  ;;  %v2397_v45 = vpack.c.bf16 %v2372_v25, %v2371_v37  ;;  %v2373_v60 = vld [vmem:[#allocation2 + $0xd9] sm:$0xff] }
 0x11d   : > { %v777_v10 = vpop.f32.mrf.mxu1  ;;  %v3692_v20 = vpop.f32.mrf.mxu0 }
 0x11e   : > { %v778_v17 = vadd.f32 %v777_v10, %v4505_v54  ;;  %v4592_v24 = vadd.f32 %v3691_v48, %v786_v23 }
 0x11f   : > { %v3658_v26 = vpop.f32.mrf.mxu1  ;;  %v1042_v44 = vpop.f32.mrf.mxu0 }
 0x120   : > { %v789_v62 = vadd.f32 %v3658_v26, %v4511_v3  ;;  %v4595_v6 = vadd.f32 %v1039_v47, %v778_v17  ;;  %v2374_v47 = vld [vmem:[#allocation2 + $0xe1] sm:$0xff] }
 0x121   : > { %v780_v34 = vpop.f32.mrf.mxu1  ;;  %v3695_v11 = vpop.f32.mrf.mxu0  ;;  %3898 = vmatmul.mubr.msk.bf16.gmra.mxu0 %vm243_vm1, %v4284_v28  ;;  %v2398_v25 = vpack.c.bf16 %v2374_v47, %v2373_v60 }
 0x122   : > { %v781_v63 = vadd.f32 %v780_v34, %v4515_v19  ;;  %3901 = vmatprep.mubr.msk.bf16.mxu0 %vm243_vm1, %v4286_v31  ;;  %v4602_v54 = vadd.f32 %v3692_v20, %v789_v62  ;;  %v2375_v19 = vld [vmem:[#allocation2 + $0xf1] sm:$0xff] }
 0x123   : > { %v3661_v48 = vpop.f32.mrf.mxu1  ;;  %3864 = vmatmul.mubr.msk.bf16.gmra.mxu1 %vm243_vm1, %v2396_v58  ;;  %v1055_v0 = vpop.f32.mrf.mxu0 }
 0x124   : > { %v802_v3 = vadd.f32 %v3661_v48, %v4519_v35  ;;  %3867 = vmatprep.mubr.msk.bf16.mxu1 %vm243_vm1, %v2397_v45  ;;  %v4607_v23 = vadd.f32 %v1042_v44, %v781_v63  ;;  %v2399_v35 = vpack.c.bf16 %v2376_v56, %v2375_v19  ;;  %v2378_v63 = vld [vmem:[#allocation2 + $0x111] sm:$0xff] }
 0x125   : > { %v793_v28 = vpop.f32.mrf.mxu1  ;;  %v3696_v2 = vpop.f32.mrf.mxu0 }
 0x126   : > { %v794_v31 = vadd.f32 %v793_v28, %v4528_v9  ;;  %v4610_v10 = vadd.f32 %v3695_v11, %v802_v3  ;;  %v2377_v11 = vld [vmem:[#allocation2 + $0x109] sm:$0xff] }
 0x127   : > { %v3662_v20 = vpop.f32.mrf.mxu1  ;;  %v1058_v37 = vpop.f32.mrf.mxu0  ;;  %v2380_v3 = vld [vmem:[#allocation2 + $0x129] sm:$0xff] }
 0x128   : > { %v805_v17 = vadd.f32 %v3662_v20, %v4534_v22  ;;  %v4613_v26 = vadd.f32 %v1055_v0, %v794_v31 }
 0x129   : > { %v796_v58 = vpop.f32.mrf.mxu1  ;;  %v3699_v62 = vpop.f32.mrf.mxu0  ;;  %3902 = vmatmul.mubr.msk.bf16.gmra.mxu0 %vm243_vm1, %v4300_v51 }
 0x12a   : > { %v797_v44 = vadd.f32 %v796_v58, %v4538_v36  ;;  %3905 = vmatprep.mubr.msk.bf16.mxu0 %vm243_vm1, %v4302_v55  ;;  %v4620_v9 = vadd.f32 %v3696_v2, %v805_v17  ;;  %v2379_v36 = vld [vmem:[#allocation2 + $0x121] sm:$0xff]  ;;  %v2400_v2 = vpack.c.bf16 %v2378_v63, %v2377_v11 }
 0x12b   : > { %v3665_v45 = vpop.f32.mrf.mxu1  ;;  %3868 = vmatmul.mubr.msk.bf16.gmra.mxu1 %vm243_vm1, %v2398_v25  ;;  %v1071_v34 = vpop.f32.mrf.mxu0  ;;  %v2382_v58 = vld [vmem:[#allocation2 + $0x141] sm:$0xff] }
 0x12c   : > { %v818_v22 = vadd.f32 %v3665_v45, %v4544_v50  ;;  %3871 = vmatprep.mubr.msk.bf16.mxu1 %vm243_vm1, %v2399_v35  ;;  %v4625_v48 = vadd.f32 %v1058_v37, %v797_v44  ;;  %v2401_v50 = vpack.c.bf16 %v2380_v3, %v2379_v36  ;;  %v2381_v35 = vld [vmem:[#allocation2 + $0x139] sm:$0xff] }
 0x12d   : > { %v809_v51 = vpop.f32.mrf.mxu1  ;;  %v3700_v0 = vpop.f32.mrf.mxu0  ;;  %v2384_v45 = vld [vmem:[#allocation2 + $0x159] sm:$0xff]  ;;  %v2402_v63 = vpack.c.bf16 %v2382_v58, %v2381_v35 }
 0x12e   : > { %v810_v55 = vadd.f32 %v809_v51, %v4553_v53  ;;  %v4628_v60 = vadd.f32 %v3699_v62, %v818_v22 }
 0x12f   : > { %v3666_v47 = vpop.f32.mrf.mxu1  ;;  %v1074_v28 = vpop.f32.mrf.mxu0 }
 0x130   : > { %v821_v19 = vadd.f32 %v3666_v47, %v4558_v5  ;;  %v4631_v56 = vadd.f32 %v1071_v34, %v810_v55 }
 0x131   : > { %v812_v31 = vpop.f32.mrf.mxu1  ;;  %v3703_v20 = vpop.f32.mrf.mxu0  ;;  %3906 = vmatmul.mubr.msk.bf16.gmra.mxu0 %vm243_vm1, %v4316_v7 }
 0x132   : > { %v813_v37 = vadd.f32 %v812_v31, %v4562_v41  ;;  %3909 = vmatprep.mubr.msk.bf16.mxu0 %vm243_vm1, %v4318_v13  ;;  %v4638_v53 = vadd.f32 %v3700_v0, %v821_v19  ;;  %v2383_v41 = vld [vmem:[#allocation2 + $0x151] sm:$0xff] }
 0x133   : > { %v3669_v25 = vpop.f32.mrf.mxu1  ;;  %3872 = vmatmul.mubr.msk.bf16.gmra.mxu1 %vm243_vm1, %v2400_v2  ;;  %v1087_v17 = vpop.f32.mrf.mxu0  ;;  %v2385_v2 = vld [vmem:[#allocation2 + $0x169] sm:$0xff]  ;;  %v2386_v19 = vld [vmem:[#allocation2 + $0x171] sm:$0xff] }
 0x134   : > { %v834_v5 = vadd.f32 %v3669_v25, %v4477_v12  ;;  %3875 = vmatprep.mubr.msk.bf16.mxu1 %vm243_vm1, %v2401_v50  ;;  %v4643_v62 = vadd.f32 %v1074_v28, %v813_v37  ;;  %v2403_v12 = vpack.c.bf16 %v2384_v45, %v2383_v41  ;;  %v2404_v25 = vpack.c.bf16 %v2386_v19, %v2385_v2 }
 0x135   : > { %v825_v7 = vpop.f32.mrf.mxu1  ;;  %v3704_v44 = vpop.f32.mrf.mxu0 }
 0x136   : > { %v826_v13 = vadd.f32 %v825_v7, %v4485_v16  ;;  %v4646_v34 = vadd.f32 %v3703_v20, %v834_v5  ;;  %v2684_v7 = vld [vmem:[#allocation2 + $0x1a2] sm:$0xff] }
 0x137   : > { %v3670_v22 = vpop.f32.mrf.mxu1  ;;  %v1090_v11 = vpop.f32.mrf.mxu0 }
 0x138   : > { %v837_v51 = vadd.f32 %v3670_v22, %v4489_v27  ;;  %v4649_v0 = vadd.f32 %v1087_v17, %v826_v13  ;;  %v2389_v13 = vld [vmem:[#allocation2 + $0x199] sm:$0xff] }
 0x139   : > { %v828_v36 = vpop.f32.mrf.mxu1  ;;  %v3707_v3 = vpop.f32.mrf.mxu0  ;;  %3910 = vmatmul.mubr.msk.bf16.gmra.mxu0 %vm243_vm1, %v4332_v30 }
 0x13a   : > { %v829_v55 = vadd.f32 %v828_v36, %v4493_v42  ;;  %3913 = vmatprep.mubr.msk.bf16.mxu0 %vm243_vm1, %v4334_v40  ;;  %v4656_v16 = vadd.f32 %v3704_v44, %v837_v51 }
 0x13b   : > { %v3673_v47 = vpop.f32.mrf.mxu1  ;;  %3876 = vmatmul.mubr.msk.bf16.gmra.mxu1 %vm243_vm1, %v2402_v63  ;;  %v1103_v28 = vpop.f32.mrf.mxu0 }
 0x13c   : > { %v850_v27 = vadd.f32 %v3673_v47, %v4501_v46  ;;  %3879 = vmatprep.mubr.msk.bf16.mxu1 %vm243_vm1, %v2403_v12  ;;  %v4661_v50 = vadd.f32 %v1090_v11, %v829_v55 }
 0x13d   : > { %v841_v30 = vpop.f32.mrf.mxu1  ;;  %v3708_v31 = vpop.f32.mrf.mxu0 }
 0x13e   : > { %v842_v42 = vadd.f32 %v841_v30, %v4509_v1  ;;  %v4664_v20 = vadd.f32 %v3707_v3, %v850_v27  ;;  %v2683_v1 = vld [vmem:[#allocation2 + $0x19a] sm:$0xff] }
 0x13f   : > { %v3674_v40 = vpop.f32.mrf.mxu1  ;;  %v1106_v37 = vpop.f32.mrf.mxu0 }
 0x140   : > { %v853_v17 = vadd.f32 %v3674_v40, %v4513_v18  ;;  %v4667_v5 = vadd.f32 %v1103_v28, %v842_v42 }
 0x141   : > { %v844_v46 = vpop.f32.mrf.mxu1  ;;  %v3711_v35 = vpop.f32.mrf.mxu0  ;;  %3914 = vmatmul.mubr.msk.bf16.gmra.mxu0 %vm243_vm1, %v4348_v61  ;;  %v2390_v61 = vld [vmem:[#allocation2 + $0x1a1] sm:$0xff] }
 0x142   : > { %v845_v58 = vadd.f32 %v844_v46, %v4517_v32  ;;  %3917 = vmatprep.mubr.msk.bf16.mxu0 %vm243_vm1, %v4540_v38  ;;  %v4674_v44 = vadd.f32 %v3708_v31, %v853_v17  ;;  %v2700_v38 = vpack.c.bf16 %v2684_v7, %v2683_v1  ;;  %v2406_v3 = vpack.c.bf16 %v2390_v61, %v2389_v13 }
 0x143   : > { %v3677_v41 = vpop.f32.mrf.mxu1  ;;  %3880 = vmatmul.mubr.msk.bf16.gmra.mxu1 %vm243_vm1, %v2404_v25  ;;  %v1119_v18 = vpop.f32.mrf.mxu0 }
 0x144   : > { %v866_v45 = vadd.f32 %v3677_v41, %v4524_v8  ;;  %3883 = vmatprep.mubr.msk.bf16.mxu1 %vm243_vm1, %v4428_v57  ;;  %v4680_v22 = vadd.f32 %v1106_v37, %v845_v58 }
 0x145   : > { %v857_v32 = vpop.f32.mrf.mxu1  ;;  %v3712_v11 = vpop.f32.mrf.mxu0 }
 0x146   : > { %v858_v63 = vadd.f32 %v857_v32, %v4532_v21  ;;  %v4683_v51 = vadd.f32 %v3711_v35, %v866_v45 }
 0x147   : > { %v3678_v12 = vpop.f32.mrf.mxu1  ;;  %v1122_v36 = vpop.f32.mrf.mxu0 }
 0x148   : > { %v869_v55 = vadd.f32 %v3678_v12, %v4536_v29  ;;  %v4686_v8 = vadd.f32 %v1119_v18, %v858_v63 }
 0x149   : > { %v860_v47 = vpop.f32.mrf.mxu1  ;;  %v3715_v57 = vpop.f32.mrf.mxu0  ;;  %3918 = vmatmul.mubr.msk.bf16.gmra.mxu0 %vm243_vm1, %v2700_v38 }
 0x14a   : > { %v861_v28 = vadd.f32 %v860_v47, %v4542_v49  ;;  %v4690_v27 = vadd.f32 %v3712_v11, %v869_v55 }
 0x14b   : > { %v3681_v2 = vpop.f32.mrf.mxu1  ;;  %3884 = vmatmul.mubr.msk.bf16.gmra.mxu1 %vm243_vm1, %v2406_v3  ;;  %v1135_v21 = vpop.f32.mrf.mxu0 }
 0x14c   : > { %v882_v19 = vadd.f32 %v3681_v2, %v4549_v33  ;;  %v4694_v30 = vadd.f32 %v1122_v36, %v861_v28 }
 0x14d   : > { %v873_v31 = vpop.f32.mrf.mxu1  ;;  %v3716_v29 = vpop.f32.mrf.mxu0 }
 0x14e   : > { %v874_v42 = vadd.f32 %v873_v31, %v4556_v4  ;;  %v4697_v40 = vadd.f32 %v3715_v57, %v882_v19 }
 0x14f   : > { %v3682_v37 = vpop.f32.mrf.mxu1  ;;  %v1138_v25 = vpop.f32.mrf.mxu0 }
 0x150   : > { %v885_v49 = vadd.f32 %v3682_v37, %v4560_v39  ;;  %v4700_v17 = vadd.f32 %v1135_v21, %v874_v42 }
 0x151   : > { %v876_v46 = vpop.f32.mrf.mxu1  ;;  %v3755_v35 = vpop.f32.mrf.mxu0 }
 0x152   : > { %v877_v58 = vadd.f32 %v876_v46, %v4564_v52  ;;  %v4703_v1 = vadd.f32 %v3716_v29, %v885_v49 }
 0x153   : > { %v3721_v33 = vpop.f32.mrf.mxu1  ;;  %v1611_v7 = vpop.f32.mrf.mxu0 }
 0x154   : > { %v1446_v41 = vadd.f32 %v3721_v33, %v4574_v59  ;;  %v4706_v18 = vadd.f32 %v1138_v25, %v877_v58 }
 0x155   : > { %v1317_v4 = vpop.f32.mrf.mxu1  ;;  %v3756_v45 = vpop.f32.mrf.mxu0 }
 0x156   : > { %v1444_v13 = vadd.f32 %v1317_v4, %v4577_v43  ;;  %v4709_v61 = vadd.f32 %v3755_v35, %v1446_v41 }
 0x157   : > { %v3722_v39 = vpop.f32.mrf.mxu1  ;;  %v1614_v32 = vpop.f32.mrf.mxu0 }
 0x158   : > { %v1447_v11 = vadd.f32 %v3722_v39, %v4584_v14  ;;  %v4712_v38 = vadd.f32 %v1611_v7, %v1444_v13 }
 0x159   : > { %v1320_v52 = vpop.f32.mrf.mxu1  ;;  %v3759_v63 = vpop.f32.mrf.mxu0 }
 0x15a   : > { %v1445_v12 = vadd.f32 %v1320_v52, %v4589_v15  ;;  %v4715_v36 = vadd.f32 %v3756_v45, %v1447_v11 }
 0x15b   : > { %v3725_v59 = vpop.f32.mrf.mxu1  ;;  %v1627_v3 = vpop.f32.mrf.mxu0 }
 0x15c   : > { %v1450_v55 = vadd.f32 %v3725_v59, %v4592_v24  ;;  %v4718_v47 = vadd.f32 %v1614_v32, %v1445_v12 }
 0x15d   : > { %v1333_v43 = vpop.f32.mrf.mxu1  ;;  %v3760_v57 = vpop.f32.mrf.mxu0 }
 0x15e   : > { %v1448_v28 = vadd.f32 %v1333_v43, %v4595_v6  ;;  %v4721_v2 = vadd.f32 %v3759_v63, %v1450_v55 }
 0x15f   : > { %v3726_v14 = vpop.f32.mrf.mxu1  ;;  %v1630_v21 = vpop.f32.mrf.mxu0 }
 0x160   : > { %v1451_v19 = vadd.f32 %v3726_v14, %v4602_v54  ;;  %v4724_v31 = vadd.f32 %v1627_v3, %v1448_v28 }
 0x161   : > { %v1336_v15 = vpop.f32.mrf.mxu1  ;;  %v3763_v29 = vpop.f32.mrf.mxu0 }
 0x162   : > { %v1449_v42 = vadd.f32 %v1336_v15, %v4607_v23  ;;  %v4727_v37 = vadd.f32 %v3760_v57, %v1451_v19 }
 0x163   : > { %v3729_v24 = vpop.f32.mrf.mxu1  ;;  %v1643_v25 = vpop.f32.mrf.mxu0 }
 0x164   : > { %v1454_v49 = vadd.f32 %v3729_v24, %v4610_v10  ;;  %v4730_v46 = vadd.f32 %v1630_v21, %v1449_v42 }
 0x165   : > { %v1349_v6 = vpop.f32.mrf.mxu1  ;;  %v3764_v35 = vpop.f32.mrf.mxu0 }
 0x166   : > { %v1452_v58 = vadd.f32 %v1349_v6, %v4613_v26  ;;  %v4733_v33 = vadd.f32 %v3763_v29, %v1454_v49 }
 0x167   : > { %v3730_v54 = vpop.f32.mrf.mxu1  ;;  %v1646_v7 = vpop.f32.mrf.mxu0 }
 0x168   : > { %v1455_v41 = vadd.f32 %v3730_v54, %v4620_v9  ;;  %v4736_v4 = vadd.f32 %v1643_v25, %v1452_v58 }
 0x169   : > { %v1352_v23 = vpop.f32.mrf.mxu1  ;;  %v3767_v45 = vpop.f32.mrf.mxu0 }
 0x16a   : > { %v1453_v13 = vadd.f32 %v1352_v23, %v4625_v48  ;;  %v4739_v39 = vadd.f32 %v3764_v35, %v1455_v41 }
 0x16b   : > { %v3733_v10 = vpop.f32.mrf.mxu1  ;;  %v1659_v32 = vpop.f32.mrf.mxu0 }
 0x16c   : > { %v1458_v11 = vadd.f32 %v3733_v10, %v4628_v60  ;;  %v4742_v52 = vadd.f32 %v1646_v7, %v1453_v13 }
 0x16d   : > { %v1365_v26 = vpop.f32.mrf.mxu1  ;;  %v3768_v63 = vpop.f32.mrf.mxu0 }
 0x16e   : > { %v1456_v12 = vadd.f32 %v1365_v26, %v4631_v56  ;;  %v4745_v59 = vadd.f32 %v3767_v45, %v1458_v11 }
 0x16f   : > { %v3734_v9 = vpop.f32.mrf.mxu1  ;;  %v1662_v3 = vpop.f32.mrf.mxu0 }
 0x170   : > { %v1459_v55 = vadd.f32 %v3734_v9, %v4638_v53  ;;  %v4748_v43 = vadd.f32 %v1659_v32, %v1456_v12 }
 0x171   : > { %v1368_v48 = vpop.f32.mrf.mxu1  ;;  %v3771_v57 = vpop.f32.mrf.mxu0 }
 0x172   : > { %v1457_v28 = vadd.f32 %v1368_v48, %v4643_v62  ;;  %v4751_v14 = vadd.f32 %v3768_v63, %v1459_v55 }
 0x173   : > { %v3737_v60 = vpop.f32.mrf.mxu1  ;;  %v1675_v21 = vpop.f32.mrf.mxu0 }
 0x174   : > { %v1462_v19 = vadd.f32 %v3737_v60, %v4646_v34  ;;  %v4754_v15 = vadd.f32 %v1662_v3, %v1457_v28 }
 0x175   : > { %v1381_v56 = vpop.f32.mrf.mxu1  ;;  %v3772_v29 = vpop.f32.mrf.mxu0 }
 0x176   : > { %v1460_v42 = vadd.f32 %v1381_v56, %v4649_v0  ;;  %v4757_v24 = vadd.f32 %v3771_v57, %v1462_v19 }
 0x177   : > { %v3738_v53 = vpop.f32.mrf.mxu1  ;;  %v1678_v25 = vpop.f32.mrf.mxu0 }
 0x178   : > { %v1463_v49 = vadd.f32 %v3738_v53, %v4656_v16  ;;  %v4760_v6 = vadd.f32 %v1675_v21, %v1460_v42 }
 0x179   : > { %v1384_v62 = vpop.f32.mrf.mxu1  ;;  %v3775_v35 = vpop.f32.mrf.mxu0 }
 0x17a   : > { %v1461_v58 = vadd.f32 %v1384_v62, %v4661_v50  ;;  %v4763_v54 = vadd.f32 %v3772_v29, %v1463_v49 }
 0x17b   : > { %v3741_v34 = vpop.f32.mrf.mxu1  ;;  %v1691_v7 = vpop.f32.mrf.mxu0 }
 0x17c   : > { %v1466_v41 = vadd.f32 %v3741_v34, %v4664_v20  ;;  %v4766_v23 = vadd.f32 %v1678_v25, %v1461_v58 }
 0x17d   : > { %v1397_v0 = vpop.f32.mrf.mxu1  ;;  %v3776_v45 = vpop.f32.mrf.mxu0 }
 0x17e   : > { %5237 = vst [vmem:[#allocation3_spill] sm:$0xff] %v4766_v23  ;;  %v1464_v13 = vadd.f32 %v1397_v0, %v4667_v5  ;;  %v4769_v10 = vadd.f32 %v3775_v35, %v1466_v41 }
 0x17f   : > { %v3742_v16 = vpop.f32.mrf.mxu1  ;;  %v1694_v32 = vpop.f32.mrf.mxu0 }
 0x180   : > { %5238 = vst [vmem:[#allocation4_spill] sm:$0xff] %v4769_v10  ;;  %v1467_v11 = vadd.f32 %v3742_v16, %v4674_v44  ;;  %v4772_v26 = vadd.f32 %v1691_v7, %v1464_v13 }
 0x181   : > { %v1400_v50 = vpop.f32.mrf.mxu1  ;;  %v3779_v63 = vpop.f32.mrf.mxu0 }
 0x182   : > { %5239 = vst [vmem:[#allocation5_spill] sm:$0xff] %v4772_v26  ;;  %v1465_v12 = vadd.f32 %v1400_v50, %v4680_v22  ;;  %v4775_v9 = vadd.f32 %v3776_v45, %v1467_v11 }
 0x183   : > { %v3745_v20 = vpop.f32.mrf.mxu1  ;;  %v1707_v3 = vpop.f32.mrf.mxu0 }
 0x184   : > { %5240 = vst [vmem:[#allocation6_spill] sm:$0xff] %v4775_v9  ;;  %v1470_v55 = vadd.f32 %v3745_v20, %v4683_v51  ;;  %v4778_v48 = vadd.f32 %v1694_v32, %v1465_v12 }
 0x185   : > { %v1413_v5 = vpop.f32.mrf.mxu1  ;;  %v3780_v57 = vpop.f32.mrf.mxu0 }
 0x186   : > { %5241 = vst [vmem:[#allocation7_spill] sm:$0xff] %v4778_v48  ;;  %v1468_v28 = vadd.f32 %v1413_v5, %v4686_v8  ;;  %v4781_v60 = vadd.f32 %v3779_v63, %v1470_v55 }
 0x187   : > { %v3746_v44 = vpop.f32.mrf.mxu1  ;;  %v1710_v21 = vpop.f32.mrf.mxu0 }
 0x188   : > { %5242 = vst [vmem:[#allocation8_spill] sm:$0xff] %v4781_v60  ;;  %v1471_v19 = vadd.f32 %v3746_v44, %v4690_v27  ;;  %v4784_v56 = vadd.f32 %v1707_v3, %v1468_v28 }
 0x189   : > { %v1416_v22 = vpop.f32.mrf.mxu1  ;;  %v3783_v29 = vpop.f32.mrf.mxu0 }
 0x18a   : > { %5243 = vst [vmem:[#allocation9_spill] sm:$0xff] %v4784_v56  ;;  %v1469_v42 = vadd.f32 %v1416_v22, %v4694_v30  ;;  %v4787_v53 = vadd.f32 %v3780_v57, %v1471_v19 }
 0x18b   : > { %v3749_v51 = vpop.f32.mrf.mxu1  ;;  %v1723_v25 = vpop.f32.mrf.mxu0 }
 0x18c   : > { %5244 = vst [vmem:[#allocation10_spill] sm:$0xff] %v4787_v53  ;;  %v1474_v49 = vadd.f32 %v3749_v51, %v4697_v40  ;;  %v4790_v62 = vadd.f32 %v1710_v21, %v1469_v42 }
 0x18d   : > { %v1429_v8 = vpop.f32.mrf.mxu1  ;;  %v3784_v35 = vpop.f32.mrf.mxu0 }
 0x18e   : > { %5245 = vst [vmem:[#allocation11_spill] sm:$0xff] %v4790_v62  ;;  %v1472_v58 = vadd.f32 %v1429_v8, %v4700_v17  ;;  %v4793_v34 = vadd.f32 %v3783_v29, %v1474_v49 }
 0x18f   : > { %v3750_v27 = vpop.f32.mrf.mxu1  ;;  %v1726_v7 = vpop.f32.mrf.mxu0 }
 0x190   : > { %5246 = vst [vmem:[#allocation12_spill] sm:$0xff] %v4793_v34  ;;  %v1475_v41 = vadd.f32 %v3750_v27, %v4703_v1  ;;  %v4796_v0 = vadd.f32 %v1723_v25, %v1472_v58 }
 0x191   : > { %v1432_v30 = vpop.f32.mrf.mxu1  ;;  %v4798_v45 = vpop.f32.mrf.mxu0 }
 0x192   : > { %5247 = vst [vmem:[#allocation13_spill] sm:$0xff] %v4796_v0  ;;  %v1473_v13 = vadd.f32 %v1432_v30, %v4706_v18  ;;  %v4801_v40 = vadd.f32 %v3784_v35, %v1475_v41 }
 0x193   : > { %v3789_v16 = vpop.f32.mrf.mxu1  ;;  %v4803_v32 = vpop.f32.mrf.mxu0 }
 0x194   : > { %5248 = vst [vmem:[#allocation14_spill] sm:$0xff] %v4801_v40  ;;  %v4805_v11 = vadd.f32 %v1726_v7, %v1473_v13 }
 0x195   : > { %v1905_v17 = vpop.f32.mrf.mxu1  ;;  %v4807_v50 = vpop.f32.mrf.mxu0 }
 0x196   : > { %5249 = vst [vmem:[#allocation15_spill] sm:$0xff] %v4805_v11 }
 0x197   : > { %v3790_v63 = vpop.f32.mrf.mxu1  ;;  %v4809_v12 = vpop.f32.mrf.mxu0 }
 0x199   : > { %v1908_v1 = vpop.f32.mrf.mxu1  ;;  %v4811_v20 = vpop.f32.mrf.mxu0 }
 0x19b   : > { %v3793_v3 = vpop.f32.mrf.mxu1  ;;  %v4813_v55 = vpop.f32.mrf.mxu0 }
 0x19d   : > { %v1921_v18 = vpop.f32.mrf.mxu1  ;;  %v4815_v5 = vpop.f32.mrf.mxu0 }
 0x19f   : > { %v3794_v57 = vpop.f32.mrf.mxu1  ;;  %v4817_v28 = vpop.f32.mrf.mxu0 }
 0x1a1   : > { %v1924_v44 = vpop.f32.mrf.mxu1  ;;  %v4819_v21 = vpop.f32.mrf.mxu0 }
 0x1a3   : > { %v3797_v19 = vpop.f32.mrf.mxu1  ;;  %v4821_v22 = vpop.f32.mrf.mxu0 }
 0x1a5   : > { %v1937_v29 = vpop.f32.mrf.mxu1  ;;  %v4823_v42 = vpop.f32.mrf.mxu0 }
 0x1a7   : > { %v3798_v51 = vpop.f32.mrf.mxu1  ;;  %v4825_v25 = vpop.f32.mrf.mxu0 }
 0x1a9   : > { %v1940_v49 = vpop.f32.mrf.mxu1  ;;  %v4827_v8 = vpop.f32.mrf.mxu0 }
 0x1ab   : > { %v3801_v35 = vpop.f32.mrf.mxu1  ;;  %v4829_v58 = vpop.f32.mrf.mxu0 }
 0x1ad   : > { %v1953_v27 = vpop.f32.mrf.mxu1  ;;  %v4831_v7 = vpop.f32.mrf.mxu0 }
 0x1ae   : > { %5250 = vst [vmem:[#allocation16_spill] sm:$0xff] %v4831_v7 }
 0x1af   : > { %v3802_v41 = vpop.f32.mrf.mxu1  ;;  %v4833_v30 = vpop.f32.mrf.mxu0 }
 0x1b0   : > { %5251 = vst [vmem:[#allocation17_spill] sm:$0xff] %v4833_v30 }
 0x1b1   : > { %v1956_v13 = vpop.f32.mrf.mxu1  ;;  %v4835_v11 = vpop.f32.mrf.mxu0 }
 0x1b2   : > { %5252 = vst [vmem:[#allocation18_spill] sm:$0xff] %v4835_v11 }
 0x1b3   : > { %v3805_v40 = vpop.f32.mrf.mxu1  ;;  %v4837_v0 = vpop.f32.mrf.mxu0 }
 0x1b4   : > { %5253 = vst [vmem:[#allocation19_spill] sm:$0xff] %v4837_v0 }
 0x1b5   : > { %v1969_v34 = vpop.f32.mrf.mxu1  ;;  %v4839_v62 = vpop.f32.mrf.mxu0 }
 0x1b6   : > { %5254 = vst [vmem:[#allocation20_spill] sm:$0xff] %v4839_v62 }
 0x1b7   : > { %v3806_v53 = vpop.f32.mrf.mxu1  ;;  %v4841_v56 = vpop.f32.mrf.mxu0 }
 0x1b8   : > { %5255 = vst [vmem:[#allocation21_spill] sm:$0xff] %v4841_v56 }
 0x1b9   : > { %v4843_v60 = vpop.f32.mrf.mxu1  ;;  %v4845_v48 = vpop.f32.mrf.mxu0 }
 0x1ba   : > { %5256 = vst [vmem:[#allocation22_spill] sm:$0xff] %v4843_v60  ;;  %5257 = vst [vmem:[#allocation23_spill] sm:$0xff] %v4845_v48 }
 0x1bb   : > { %v3809_v9 = vpop.f32.mrf.mxu1  ;;  %v4847_v26 = vpop.f32.mrf.mxu0 }
 0x1bc   : > { %5258 = vst [vmem:[#allocation24_spill] sm:$0xff] %v4847_v26 }
 0x1bd   : > { %v4849_v30 = vpop.f32.mrf.mxu1  ;;  %v4851_v10 = vpop.f32.mrf.mxu0 }
 0x1be   : > { %5259 = vst [vmem:[#allocation25_spill] sm:$0xff] %v4849_v30  ;;  %5260 = vst [vmem:[#allocation26_spill] sm:$0xff] %v4851_v10  ;;  %v2034_v10 = vadd.f32 %v3789_v16, %v4709_v61 }
 0x1bf   : > { %v4853_v11 = vpop.f32.mrf.mxu1  ;;  %v4855_v0 = vpop.f32.mrf.mxu0 }
 0x1c0   : > { %5261 = vst [vmem:[#allocation27_spill] sm:$0xff] %v4853_v11  ;;  %5262 = vst [vmem:[#allocation28_spill] sm:$0xff] %v4855_v0  ;;  %v2329_v16 = vadd.f32 %v4798_v45, %v2034_v10  ;;  %v2047_v10 = vadd.f32 %v3802_v41, %v4751_v14 }
 0x1c1   : > { %v4857_v23 = vpop.f32.mrf.mxu1  ;;  %v4859_v62 = vpop.f32.mrf.mxu0 }
 0x1c2   : > { %5263 = vst [vmem:[#allocation29_spill] sm:$0xff] %v4857_v23  ;;  %5264 = vst [vmem:[#allocation30_spill] sm:$0xff] %v4859_v62  ;;  %v2032_v62 = vadd.f32 %v1905_v17, %v4712_v38  ;;  %v2039_v38 = vadd.f32 %v3794_v57, %v4727_v37  ;;  %v2046_v37 = vadd.f32 %v3801_v35, %v4745_v59  ;;  %v5277_v35 = vld [vmem:[#allocation19_spill] sm:$0xff] }
 0x1c3   : > { %v4861_v56 = vpop.f32.mrf.mxu1  ;;  %v4863_v60 = vpop.f32.mrf.mxu0  ;;  %v2048_v59 = vadd.f32 %v1969_v34, %v4760_v6 }
 0x1c4   : > { %5265 = vst [vmem:[#allocation31_spill] sm:$0xff] %v4861_v56  ;;  %5266 = vst [vmem:[#allocation32_spill] sm:$0xff] %v4863_v60  ;;  %v2035_v56 = vadd.f32 %v3790_v63, %v4715_v36  ;;  %v2037_v36 = vadd.f32 %v1924_v44, %v4730_v46  ;;  %v2327_v17 = vadd.f32 %v4803_v32, %v2032_v62 }
 0x1c5   : > { %v4865_v48 = vpop.f32.mrf.mxu1  ;;  %v4867_v7 = vpop.f32.mrf.mxu0  ;;  %v2044_v46 = vadd.f32 %v1953_v27, %v4748_v43  ;;  %v2051_v43 = vadd.f32 %v3806_v53, %v4763_v54  ;;  %v4919_v14 = vadd.f32 %v4815_v5, %v2039_v38  ;;  %v4937_v53 = vadd.f32 %v4827_v8, %v2046_v37  ;;  %v5273_v5 = vld [vmem:[#allocation22_spill] sm:$0xff]  ;;  %v5278_v27 = vld [vmem:[#allocation20_spill] sm:$0xff]  ;;  %v5280_v41 = vld [vmem:[#allocation25_spill] sm:$0xff] }
 0x1c6   : > { %5267 = vst [vmem:[#allocation33_spill] sm:$0xff] %v4865_v48  ;;  %5268 = vst [vmem:[#allocation34_spill] sm:$0xff] %v4867_v7  ;;  %v2033_v7 = vadd.f32 %v1908_v1, %v4718_v47  ;;  %v2330_v63 = vadd.f32 %v4807_v50, %v2035_v56  ;;  %v2042_v47 = vadd.f32 %v3797_v19, %v4733_v33 }
 0x1c7   : > { %v4869_v26 = vpop.f32.mrf.mxu1  ;;  %v4871_v30 = vpop.f32.mrf.mxu0  ;;  %v2041_v1 = vadd.f32 %v1940_v49, %v4742_v52  ;;  %v2045_v33 = vadd.f32 %v1956_v13, %v4754_v15  ;;  %v4922_v32 = vadd.f32 %v4817_v28, %v2037_v36  ;;  %v4940_v34 = vadd.f32 %v4829_v58, %v2044_v46  ;;  %v5274_v28 = vld [vmem:[#allocation4_spill] sm:$0xff]  ;;  %v5281_v13 = vld [vmem:[#allocation6_spill] sm:$0xff]  ;;  %v5283_v36 = vld [vmem:[#allocation7_spill] sm:$0xff] }
 0x1c8   : > { %5269 = vst [vmem:[#allocation35_spill] sm:$0xff] %v4869_v26  ;;  %5270 = vst [vmem:[#allocation36_spill] sm:$0xff] %v4871_v30  ;;  %v2038_v26 = vadd.f32 %v3793_v3, %v4721_v2  ;;  %v2036_v30 = vadd.f32 %v1921_v18, %v4724_v31  ;;  %v2040_v2 = vadd.f32 %v1937_v29, %v4736_v4  ;;  %v5275_v29 = vld [vmem:[#allocation17_spill] sm:$0xff] }
 0x1c9   : > { %v4874_v11 = vpop.f32.mrf.mxu1  ;;  %v4876_v0 = vpop.f32.mrf.mxu0  ;;  %v2043_v31 = vadd.f32 %v3798_v51, %v4739_v39  ;;  %v2328_v56 = vadd.f32 %v4809_v12, %v2033_v7  ;;  %v2050_v4 = vadd.f32 %v3805_v40, %v4757_v24  ;;  %v4925_v40 = vadd.f32 %v4819_v21, %v2042_v47  ;;  %v5271_v12 = vld [vmem:[#allocation16_spill] sm:$0xff]  ;;  %v4951_v21 = vld [vmem:[%s5233_s2] ss:$0 sm:$0xff]  ;;  %v5276_v51 = vld [vmem:[#allocation18_spill] sm:$0xff] }
 0x1ca   : > { %v2333_v52 = vadd.f32 %v4811_v20, %v2038_v26  ;;  %v4914_v45 = vadd.f32 %v4813_v55, %v2036_v30  ;;  %v4928_v26 = vadd.f32 %v4821_v22, %v2040_v2  ;;  %v4934_v6 = vadd.f32 %v4825_v25, %v2041_v1  ;;  %v5272_v55 = vld [vmem:[#allocation3_spill] sm:$0xff]  ;;  %v5279_v7 = vld [vmem:[#allocation5_spill] sm:$0xff] }
 0x1cb   : > { %v4880_v23 = vpop.f32.mrf.mxu1  ;;  %v4882_v60 = vpop.f32.mrf.mxu0  ;;  %v4931_v50 = vadd.f32 %v4823_v42, %v2043_v31  ;;  %v4943_v20 = vadd.f32 %v5271_v12, %v2047_v10  ;;  %v2049_v57 = vadd.f32 %v5273_v5, %v5272_v55  ;;  %v2054_v44 = vadd.f32 %v3809_v9, %v5274_v28  ;;  %v5284_v47 = vld [vmem:[#allocation29_spill] sm:$0xff]  ;;  %v5285_v31 = vld [vmem:[#allocation8_spill] sm:$0xff]  ;;  %v5286_v1 = vld [vmem:[#allocation31_spill] sm:$0xff] }
 0x1cc   : > { %v4954_v42 = vadd.f32 %v5275_v29, %v2045_v33  ;;  %v4957_v25 = vadd.f32 %v5276_v51, %v2050_v4  ;;  %v4960_v58 = vadd.f32 %v5277_v35, %v2048_v59  ;;  %v4963_v9 = vadd.f32 %v5278_v27, %v2051_v43  ;;  %v5287_v10 = vld [vmem:[#allocation9_spill] sm:$0xff]  ;;  %v5291_v55 = vld [vmem:[#allocation11_spill] sm:$0xff] }
 0x1cd   : > { %v4887_v48 = vpop.f32.mrf.mxu1  ;;  %v4889_v61 = vpop.f32.mrf.mxu0  ;;  %v2052_v30 = vadd.f32 %v5280_v41, %v5279_v7  ;;  %v2053_v2 = vadd.f32 %v5284_v47, %v5283_v36  ;;  %v2058_v37 = vadd.f32 %v5286_v1, %v5285_v31  ;;  %v5288_v33 = vld [vmem:[#allocation33_spill] sm:$0xff]  ;;  %v2057_v5 = vadd.f32 %v4874_v11, %v5291_v55  ;;  %v5293_v35 = vld [vmem:[#allocation23_spill] sm:$0xff]  ;;  %v5294_v7 = vld [vmem:[#allocation12_spill] sm:$0xff] }
 0x1ce   : > { %v2056_v4 = vadd.f32 %v5288_v33, %v5287_v10  ;;  %v5292_v29 = vld [vmem:[#allocation21_spill] sm:$0xff]  ;;  %v4991_v27 = vadd.f32 %v5293_v35, %v2054_v44  ;;  %v5296_v36 = vld [vmem:[#allocation24_spill] sm:$0xff]  ;;  %v5297_v44 = vld [vmem:[#allocation26_spill] sm:$0xff] }
 0x1cf   : > { %v4900_v3 = vpop.f32.mrf.mxu1  ;;  %v4902_v18 = vpop.f32.mrf.mxu0  ;;  %v4988_v51 = vadd.f32 %v5292_v29, %v2049_v57  ;;  %v5001_v57 = vadd.f32 %v5296_v36, %v2052_v30  ;;  %v5298_v31 = vld [vmem:[#allocation28_spill] sm:$0xff]  ;;  %v5299_v1 = vld [vmem:[#allocation14_spill] sm:$0xff] }
 0x1d0   : > { %v5301_v10 = vld [vmem:[#allocation32_spill] sm:$0xff] }
 0x1d1   : > { %v4910_v62 = vpop.f32.mrf.mxu1  ;;  %v3891_v39 = vpop.f32.mrf.mxu0  ;;  %v5018_v33 = vadd.f32 %v5301_v10, %v2056_v4 }
 0x1d3   : > { %v3857_v15 = vpop.f32.mrf.mxu1  ;;  %v2788_v24 = vpop.f32.mrf.mxu0 }
 0x1d4   : > { %v2623_v54 = vadd.f32 %v3857_v15, %v2329_v16  ;;  %v5282_v16 = vld [vmem:[#allocation27_spill] sm:$0xff]  ;;  %v5289_v15 = vld [vmem:[#allocation10_spill] sm:$0xff] }
 0x1d5   : > { %v2494_v19 = vpop.f32.mrf.mxu1  ;;  %v3892_v22 = vpop.f32.mrf.mxu0  ;;  %v2055_v38 = vadd.f32 %v5282_v16, %v5281_v13 }
 0x1d6   : > { %v2917_v49 = vadd.f32 %v3891_v39, %v2623_v54  ;;  %v2621_v8 = vadd.f32 %v2494_v19, %v2327_v17  ;;  %v5290_v54 = vld [vmem:[#allocation35_spill] sm:$0xff] }
 0x1d7   : > { %v3858_v17 = vpop.f32.mrf.mxu1  ;;  %v2791_v46 = vpop.f32.mrf.mxu0  ;;  %v2059_v12 = vadd.f32 %v5290_v54, %v5289_v15  ;;  %v5004_v47 = vadd.f32 %v5297_v44, %v2055_v38  ;;  %v5302_v15 = vld [vmem:[#allocation34_spill] sm:$0xff]  ;;  %v5303_v54 = vld [vmem:[#allocation36_spill] sm:$0xff] }
 0x1d8   : > { %v2956_v39 = vadd.f32 %v4951_v21, %v2917_v49  ;;  %v2915_v59 = vadd.f32 %v2788_v24, %v2621_v8  ;;  %v2624_v43 = vadd.f32 %v3858_v17, %v2330_v63  ;;  %v2062_v49 = vadd.f32 %v4880_v23, %v5294_v7  ;;  %v5295_v24 = vld [vmem:[#allocation13_spill] sm:$0xff] }
 0x1d9   : > { %v2497_v28 = vpop.f32.mrf.mxu1  ;;  %v3895_v19 = vpop.f32.mrf.mxu0  ;;  %v2060_v63 = vadd.f32 %v4887_v48, %v5295_v24  ;;  %v5007_v23 = vadd.f32 %v5298_v31, %v2053_v2  ;;  %v2063_v48 = vadd.f32 %v4900_v3, %v5299_v1  ;;  %v5021_v2 = vadd.f32 %v5302_v15, %v2059_v12  ;;  %v5304_v3 = vld [vmem:[#allocation15_spill] sm:$0xff] }
 0x1da   : > { %2988 = vst.msk [vmem:[%s4978_s23 + $0x10] sm:$0xff] %vm243_vm1, %v2956_v39  ;;  %v2954_v8 = vadd.f32 %v4951_v21, %v2915_v59  ;;  %v2918_v11 = vadd.f32 %v3892_v22, %v2624_v43  ;;  %v2622_v41 = vadd.f32 %v2497_v28, %v2328_v56  ;;  %v5300_v56 = vld [vmem:[#allocation30_spill] sm:$0xff]  ;;  %v5024_v55 = vadd.f32 %v5303_v54, %v2057_v5 }
 0x1db   : > { %v3861_v13 = vpop.f32.mrf.mxu1  ;;  %v2804_v16 = vpop.f32.mrf.mxu0  ;;  %v5015_v17 = vadd.f32 %v5300_v56, %v2058_v37  ;;  %v5028_v28 = vadd.f32 %v4910_v62, %v5304_v3  ;;  %v3091_v4 = vmul.f32 %v2956_v39, %v2956_v39 }
 0x1dc   : > { %2986 = vst.msk [vmem:[%s4978_s23] sm:$0xff] %vm243_vm1, %v2954_v8  ;;  %v2957_v22 = vadd.f32 %v4951_v21, %v2918_v11  ;;  %v2916_v30 = vadd.f32 %v2791_v46, %v2622_v41  ;;  %v2627_v59 = vadd.f32 %v3861_v13, %v2333_v52  ;;  %v5034_v46 = vadd.f32 %v4876_v0, %v2062_v49 }
 0x1dd   : > { %v2510_v38 = vpop.f32.mrf.mxu1  ;;  %v3896_v43 = vpop.f32.mrf.mxu0  ;;  %v5037_v52 = vadd.f32 %v4882_v60, %v2060_v63  ;;  %v3089_v12 = vmul.f32 %v2954_v8, %v2954_v8  ;;  %v3018_v62 = vsel %vm243_vm1, %v2954_v8, 0.0  ;;  %v3124_v36 = vsel %vm243_vm1, %v3091_v4, 0.0 }
 0x1de   : > { %2989 = vst.msk [vmem:[%s4978_s23 + $0x18] sm:$0xff] %vm243_vm1, %v2957_v22  ;;  %v2625_v37 = vadd.f32 %v2510_v38, %v4914_v45  ;;  %v2955_v5 = vadd.f32 %v4951_v21, %v2916_v30  ;;  %v2921_v29 = vadd.f32 %v3895_v19, %v2627_v59  ;;  %v5043_v45 = vadd.f32 %v4889_v61, %v2063_v48 }
 0x1df   : > { %v3862_v35 = vpop.f32.mrf.mxu1  ;;  %v2807_v7 = vpop.f32.mrf.mxu0  ;;  %v3092_v0 = vmul.f32 %v2957_v22, %v2957_v22  ;;  %v3021_v61 = vsel %vm243_vm1, %v2956_v39, 0.0  ;;  %v3121_v44 = vsel %vm243_vm1, %v3089_v12, 0.0  ;;  %v3023_v56 = vsel %vm243_vm1, %v2957_v22, 0.0 }
 0x1e0   : > { %v2919_v24 = vadd.f32 %v2804_v16, %v2625_v37  ;;  %v2628_v11 = vadd.f32 %v3862_v35, %v4919_v14  ;;  %2987 = vst.msk [vmem:[%s4978_s23 + $0x8] sm:$0xff] %vm243_vm1, %v2955_v5  ;;  %v3019_v60 = vsel %vm243_vm1, %v2955_v5, 0.0  ;;  %v3090_v49 = vmul.f32 %v2955_v5, %v2955_v5 }
 0x1e1   : > { %v2960_v63 = vadd.f32 %v4951_v21, %v2921_v29  ;;  %v2513_v19 = vpop.f32.mrf.mxu1  ;;  %v3899_v41 = vpop.f32.mrf.mxu0  ;;  %v3020_v13 = vadd.f32 %v3019_v60, %v3018_v62  ;;  %v3126_v39 = vsel %vm243_vm1, %v3092_v0, 0.0 }
 0x1e2   : > { %v2958_v8 = vadd.f32 %v4951_v21, %v2919_v24  ;;  %v2922_v16 = vadd.f32 %v3896_v43, %v2628_v11  ;;  %v2626_v14 = vadd.f32 %v2513_v19, %v4922_v32  ;;  %v3122_v31 = vsel %vm243_vm1, %v3090_v49, 0.0 }
 0x1e3   : > { %2992 = vst.msk [vmem:[%s4978_s23 + $0x30] sm:$0xff] %vm243_vm1, %v2960_v63  ;;  %v3865_v1 = vpop.f32.mrf.mxu1  ;;  %v2820_v48 = vpop.f32.mrf.mxu0  ;;  %v3022_v10 = vadd.f32 %v3021_v61, %v3020_v13  ;;  %v3123_v30 = vadd.f32 %v3122_v31, %v3121_v44  ;;  %v3095_v37 = vmul.f32 %v2960_v63, %v2960_v63 }
 0x1e4   : > { %2990 = vst.msk [vmem:[%s4978_s23 + $0x20] sm:$0xff] %vm243_vm1, %v2958_v8  ;;  %v3093_v32 = vmul.f32 %v2958_v8, %v2958_v8  ;;  %v2961_v59 = vadd.f32 %v4951_v21, %v2922_v16  ;;  %v2920_v38 = vadd.f32 %v2807_v7, %v2626_v14  ;;  %v2631_v43 = vadd.f32 %v3865_v1, %v4925_v40 }
 0x1e5   : > { %v2526_v15 = vpop.f32.mrf.mxu1  ;;  %v3900_v54 = vpop.f32.mrf.mxu0  ;;  %v3125_v3 = vadd.f32 %v3124_v36, %v3123_v30  ;;  %v3024_v4 = vadd.f32 %v3023_v56, %v3022_v10  ;;  %v3025_v12 = vsel %vm243_vm1, %v2958_v8, 0.0  ;;  %v3029_v36 = vsel %vm243_vm1, %v2960_v63, 0.0 }
 0x1e6   : > { %v2629_v22 = vadd.f32 %v2526_v15, %v4928_v26  ;;  %v3128_v5 = vsel %vm243_vm1, %v3093_v32, 0.0  ;;  %2993 = vst.msk [vmem:[%s4978_s23 + $0x38] sm:$0xff] %vm243_vm1, %v2961_v59  ;;  %v2959_v29 = vadd.f32 %v4951_v21, %v2920_v38  ;;  %v2925_v35 = vadd.f32 %v3899_v41, %v2631_v43 }
 0x1e7   : > { %v3866_v7 = vpop.f32.mrf.mxu1  ;;  %v2823_v62 = vpop.f32.mrf.mxu0  ;;  %v3026_v40 = vadd.f32 %v3025_v12, %v3024_v4  ;;  %v3127_v24 = vadd.f32 %v3126_v39, %v3125_v3  ;;  %v3096_v60 = vmul.f32 %v2961_v59, %v2961_v59  ;;  %v3031_v56 = vsel %vm243_vm1, %v2961_v59, 0.0 }
 0x1e8   : > { %v2923_v11 = vadd.f32 %v2820_v48, %v2629_v22  ;;  %v2632_v0 = vadd.f32 %v3866_v7, %v4931_v50  ;;  %2991 = vst.msk [vmem:[%s4978_s23 + $0x28] sm:$0xff] %vm243_vm1, %v2959_v29  ;;  %v3027_v26 = vsel %vm243_vm1, %v2959_v29, 0.0  ;;  %v3094_v49 = vmul.f32 %v2959_v29, %v2959_v29 }
 0x1e9   : > { %v2964_v19 = vadd.f32 %v4951_v21, %v2925_v35  ;;  %v2529_v13 = vpop.f32.mrf.mxu1  ;;  %v3903_v8 = vpop.f32.mrf.mxu0  ;;  %v3129_v41 = vadd.f32 %v3128_v5, %v3127_v24  ;;  %v3028_v16 = vadd.f32 %v3027_v26, %v3026_v40  ;;  %v3132_v50 = vsel %vm243_vm1, %v3095_v37, 0.0 }
 0x1ea   : > { %v2962_v14 = vadd.f32 %v4951_v21, %v2923_v11  ;;  %v2926_v61 = vadd.f32 %v3900_v54, %v2632_v0  ;;  %v3130_v44 = vsel %vm243_vm1, %v3094_v49, 0.0  ;;  %v2630_v31 = vadd.f32 %v2529_v13, %v4934_v6 }
 0x1eb   : > { %2996 = vst.msk [vmem:[%s4978_s23 + $0x50] sm:$0xff] %vm243_vm1, %v2964_v19  ;;  %v3869_v1 = vpop.f32.mrf.mxu1  ;;  %v2836_v48 = vpop.f32.mrf.mxu0  ;;  %v3030_v10 = vadd.f32 %v3029_v36, %v3028_v16  ;;  %v3131_v30 = vadd.f32 %v3130_v44, %v3129_v41  ;;  %v3134_v63 = vsel %vm243_vm1, %v3096_v60, 0.0  ;;  %v3099_v3 = vmul.f32 %v2964_v19, %v2964_v19 }
 0x1ec   : > { %2994 = vst.msk [vmem:[%s4978_s23 + $0x40] sm:$0xff] %vm243_vm1, %v2962_v14  ;;  %v3097_v32 = vmul.f32 %v2962_v14, %v2962_v14  ;;  %v2965_v39 = vadd.f32 %v4951_v21, %v2926_v61  ;;  %v2924_v38 = vadd.f32 %v2823_v62, %v2630_v31  ;;  %v2635_v43 = vadd.f32 %v3869_v1, %v4937_v53 }
 0x1ed   : > { %v2542_v15 = vpop.f32.mrf.mxu1  ;;  %v3904_v54 = vpop.f32.mrf.mxu0  ;;  %v3133_v6 = vadd.f32 %v3132_v50, %v3131_v30  ;;  %v3032_v37 = vadd.f32 %v3031_v56, %v3030_v10  ;;  %v3033_v4 = vsel %vm243_vm1, %v2962_v14, 0.0  ;;  %v3037_v16 = vsel %vm243_vm1, %v2964_v19, 0.0 }
 0x1ee   : > { %v2633_v59 = vadd.f32 %v2542_v15, %v4940_v34  ;;  %v3136_v22 = vsel %vm243_vm1, %v3097_v32, 0.0  ;;  %2997 = vst.msk [vmem:[%s4978_s23 + $0x58] sm:$0xff] %vm243_vm1, %v2965_v39  ;;  %v2963_v12 = vadd.f32 %v4951_v21, %v2924_v38  ;;  %v2929_v5 = vadd.f32 %v3903_v8, %v2635_v43 }
 0x1ef   : > { %v3870_v29 = vpop.f32.mrf.mxu1  ;;  %v2839_v35 = vpop.f32.mrf.mxu0  ;;  %v3034_v53 = vadd.f32 %v3033_v4, %v3032_v37  ;;  %v3135_v7 = vadd.f32 %v3134_v63, %v3133_v6  ;;  %v3100_v24 = vmul.f32 %v2965_v39, %v2965_v39  ;;  %v3039_v44 = vsel %vm243_vm1, %v2965_v39, 0.0 }
 0x1f0   : > { %v2927_v62 = vadd.f32 %v2836_v48, %v2633_v59  ;;  %v2636_v40 = vadd.f32 %v3870_v29, %v4943_v20  ;;  %2995 = vst.msk [vmem:[%s4978_s23 + $0x48] sm:$0xff] %vm243_vm1, %v2963_v12  ;;  %v3035_v34 = vsel %vm243_vm1, %v2963_v12, 0.0  ;;  %v3098_v11 = vmul.f32 %v2963_v12, %v2963_v12 }
 0x1f1   : > { %v2968_v0 = vadd.f32 %v4951_v21, %v2929_v5  ;;  %v2545_v60 = vpop.f32.mrf.mxu1  ;;  %v3907_v26 = vpop.f32.mrf.mxu0  ;;  %v3137_v49 = vadd.f32 %v3136_v22, %v3135_v7  ;;  %v3036_v13 = vadd.f32 %v3035_v34, %v3034_v53  ;;  %v3140_v20 = vsel %vm243_vm1, %v3099_v3, 0.0 }
 0x1f2   : > { %v2966_v8 = vadd.f32 %v4951_v21, %v2927_v62  ;;  %v2930_v41 = vadd.f32 %v3904_v54, %v2636_v40  ;;  %v3138_v14 = vsel %vm243_vm1, %v3098_v11, 0.0  ;;  %v2634_v61 = vadd.f32 %v2545_v60, %v4954_v42 }
 0x1f3   : > { %3000 = vst.msk [vmem:[%s4978_s23 + $0x70] sm:$0xff] %vm243_vm1, %v2968_v0  ;;  %v3873_v36 = vpop.f32.mrf.mxu1  ;;  %v2852_v50 = vpop.f32.mrf.mxu0  ;;  %v3038_v31 = vadd.f32 %v3037_v16, %v3036_v13  ;;  %v3139_v1 = vadd.f32 %v3138_v14, %v3137_v49  ;;  %v3142_v19 = vsel %vm243_vm1, %v3100_v24, 0.0  ;;  %v3103_v38 = vmul.f32 %v2968_v0, %v2968_v0 }
 0x1f4   : > { %2998 = vst.msk [vmem:[%s4978_s23 + $0x60] sm:$0xff] %vm243_vm1, %v2966_v8  ;;  %v3101_v48 = vmul.f32 %v2966_v8, %v2966_v8  ;;  %v2969_v56 = vadd.f32 %v4951_v21, %v2930_v41  ;;  %v2928_v10 = vadd.f32 %v2839_v35, %v2634_v61  ;;  %v2639_v30 = vadd.f32 %v3873_v36, %v4957_v25 }
 0x1f5   : > { %v2558_v32 = vpop.f32.mrf.mxu1  ;;  %v3908_v63 = vpop.f32.mrf.mxu0  ;;  %v3141_v42 = vadd.f32 %v3140_v20, %v3139_v1  ;;  %v3040_v43 = vadd.f32 %v3039_v44, %v3038_v31  ;;  %v3041_v15 = vsel %vm243_vm1, %v2966_v8, 0.0  ;;  %v3045_v11 = vsel %vm243_vm1, %v2968_v0, 0.0 }
 0x1f6   : > { %v2637_v39 = vadd.f32 %v2558_v32, %v4960_v58  ;;  %v3144_v54 = vsel %vm243_vm1, %v3101_v48, 0.0  ;;  %3001 = vst.msk [vmem:[%s4978_s23 + $0x78] sm:$0xff] %vm243_vm1, %v2969_v56  ;;  %v2967_v6 = vadd.f32 %v4951_v21, %v2928_v10  ;;  %v2933_v3 = vadd.f32 %v3907_v26, %v2639_v30 }
 0x1f7   : > { %v3874_v37 = vpop.f32.mrf.mxu1  ;;  %v2855_v59 = vpop.f32.mrf.mxu0  ;;  %v3042_v25 = vadd.f32 %v3041_v15, %v3040_v43  ;;  %v3143_v4 = vadd.f32 %v3142_v19, %v3141_v42  ;;  %v3104_v5 = vmul.f32 %v2969_v56, %v2969_v56  ;;  %v3047_v8 = vsel %vm243_vm1, %v2969_v56, 0.0 }
 0x1f8   : > { %v2931_v22 = vadd.f32 %v2852_v50, %v2637_v39  ;;  %v2640_v12 = vadd.f32 %v3874_v37, %v4963_v9  ;;  %2999 = vst.msk [vmem:[%s4978_s23 + $0x68] sm:$0xff] %vm243_vm1, %v2967_v6  ;;  %v3043_v58 = vsel %vm243_vm1, %v2967_v6, 0.0  ;;  %v3102_v29 = vmul.f32 %v2967_v6, %v2967_v6 }
 0x1f9   : > { %v2972_v35 = vadd.f32 %v4951_v21, %v2933_v3  ;;  %v2561_v53 = vpop.f32.mrf.mxu1  ;;  %v3911_v7 = vpop.f32.mrf.mxu0  ;;  %v3145_v62 = vadd.f32 %v3144_v54, %v3143_v4  ;;  %v3044_v40 = vadd.f32 %v3043_v58, %v3042_v25  ;;  %v3148_v9 = vsel %vm243_vm1, %v3103_v38, 0.0 }
 0x1fa   : > { %v2970_v24 = vadd.f32 %v4951_v21, %v2931_v22  ;;  %v2934_v34 = vadd.f32 %v3908_v63, %v2640_v12  ;;  %v3146_v60 = vsel %vm243_vm1, %v3102_v29, 0.0  ;;  %v2638_v26 = vadd.f32 %v2561_v53, %v4988_v51 }
 0x1fb   : > { %3004 = vst.msk [vmem:[%s4978_s23 + $0x90] sm:$0xff] %vm243_vm1, %v2972_v35  ;;  %v3877_v49 = vpop.f32.mrf.mxu1  ;;  %v2868_v13 = vpop.f32.mrf.mxu0  ;;  %v3046_v41 = vadd.f32 %v3045_v11, %v3044_v40  ;;  %v3147_v16 = vadd.f32 %v3146_v60, %v3145_v62  ;;  %v3150_v0 = vsel %vm243_vm1, %v3104_v5, 0.0  ;;  %v3107_v31 = vmul.f32 %v2972_v35, %v2972_v35 }
 0x1fc   : > { %3002 = vst.msk [vmem:[%s4978_s23 + $0x80] sm:$0xff] %vm243_vm1, %v2970_v24  ;;  %v3105_v20 = vmul.f32 %v2970_v24, %v2970_v24  ;;  %v2973_v14 = vadd.f32 %v4951_v21, %v2934_v34  ;;  %v2932_v61 = vadd.f32 %v2855_v59, %v2638_v26  ;;  %v2643_v36 = vadd.f32 %v3877_v49, %v4991_v27 }
 0x1fd   : > { %v2574_v50 = vpop.f32.mrf.mxu1  ;;  %v3912_v44 = vpop.f32.mrf.mxu0  ;;  %v3149_v51 = vadd.f32 %v3148_v9, %v3147_v16  ;;  %v3048_v1 = vadd.f32 %v3047_v8, %v3046_v41  ;;  %v3049_v19 = vsel %vm243_vm1, %v2970_v24, 0.0  ;;  %v3053_v22 = vsel %vm243_vm1, %v2972_v35, 0.0 }
 0x1fe   : > { %v2641_v48 = vadd.f32 %v2574_v50, %v5001_v57  ;;  %v3152_v56 = vsel %vm243_vm1, %v3105_v20, 0.0  ;;  %3005 = vst.msk [vmem:[%s4978_s23 + $0x98] sm:$0xff] %vm243_vm1, %v2973_v14  ;;  %v2971_v10 = vadd.f32 %v4951_v21, %v2932_v61  ;;  %v2937_v30 = vadd.f32 %v3911_v7, %v2643_v36 }
 0x1ff   : > { %v3878_v32 = vpop.f32.mrf.mxu1  ;;  %v2871_v63 = vpop.f32.mrf.mxu0  ;;  %v3050_v27 = vadd.f32 %v3049_v19, %v3048_v1  ;;  %v3151_v42 = vadd.f32 %v3150_v0, %v3149_v51  ;;  %v3108_v39 = vmul.f32 %v2973_v14, %v2973_v14  ;;  %v3055_v53 = vsel %vm243_vm1, %v2973_v14, 0.0 }
 0x200   : > { %v2935_v38 = vadd.f32 %v2868_v13, %v2641_v48  ;;  %v2644_v43 = vadd.f32 %v3878_v32, %v5004_v47  ;;  %3003 = vst.msk [vmem:[%s4978_s23 + $0x88] sm:$0xff] %vm243_vm1, %v2971_v10  ;;  %v3051_v57 = vsel %vm243_vm1, %v2971_v10, 0.0  ;;  %v3106_v15 = vmul.f32 %v2971_v10, %v2971_v10 }
 0x201   : > { %v2976_v54 = vadd.f32 %v4951_v21, %v2937_v30  ;;  %v2577_v6 = vpop.f32.mrf.mxu1  ;;  %v3915_v3 = vpop.f32.mrf.mxu0  ;;  %v3153_v37 = vadd.f32 %v3152_v56, %v3151_v42  ;;  %v3052_v59 = vadd.f32 %v3051_v57, %v3050_v27  ;;  %v3156_v47 = vsel %vm243_vm1, %v3107_v31, 0.0 }
 0x202   : > { %v2974_v25 = vadd.f32 %v4951_v21, %v2935_v38  ;;  %v2938_v4 = vadd.f32 %v3912_v44, %v2644_v43  ;;  %v3154_v12 = vsel %vm243_vm1, %v3106_v15, 0.0  ;;  %v2642_v5 = vadd.f32 %v2577_v6, %v5007_v23 }
 0x203   : > { %3008 = vst.msk [vmem:[%s4978_s23 + $0xb0] sm:$0xff] %vm243_vm1, %v2976_v54  ;;  %v3881_v58 = vpop.f32.mrf.mxu1  ;;  %v2884_v29 = vpop.f32.mrf.mxu0  ;;  %v3054_v7 = vadd.f32 %v3053_v22, %v3052_v59  ;;  %v3155_v62 = vadd.f32 %v3154_v12, %v3153_v37  ;;  %v3158_v35 = vsel %vm243_vm1, %v3108_v39, 0.0  ;;  %v3111_v26 = vmul.f32 %v2976_v54, %v2976_v54 }
 0x204   : > { %3006 = vst.msk [vmem:[%s4978_s23 + $0xa0] sm:$0xff] %vm243_vm1, %v2974_v25  ;;  %v3109_v40 = vmul.f32 %v2974_v25, %v2974_v25  ;;  %v2977_v24 = vadd.f32 %v4951_v21, %v2938_v4  ;;  %v2936_v34 = vadd.f32 %v2871_v63, %v2642_v5  ;;  %v2647_v11 = vadd.f32 %v3881_v58, %v5015_v17 }
 0x205   : > { %v2590_v9 = vpop.f32.mrf.mxu1  ;;  %v3916_v60 = vpop.f32.mrf.mxu0  ;;  %v3157_v23 = vadd.f32 %v3156_v47, %v3155_v62  ;;  %v3056_v49 = vadd.f32 %v3055_v53, %v3054_v7  ;;  %v3057_v8 = vsel %vm243_vm1, %v2974_v25, 0.0  ;;  %v3061_v32 = vsel %vm243_vm1, %v2976_v54, 0.0 }
 0x206   : > { %v2645_v13 = vadd.f32 %v2590_v9, %v5018_v33  ;;  %v3160_v41 = vsel %vm243_vm1, %v3109_v40, 0.0  ;;  %3009 = vst.msk [vmem:[%s4978_s23 + $0xb8] sm:$0xff] %vm243_vm1, %v2977_v24  ;;  %v2975_v16 = vadd.f32 %v4951_v21, %v2936_v34  ;;  %v2941_v20 = vadd.f32 %v3915_v3, %v2647_v11 }
 0x207   : > { %v3882_v0 = vpop.f32.mrf.mxu1  ;;  %v2887_v14 = vpop.f32.mrf.mxu0  ;;  %v3058_v17 = vadd.f32 %v3057_v8, %v3056_v49  ;;  %v3159_v61 = vadd.f32 %v3158_v35, %v3157_v23  ;;  %v3112_v44 = vmul.f32 %v2977_v24, %v2977_v24  ;;  %v2356_v42 = vadd.f32 %v4902_v18, %v5028_v28 }
 0x208   : > { %v2939_v36 = vadd.f32 %v2884_v29, %v2645_v13  ;;  %v2648_v50 = vadd.f32 %v3882_v0, %v5021_v2  ;;  %3007 = vst.msk [vmem:[%s4978_s23 + $0xa8] sm:$0xff] %vm243_vm1, %v2975_v16  ;;  %v3059_v33 = vsel %vm243_vm1, %v2975_v16, 0.0  ;;  %v3110_v51 = vmul.f32 %v2975_v16, %v2975_v16 }
 0x209   : > { %v2980_v31 = vadd.f32 %v4951_v21, %v2941_v20  ;;  %v2593_v1 = vpop.f32.mrf.mxu1  ;;  %v3919_v48 = vpop.f32.mrf.mxu0  ;;  %v3161_v19 = vadd.f32 %v3160_v41, %v3159_v61  ;;  %v3060_v56 = vadd.f32 %v3059_v33, %v3058_v17  ;;  %v3164_v38 = vsel %vm243_vm1, %v3111_v26, 0.0 }
 0x20a   : > { %v2978_v10 = vadd.f32 %v4951_v21, %v2939_v36  ;;  %v2942_v30 = vadd.f32 %v3916_v60, %v2648_v50  ;;  %v3162_v2 = vsel %vm243_vm1, %v3110_v51, 0.0  ;;  %v2646_v63 = vadd.f32 %v2593_v1, %v5024_v55 }
 0x20b   : > { %3012 = vst.msk [vmem:[%s4978_s23 + $0xd0] sm:$0xff] %vm243_vm1, %v2980_v31  ;;  %v3885_v27 = vpop.f32.mrf.mxu1  ;;  %v3063_v43 = vsel %vm243_vm1, %v2977_v24, 0.0  ;;  %v3062_v39 = vadd.f32 %v3061_v32, %v3060_v56  ;;  %v3163_v57 = vadd.f32 %v3162_v2, %v3161_v19  ;;  %v2900_v15 = vpop.f32.mrf.mxu0  ;;  %v3166_v59 = vsel %vm243_vm1, %v3112_v44, 0.0 }
 0x20c   : > { %3010 = vst.msk [vmem:[%s4978_s23 + $0xc0] sm:$0xff] %vm243_vm1, %v2978_v10  ;;  %v3113_v54 = vmul.f32 %v2978_v10, %v2978_v10  ;;  %v2981_v6 = vadd.f32 %v4951_v21, %v2942_v30  ;;  %v2940_v3 = vadd.f32 %v2887_v14, %v2646_v63  ;;  %v2651_v55 = vadd.f32 %v3885_v27, %v5034_v46 }
 0x20d   : > { %v2606_v37 = vpop.f32.mrf.mxu1  ;;  %v3165_v18 = vadd.f32 %v3164_v38, %v3163_v57  ;;  %v3064_v28 = vadd.f32 %v3063_v43, %v3062_v39  ;;  %v3115_v4 = vmul.f32 %v2980_v31, %v2980_v31  ;;  %v3065_v22 = vsel %vm243_vm1, %v2978_v10, 0.0  ;;  %v3920_v53 = vpop.f32.mrf.mxu0 }
 0x20e   : > { %v2649_v25 = vadd.f32 %v2606_v37, %v5037_v52  ;;  %3013 = vst.msk [vmem:[%s4978_s23 + $0xd8] sm:$0xff] %vm243_vm1, %v2981_v6  ;;  %v2979_v47 = vadd.f32 %v4951_v21, %v2940_v3  ;;  %v2945_v12 = vadd.f32 %v3919_v48, %v2651_v55  ;;  %v3168_v62 = vsel %vm243_vm1, %v3113_v54, 0.0 }
 0x20f   : > { %v3886_v5 = vpop.f32.mrf.mxu1  ;;  %v3066_v58 = vadd.f32 %v3065_v22, %v3064_v28  ;;  %v3167_v29 = vadd.f32 %v3166_v59, %v3165_v18  ;;  %v3069_v23 = vsel %vm243_vm1, %v2980_v31, 0.0  ;;  %v3116_v26 = vmul.f32 %v2981_v6, %v2981_v6  ;;  %v2903_v16 = vpop.f32.mrf.mxu0 }
 0x210   : > { %v2943_v46 = vadd.f32 %v2900_v15, %v2649_v25  ;;  %v2652_v7 = vadd.f32 %v3886_v5, %v5043_v45  ;;  %3011 = vst.msk [vmem:[%s4978_s23 + $0xc8] sm:$0xff] %vm243_vm1, %v2979_v47  ;;  %v3067_v52 = vsel %vm243_vm1, %v2979_v47, 0.0  ;;  %v3114_v40 = vmul.f32 %v2979_v47, %v2979_v47 }
 0x211   : > { %v2984_v35 = vadd.f32 %v4951_v21, %v2945_v12  ;;  %v2609_v24 = vpop.f32.mrf.mxu1  ;;  %v3169_v34 = vadd.f32 %v3168_v62, %v3167_v29  ;;  %v3068_v11 = vadd.f32 %v3067_v52, %v3066_v58  ;;  %v3172_v13 = vsel %vm243_vm1, %v3115_v4, 0.0 }
 0x212   : > { %v2982_v9 = vadd.f32 %v4951_v21, %v2943_v46  ;;  %v2946_v60 = vadd.f32 %v3920_v53, %v2652_v7  ;;  %v3170_v45 = vsel %vm243_vm1, %v3114_v40, 0.0  ;;  %v2650_v49 = vadd.f32 %v2609_v24, %v2356_v42 }
 0x213   : > { %3016 = vst.msk [vmem:[%s4978_s23 + $0xf0] sm:$0xff] %vm243_vm1, %v2984_v35  ;;  %v3070_v8 = vadd.f32 %v3069_v23, %v3068_v11  ;;  %v3171_v41 = vadd.f32 %v3170_v45, %v3169_v34  ;;  %v3071_v20 = vsel %vm243_vm1, %v2981_v6, 0.0  ;;  %v3174_v50 = vsel %vm243_vm1, %v3116_v26, 0.0 }
 0x214   : > { %3014 = vst.msk [vmem:[%s4978_s23 + $0xe0] sm:$0xff] %vm243_vm1, %v2982_v9  ;;  %v3117_v0 = vmul.f32 %v2982_v9, %v2982_v9  ;;  %v2985_v14 = vadd.f32 %v4951_v21, %v2946_v60  ;;  %v2944_v17 = vadd.f32 %v2903_v16, %v2650_v49  ;;  %v3073_v44 = vsel %vm243_vm1, %v2982_v9, 0.0 }
 0x215   : > { %v3173_v61 = vadd.f32 %v3172_v13, %v3171_v41  ;;  %v3072_v36 = vadd.f32 %v3071_v20, %v3070_v8  ;;  %v3119_v1 = vmul.f32 %v2984_v35, %v2984_v35  ;;  %v3077_v32 = vsel %vm243_vm1, %v2984_v35, 0.0 }
 0x216   : > { %3017 = vst.msk [vmem:[%s4978_s23 + $0xf8] sm:$0xff] %vm243_vm1, %v2985_v14  ;;  %v2983_v33 = vadd.f32 %v4951_v21, %v2944_v17  ;;  %v3176_v48 = vsel %vm243_vm1, %v3117_v0, 0.0  ;;  %v3120_v2 = vmul.f32 %v2985_v14, %v2985_v14  ;;  %v3079_v38 = vsel %vm243_vm1, %v2985_v14, 0.0 }
 0x217   : > { %v3074_v51 = vadd.f32 %v3073_v44, %v3072_v36  ;;  %v3175_v31 = vadd.f32 %v3174_v50, %v3173_v61  ;;  %v3180_v21 = vsel %vm243_vm1, %v3119_v1, 0.0 }
 0x218   : > { %3015 = vst.msk [vmem:[%s4978_s23 + $0xe8] sm:$0xff] %vm243_vm1, %v2983_v33  ;;  %v3075_v19 = vsel %vm243_vm1, %v2983_v33, 0.0  ;;  %v3118_v56 = vmul.f32 %v2983_v33, %v2983_v33  ;;  %v3182_v57 = vsel %vm243_vm1, %v3120_v2, 0.0 }
 0x219   : > { %v3177_v10 = vadd.f32 %v3176_v48, %v3175_v31  ;;  %v3076_v30 = vadd.f32 %v3075_v19, %v3074_v51 }
 0x21a   : > { %v3178_v63 = vsel %vm243_vm1, %v3118_v56, 0.0 }
 0x21b   : > { %v3078_v27 = vadd.f32 %v3077_v32, %v3076_v30  ;;  %v3179_v42 = vadd.f32 %v3178_v63, %v3177_v10 }
 0x21d   : > { %v3080_v43 = vadd.f32 %v3079_v38, %v3078_v27  ;;  %v3181_v39 = vadd.f32 %v3180_v21, %v3179_v42 }
 0x21f   : > { %v3081_v15 = vrot.slane %v3080_v43, 4  ;;  %v3183_v54 = vadd.f32 %v3182_v57, %v3181_v39 }
 0x221   : > { %v3082_v6 = vadd.f32 %v3081_v15, %v3080_v43  ;;  %v3184_v3 = vrot.slane %v3183_v54, 4 }
 0x223   : > { %v3083_v55 = vrot.slane %v3082_v6, 2  ;;  %v3185_v37 = vadd.f32 %v3184_v3, %v3183_v54 }
 0x225   : > { %v3084_v59 = vadd.f32 %v3083_v55, %v3082_v6  ;;  %v3186_v18 = vrot.slane %v3185_v37, 2 }
 0x227   : > { %v3085_v28 = vrot.slane %v3084_v59, 1  ;;  %v3187_v25 = vadd.f32 %v3186_v18, %v3185_v37 }
 0x229   : > { %v3086_v4 = vadd.f32 %v3085_v28, %v3084_v59  ;;  %v3188_v22 = vrot.slane %v3187_v25, 1 }
 0x22b   : > { %3088 = vst.msk [vmem:[%s238_s26] sm:$0x1] %vm3087_vm3, %v3086_v4  ;;  %v3189_v47 = vadd.f32 %v3188_v22, %v3187_v25 }
 0x22d   : > { %3190 = vst.msk [vmem:[%s241_s29] sm:$0x1] %vm3087_vm3, %v3189_v47 }
 0x22e PF: > { %s16_s18 = sadd.s32 1, %s3948_s18  }
 0x22f   : > { %p13_p4 = scmp.ge.s32.totalorder %s16_s18, 4  }
 0x231   :  { %15 = sbr.rel (!%p13_p4) target bundleno = 1 (0x1), region = 96 }

// kernel: residual_block.4
= control target key start
LH: loop header
LB: loop body
LE: loop exit
PB: predicated region body
PF: predicated region fallthrough
CT: control target
= control target key end

     0   :  { %s4259_s29 = smov 0   ;;  %s5651_s0 = inlined_call_operand.vmem [shape: f32[2,16,16,4], index: 0, kind: input, shape index: {}]   ;;  %s5652_s1 = inlined_call_operand.vmem [shape: f32[1,4], index: 1, kind: input, shape index: {}]   ;;  %s5653_s2 = inlined_call_operand.vmem [shape: f32[1,4], index: 2, kind: input, shape index: {}]   ;;  %s5654_s3 = inlined_call_operand.<no memory space> [shape: f32[1,1], index: 3, kind: input, shape index: {}]   ;;  %s5655_s4 = inlined_call_operand.vmem [shape: bf16[9,4,4], index: 4, kind: input, shape index: {}]   ;;  %s5656_s5 = inlined_call_operand.vmem [shape: f32[1,4], index: 5, kind: input, shape index: {}]   ;;  %s5657_s6 = inlined_call_operand.vmem [shape: f32[2,16,16,4], index: 6, kind: output, shape index: {0}]   ;;  %s5658_s7 = inlined_call_operand.vmem [shape: f32[2,1,4], index: 7, kind: output, shape index: {1}]   ;;  %s5659_s8 = inlined_call_operand.vmem [shape: f32[2,1,4], index: 8, kind: output, shape index: {2}]  }
   0x1   :  { %14 = sst [smem:[#allocation3]] %s5654_s3 }
   0x2 LB: > { %s3554_s30 = sadd.s32 4294967295, %s4208_s29   ;;  %p3558_p0 = scmp.ge.s32.totalorder %s4208_s29, 1  ;;  %s4208_s29 = sphi %s4259_s29, %s20_s29  }
   0x3   : > { %p268_p1 = scmp.lt.s32.totalorder %s4208_s29, 3 }
   0x5   : > { %p269_p2 = pnand %p3558_p0, %p268_p1 }
   0x7   : > { %272 = sbr.rel (%p269_p2) target bundleno = 562 (0x232), region = 44 }
   0xc   : > { %v3565_v0 = vld [vmem:[%s5655_s4 + $0x2] sm:$0x3]  ;;  %vm769_vm0 = vcmask 1041408   ;;  %vm533_vm1 = vcmask 31744   ;;  %vm536_vm2 = vcmask 25600   ;;  %v4210_v2 = vmov 0.0  }
   0xd   : > { %4183 = vmatprep.subr.msk.bf16.mxu0 %vm769_vm0, %v3565_v0  ;;  %4184 = vmatprep.subr.msk.bf16.mxu1 %vm769_vm0, %v3565_v0  ;;  %v771_v1 = vsel %vm769_vm0, %v3565_v0, 0  ;;  %534 = vst.msk [vmem:[#allocation2] sm:$0xff] %vm533_vm1, %v4210_v2  ;;  %535 = vst.msk [vmem:[#allocation2 + $0x8] sm:$0xff] %vm533_vm1, %v4210_v2  ;;  %p308_p3 = scmp.lt.s32.totalorder %s3554_s30, 1  ;;  %s435_s3 = sld [smem:[#allocation3]] }
   0xe   : > { %537 = vst.msk [vmem:[#allocation2 + $0x10] sm:$0x3] %vm536_vm2, %v4210_v2  ;;  %540 = vst.msk [vmem:[#allocation2 + $0x28] sm:$0x3] %vm536_vm2, %v4210_v2  ;;  %3876 = vmatpush3.bf16.msra.mxu0 %v771_v1  ;;  %4182 = vmatpush3.bf16.msra.mxu1 %v771_v1  ;;  %v4332_v3 = vld [vmem:[%s5655_s4] sm:$0x3] }
   0xf   : > { %538 = vst.msk [vmem:[#allocation2 + $0x18] sm:$0xff] %vm533_vm1, %v4210_v2  ;;  %539 = vst.msk [vmem:[#allocation2 + $0x20] sm:$0xff] %vm533_vm1, %v4210_v2  ;;  %v3598_v4 = vld [vmem:[%s5655_s4 + $0x4] sm:$0x3]  ;;  %s5743_s30 = smov (!%p308_p3, %s3554_s30), 1  ;;  %4185 = vmatprep.subr.msk.bf16.mxu1 %vm769_vm0, %v4332_v3 }
  0x10   : > { %541 = vst.msk [vmem:[#allocation2 + $0x30] sm:$0xff] %vm533_vm1, %v4210_v2  ;;  %542 = vst.msk [vmem:[#allocation2 + $0x38] sm:$0xff] %vm533_vm1, %v4210_v2  ;;  %4186 = vmatprep.subr.msk.bf16.mxu0 %vm769_vm0, %v3598_v4  ;;  %s3720_s15 = sshll.u32 %s5743_s30, 8  ;;  %v4348_v5 = vld [vmem:[%s5652_s1] ss:$0 sm:$0xff]  ;;  %v4375_v21 = vsel %vm769_vm0, %v3598_v4, 0  ;;  %s320_s21 = scalar_lea.vmem %s5658_s7, %s5743_s30 }
  0x11   : > { %543 = vst.msk [vmem:[#allocation2 + $0x40] sm:$0x3] %vm536_vm2, %v4210_v2  ;;  %546 = vst.msk [vmem:[#allocation2 + $0x58] sm:$0x3] %vm536_vm2, %v4210_v2  ;;  %s4355_s20 = scalar_lea.vmem %s5651_s0, %s3720_s15  ;;  %v4360_v6 = vld [vmem:[%s5653_s2] ss:$0 sm:$0xff]  ;;  %s5373_s19 = scalar_lea.vmem %s5657_s6, %s3720_s15 }
  0x12   : > { %544 = vst.msk [vmem:[#allocation2 + $0x48] sm:$0xff] %vm533_vm1, %v4210_v2  ;;  %545 = vst.msk [vmem:[#allocation2 + $0x50] sm:$0xff] %vm533_vm1, %v4210_v2  ;;  %v327_v7 = vld [vmem:[%s4355_s20] sm:$0xff]  ;;  %v328_v8 = vld [vmem:[%s4355_s20 + $0x8] sm:$0xff]  ;;  %s323_s24 = scalar_lea.vmem %s5659_s8, %s5743_s30 }
  0x13   : > { %547 = vst.msk [vmem:[#allocation2 + $0x60] sm:$0xff] %vm533_vm1, %v4210_v2  ;;  %548 = vst.msk [vmem:[#allocation2 + $0x68] sm:$0xff] %vm533_vm1, %v4210_v2  ;;  %v341_v9 = vld [vmem:[%s4355_s20 + $0x70] sm:$0xff]  ;;  %v365_v12 = vmul.f32 %v4348_v5, %v327_v7  ;;  %v366_v13 = vmul.f32 %v4348_v5, %v328_v8  ;;  %v342_v14 = vld [vmem:[%s4355_s20 + $0x78] sm:$0xff]  ;;  %v4369_v17 = vstv %s435_s3 }
  0x14   : > { %549 = vst.msk [vmem:[#allocation2 + $0x70] sm:$0x3] %vm536_vm2, %v4210_v2  ;;  %552 = vst.msk [vmem:[#allocation2 + $0x88] sm:$0x3] %vm536_vm2, %v4210_v2  ;;  %v671_v10 = vld [vmem:[#allocation2 + $0x1] sm:$0xff]  ;;  %v379_v15 = vmul.f32 %v4348_v5, %v341_v9  ;;  %v380_v18 = vmul.f32 %v4348_v5, %v342_v14  ;;  %v329_v22 = vld [vmem:[%s4355_s20 + $0x10] sm:$0xff] }
  0x15   : > { %550 = vst.msk [vmem:[#allocation2 + $0x78] sm:$0xff] %vm533_vm1, %v4210_v2  ;;  %551 = vst.msk [vmem:[#allocation2 + $0x80] sm:$0xff] %vm533_vm1, %v4210_v2  ;;  %v672_v11 = vld [vmem:[#allocation2 + $0x9] sm:$0xff]  ;;  %v343_v19 = vld [vmem:[%s4355_s20 + $0x80] sm:$0xff]  ;;  %v403_v23 = vadd.f32 %v4360_v6, %v365_v12  ;;  %v404_v24 = vadd.f32 %v4360_v6, %v366_v13  ;;  %v367_v30 = vmul.f32 %v4348_v5, %v329_v22 }
  0x16   : > { %553 = vst.msk [vmem:[#allocation2 + $0x90] sm:$0xff] %vm533_vm1, %v4210_v2  ;;  %554 = vst.msk [vmem:[#allocation2 + $0x98] sm:$0xff] %vm533_vm1, %v4210_v2  ;;  %v703_v16 = vpack.c.bf16 %v672_v11, %v671_v10  ;;  %v344_v20 = vld [vmem:[%s4355_s20 + $0x88] sm:$0xff]  ;;  %v417_v25 = vadd.f32 %v4360_v6, %v379_v15  ;;  %v381_v26 = vmul.f32 %v4348_v5, %v343_v19  ;;  %v330_v27 = vld [vmem:[%s4355_s20 + $0x18] sm:$0xff] }
  0x17   : > { %555 = vst.msk [vmem:[#allocation2 + $0xa0] sm:$0x3] %vm536_vm2, %v4210_v2  ;;  %558 = vst.msk [vmem:[#allocation2 + $0xb8] sm:$0x3] %vm536_vm2, %v4210_v2  ;;  %v418_v28 = vadd.f32 %v4360_v6, %v380_v18  ;;  %v382_v29 = vmul.f32 %v4348_v5, %v344_v20  ;;  %v368_v31 = vmul.f32 %v4348_v5, %v330_v27  ;;  %vm436_vm3 = vcmp.gt.f32.partialorder %v403_v23, 0.0  ;;  %v331_v44 = vld [vmem:[%s4355_s20 + $0x20] sm:$0xff] }
  0x18   : > { %556 = vst.msk [vmem:[#allocation2 + $0xa8] sm:$0xff] %vm533_vm1, %v4210_v2  ;;  %557 = vst.msk [vmem:[#allocation2 + $0xb0] sm:$0xff] %vm533_vm1, %v4210_v2  ;;  %3877 = vmatprep.mubr.msk.bf16.mxu0 %vm533_vm1, %v703_v16  ;;  %vm437_vm4 = vcmp.gt.f32.partialorder %v404_v24, 0.0  ;;  %v469_v32 = vmul.f32 %v4369_v17, %v403_v23  ;;  %v470_v33 = vmul.f32 %v4369_v17, %v404_v24  ;;  %vm450_vm5 = vcmp.gt.f32.partialorder %v417_v25, 0.0  ;;  %v332_v45 = vld [vmem:[%s4355_s20 + $0x28] sm:$0xff]  ;;  %v345_v48 = vld [vmem:[%s4355_s20 + $0x90] sm:$0xff] }
  0x19   : > { %559 = vst.msk [vmem:[#allocation2 + $0xc0] sm:$0xff] %vm533_vm1, %v4210_v2  ;;  %560 = vst.msk [vmem:[#allocation2 + $0xc8] sm:$0xff] %vm533_vm1, %v4210_v2  ;;  %vm451_vm6 = vcmp.gt.f32.partialorder %v418_v28, 0.0  ;;  %v483_v34 = vmul.f32 %v4369_v17, %v417_v25  ;;  %v484_v35 = vmul.f32 %v4369_v17, %v418_v28  ;;  %v419_v38 = vadd.f32 %v4360_v6, %v381_v26  ;;  %v346_v49 = vld [vmem:[%s4355_s20 + $0x98] sm:$0xff]  ;;  %v347_v52 = vld [vmem:[%s4355_s20 + $0xa0] sm:$0xff] }
  0x1a   : > { %561 = vst.msk [vmem:[#allocation2 + $0xd0] sm:$0x3] %vm536_vm2, %v4210_v2  ;;  %564 = vst.msk [vmem:[#allocation2 + $0xe8] sm:$0x3] %vm536_vm2, %v4210_v2  ;;  %v501_v36 = vsel %vm436_vm3, %v403_v23, %v469_v32  ;;  %v502_v37 = vsel %vm437_vm4, %v404_v24, %v470_v33  ;;  %v420_v39 = vadd.f32 %v4360_v6, %v382_v29  ;;  %v348_v53 = vld [vmem:[%s4355_s20 + $0xa8] sm:$0xff]  ;;  %v333_v58 = vld [vmem:[%s4355_s20 + $0x30] sm:$0xff] }
  0x1b   : > { %562 = vst.msk [vmem:[#allocation2 + $0xd8] sm:$0xff] %vm533_vm1, %v4210_v2  ;;  %563 = vst.msk [vmem:[#allocation2 + $0xe0] sm:$0xff] %vm533_vm1, %v4210_v2  ;;  %v515_v40 = vsel %vm450_vm5, %v417_v25, %v483_v34  ;;  %v516_v41 = vsel %vm451_vm6, %v418_v28, %v484_v35  ;;  %v405_v42 = vadd.f32 %v4360_v6, %v367_v30  ;;  %vm452_vm7 = vcmp.gt.f32.partialorder %v419_v38, 0.0  ;;  %v334_v59 = vld [vmem:[%s4355_s20 + $0x38] sm:$0xff]  ;;  %v335_v20 = vld [vmem:[%s4355_s20 + $0x40] sm:$0xff] }
  0x1c   : > { %565 = vst.msk [vmem:[#allocation2 + $0xf0] sm:$0xff] %vm533_vm1, %v4210_v2  ;;  %566 = vst.msk [vmem:[#allocation2 + $0xf8] sm:$0xff] %vm533_vm1, %v4210_v2  ;;  %v406_v43 = vadd.f32 %v4360_v6, %v368_v31  ;;  %vm453_vm8 = vcmp.gt.f32.partialorder %v420_v39, 0.0  ;;  %v485_v46 = vmul.f32 %v4369_v17, %v419_v38  ;;  %v486_v47 = vmul.f32 %v4369_v17, %v420_v39  ;;  %v4440_v26 = vld [vmem:[%s5655_s4 + $0x8] sm:$0x3] }
  0x1d   : > { %567 = vst.msk [vmem:[#allocation2 + $0x100] sm:$0x3] %vm536_vm2, %v4210_v2  ;;  %570 = vst.msk [vmem:[#allocation2 + $0x118] sm:$0x3] %vm536_vm2, %v4210_v2  ;;  %vm438_vm9 = vcmp.gt.f32.partialorder %v405_v42, 0.0  ;;  %v471_v50 = vmul.f32 %v4369_v17, %v405_v42  ;;  %v369_v56 = vmul.f32 %v4348_v5, %v331_v44  ;;  %v370_v57 = vmul.f32 %v4348_v5, %v332_v45 }
  0x1e   : > { %568 = vst.msk [vmem:[#allocation2 + $0x108] sm:$0xff] %vm533_vm1, %v4210_v2  ;;  %569 = vst.msk [vmem:[#allocation2 + $0x110] sm:$0xff] %vm533_vm1, %v4210_v2  ;;  %vm439_vm10 = vcmp.gt.f32.partialorder %v406_v43, 0.0  ;;  %v472_v51 = vmul.f32 %v4369_v17, %v406_v43  ;;  %v517_v54 = vsel %vm452_vm7, %v419_v38, %v485_v46  ;;  %v518_v55 = vsel %vm453_vm8, %v420_v39, %v486_v47  ;;  %v4473_v44 = vld [vmem:[%s5655_s4 + $0x6] sm:$0x3] }
  0x1f   : > { %571 = vst.msk [vmem:[#allocation2 + $0x120] sm:$0xff] %vm533_vm1, %v4210_v2  ;;  %572 = vst.msk [vmem:[#allocation2 + $0x128] sm:$0xff] %vm533_vm1, %v4210_v2  ;;  %v503_v60 = vsel %vm438_vm9, %v405_v42, %v471_v50  ;;  %v383_v62 = vmul.f32 %v4348_v5, %v345_v48  ;;  %v384_v63 = vmul.f32 %v4348_v5, %v346_v49  ;;  %v983_v33 = vsel %vm769_vm0, %v4332_v3, 0  ;;  %v351_v49 = vld [vmem:[%s4355_s20 + $0xc0] sm:$0xff] }
  0x20   : > { %573 = vst.msk [vmem:[#allocation2 + $0x130] sm:$0x3] %vm536_vm2, %v4210_v2  ;;  %576 = vst.msk [vmem:[#allocation2 + $0x148] sm:$0x3] %vm536_vm2, %v4210_v2  ;;  %v504_v61 = vsel %vm439_vm10, %v406_v43, %v472_v51  ;;  %v407_v0 = vadd.f32 %v4360_v6, %v369_v56  ;;  %v408_v1 = vadd.f32 %v4360_v6, %v370_v57  ;;  %v350_v43 = vld [vmem:[%s4355_s20 + $0xb8] sm:$0xff]  ;;  %v352_v57 = vld [vmem:[%s4355_s20 + $0xc8] sm:$0xff] }
  0x21   : > { %574 = vst.msk [vmem:[#allocation2 + $0x138] sm:$0xff] %vm533_vm1, %v4210_v2  ;;  %575 = vst.msk [vmem:[#allocation2 + $0x140] sm:$0xff] %vm533_vm1, %v4210_v2  ;;  %v386_v4 = vmul.f32 %v4348_v5, %v348_v53  ;;  %v421_v7 = vadd.f32 %v4360_v6, %v383_v62  ;;  %v422_v8 = vadd.f32 %v4360_v6, %v384_v63 }
  0x22   : > { %577 = vst.msk [vmem:[#allocation2 + $0x150] sm:$0xff] %vm533_vm1, %v4210_v2  ;;  %578 = vst.msk [vmem:[#allocation2 + $0x158] sm:$0xff] %vm533_vm1, %v4210_v2  ;;  %v371_v9 = vmul.f32 %v4348_v5, %v333_v58  ;;  %v372_v10 = vmul.f32 %v4348_v5, %v334_v59  ;;  %vm440_vm11 = vcmp.gt.f32.partialorder %v407_v0, 0.0  ;;  %vm441_vm12 = vcmp.gt.f32.partialorder %v408_v1, 0.0 }
  0x23   : > { %579 = vst.msk [vmem:[#allocation2 + $0x160] sm:$0x3] %vm536_vm2, %v4210_v2  ;;  %582 = vst.msk [vmem:[#allocation2 + $0x178] sm:$0x3] %vm536_vm2, %v4210_v2  ;;  %v473_v13 = vmul.f32 %v4369_v17, %v407_v0  ;;  %v474_v14 = vmul.f32 %v4369_v17, %v408_v1  ;;  %vm454_vm13 = vcmp.gt.f32.partialorder %v421_v7, 0.0  ;;  %vm455_vm14 = vcmp.gt.f32.partialorder %v422_v8, 0.0 }
  0x24   : > { %580 = vst.msk [vmem:[#allocation2 + $0x168] sm:$0xff] %vm533_vm1, %v4210_v2  ;;  %581 = vst.msk [vmem:[#allocation2 + $0x170] sm:$0xff] %vm533_vm1, %v4210_v2  ;;  %v487_v19 = vmul.f32 %v4369_v17, %v421_v7  ;;  %v488_v25 = vmul.f32 %v4369_v17, %v422_v8  ;;  %v424_v29 = vadd.f32 %v4360_v6, %v386_v4  ;;  %v337_v4 = vld [vmem:[%s4355_s20 + $0x50] sm:$0xff] }
  0x25   : > { %583 = vst.msk [vmem:[#allocation2 + $0x180] sm:$0xff] %vm533_vm1, %v4210_v2  ;;  %584 = vst.msk [vmem:[#allocation2 + $0x188] sm:$0xff] %vm533_vm1, %v4210_v2  ;;  %v505_v23 = vsel %vm440_vm11, %v407_v0, %v473_v13  ;;  %v506_v24 = vsel %vm441_vm12, %v408_v1, %v474_v14  ;;  %v409_v30 = vadd.f32 %v4360_v6, %v371_v9  ;;  %v340_v13 = vld [vmem:[%s4355_s20 + $0x68] sm:$0xff] }
  0x26   : > { %585 = vst.msk [vmem:[#allocation2 + $0x190] sm:$0x3] %vm536_vm2, %v4210_v2  ;;  %588 = vst.msk [vmem:[#allocation2 + $0x1a8] sm:$0x3] %vm536_vm2, %v4210_v2  ;;  %v519_v27 = vsel %vm454_vm13, %v421_v7, %v487_v19  ;;  %v520_v34 = vsel %vm455_vm14, %v422_v8, %v488_v25  ;;  %v410_v35 = vadd.f32 %v4360_v6, %v372_v10  ;;  %vm457_vm2 = vcmp.gt.f32.partialorder %v424_v29, 0.0  ;;  %v338_v7 = vld [vmem:[%s4355_s20 + $0x58] sm:$0xff] }
  0x27   : > { %586 = vst.msk [vmem:[#allocation2 + $0x198] sm:$0xff] %vm533_vm1, %v4210_v2  ;;  %587 = vst.msk [vmem:[#allocation2 + $0x1a0] sm:$0xff] %vm533_vm1, %v4210_v2  ;;  %v385_v2 = vmul.f32 %v4348_v5, %v347_v52  ;;  %v490_v42 = vmul.f32 %v4369_v17, %v424_v29  ;;  %vm442_vm3 = vcmp.gt.f32.partialorder %v409_v30, 0.0  ;;  %v475_v46 = vmul.f32 %v4369_v17, %v409_v30 }
  0x28   : > { %590 = vst.msk [vmem:[#allocation2 + $0x19] sm:$0xff] %vm533_vm1, %v501_v36  ;;  %591 = vst.msk [vmem:[#allocation2 + $0x21] sm:$0xff] %vm533_vm1, %v502_v37  ;;  %v336_v36 = vld [vmem:[%s4355_s20 + $0x48] sm:$0xff]  ;;  %v373_v37 = vmul.f32 %v4348_v5, %v335_v20  ;;  %vm443_vm4 = vcmp.gt.f32.partialorder %v410_v35, 0.0  ;;  %v476_v47 = vmul.f32 %v4369_v17, %v410_v35  ;;  %v388_v56 = vmul.f32 %v4348_v5, %v350_v43 }
  0x29   : > { %604 = vst.msk [vmem:[#allocation2 + $0xc1] sm:$0xff] %vm533_vm1, %v515_v40  ;;  %605 = vst.msk [vmem:[#allocation2 + $0xc9] sm:$0xff] %vm533_vm1, %v516_v41  ;;  %v423_v28 = vadd.f32 %v4360_v6, %v385_v2  ;;  %v374_v48 = vmul.f32 %v4348_v5, %v336_v36  ;;  %v522_v50 = vsel %vm457_vm2, %v424_v29, %v490_v42 }
  0x2a   : > { %606 = vst.msk [vmem:[#allocation2 + $0xd9] sm:$0xff] %vm533_vm1, %v517_v54  ;;  %607 = vst.msk [vmem:[#allocation2 + $0xe1] sm:$0xff] %vm533_vm1, %v518_v55  ;;  %v411_v51 = vadd.f32 %v4360_v6, %v373_v37  ;;  %v507_v53 = vsel %vm442_vm3, %v409_v30, %v475_v46  ;;  %v508_v54 = vsel %vm443_vm4, %v410_v35, %v476_v47  ;;  %v354_v46 = vld [vmem:[%s4355_s20 + $0xd8] sm:$0xff] }
  0x2b   : > { %592 = vst.msk [vmem:[#allocation2 + $0x31] sm:$0xff] %vm533_vm1, %v503_v60  ;;  %593 = vst.msk [vmem:[#allocation2 + $0x39] sm:$0xff] %vm533_vm1, %v504_v61  ;;  %vm456_vm15 = vcmp.gt.f32.partialorder %v423_v28, 0.0  ;;  %v489_v3 = vmul.f32 %v4369_v17, %v423_v28  ;;  %v412_v55 = vadd.f32 %v4360_v6, %v374_v48  ;;  %v389_v62 = vmul.f32 %v4348_v5, %v351_v49  ;;  %v355_v49 = vld [vmem:[%s4355_s20 + $0xe0] sm:$0xff] }
  0x2c   : > { %594 = vst.msk [vmem:[#allocation2 + $0x49] sm:$0xff] %vm533_vm1, %v505_v23  ;;  %595 = vst.msk [vmem:[#allocation2 + $0x51] sm:$0xff] %vm533_vm1, %v506_v24  ;;  %vm444_vm5 = vcmp.gt.f32.partialorder %v411_v51, 0.0  ;;  %v477_v60 = vmul.f32 %v4369_v17, %v411_v51  ;;  %v426_v2 = vadd.f32 %v4360_v6, %v388_v56  ;;  %v375_v24 = vmul.f32 %v4348_v5, %v337_v4 }
  0x2d   : > { %608 = vst.msk [vmem:[#allocation2 + $0xf1] sm:$0xff] %vm533_vm1, %v519_v27  ;;  %609 = vst.msk [vmem:[#allocation2 + $0xf9] sm:$0xff] %vm533_vm1, %v520_v34  ;;  %v521_v45 = vsel %vm456_vm15, %v423_v28, %v489_v3  ;;  %vm445_vm6 = vcmp.gt.f32.partialorder %v412_v55, 0.0  ;;  %v478_v1 = vmul.f32 %v4369_v17, %v412_v55  ;;  %v427_v20 = vadd.f32 %v4360_v6, %v389_v62 }
  0x2e   : > { %610 = vst.msk [vmem:[#allocation2 + $0x109] sm:$0xff] %vm533_vm1, %v521_v45  ;;  %611 = vst.msk [vmem:[#allocation2 + $0x111] sm:$0xff] %vm533_vm1, %v522_v50  ;;  %v509_v9 = vsel %vm444_vm5, %v411_v51, %v477_v60  ;;  %vm459_vm8 = vcmp.gt.f32.partialorder %v426_v2, 0.0  ;;  %v376_v28 = vmul.f32 %v4348_v5, %v338_v7  ;;  %v378_v30 = vmul.f32 %v4348_v5, %v340_v13  ;;  %v353_v45 = vld [vmem:[%s4355_s20 + $0xd0] sm:$0xff] }
  0x2f   : > { %v673_v11 = vld [vmem:[#allocation2 + $0x19] sm:$0xff]  ;;  %v674_v12 = vld [vmem:[#allocation2 + $0x21] sm:$0xff]  ;;  %596 = vst.msk [vmem:[#allocation2 + $0x61] sm:$0xff] %vm533_vm1, %v507_v53  ;;  %597 = vst.msk [vmem:[#allocation2 + $0x69] sm:$0xff] %vm533_vm1, %v508_v54  ;;  %vm460_vm9 = vcmp.gt.f32.partialorder %v427_v20, 0.0  ;;  %v413_v37 = vadd.f32 %v4360_v6, %v375_v24 }
  0x30   : > { %v4430_v15 = vpack.c.bf16 %v674_v12, %v673_v11  ;;  %v687_v16 = vld [vmem:[#allocation2 + $0xc1] sm:$0xff]  ;;  %v688_v18 = vld [vmem:[#allocation2 + $0xc9] sm:$0xff]  ;;  %v390_v11 = vmul.f32 %v4348_v5, %v352_v57  ;;  %598 = vst.msk [vmem:[#allocation2 + $0x79] sm:$0xff] %vm533_vm1, %v509_v9  ;;  %v416_v43 = vadd.f32 %v4360_v6, %v378_v30  ;;  %v391_v57 = vmul.f32 %v4348_v5, %v353_v45 }
  0x31   : > { %v4434_v22 = vpack.c.bf16 %v688_v18, %v687_v16  ;;  %v689_v31 = vld [vmem:[#allocation2 + $0xd9] sm:$0xff]  ;;  %v690_v32 = vld [vmem:[#allocation2 + $0xe1] sm:$0xff]  ;;  %v510_v16 = vsel %vm445_vm6, %v412_v55, %v478_v1  ;;  %v492_v18 = vmul.f32 %v4369_v17, %v426_v2  ;;  %vm446_vm11 = vcmp.gt.f32.partialorder %v413_v37, 0.0 }
  0x32   : > { %3878 = vmatmul.mubr.msk.bf16.vlgmr.msra.gmra.mxu0 %vm533_vm1, %v4430_v15  ;;  %v4459_v38 = vpack.c.bf16 %v690_v32, %v689_v31  ;;  %v675_v39 = vld [vmem:[#allocation2 + $0x31] sm:$0xff]  ;;  %v676_v40 = vld [vmem:[#allocation2 + $0x39] sm:$0xff]  ;;  %599 = vst.msk [vmem:[#allocation2 + $0x81] sm:$0xff] %vm533_vm1, %v510_v16  ;;  %v428_v23 = vadd.f32 %v4360_v6, %v390_v11  ;;  %v493_v32 = vmul.f32 %v4369_v17, %v427_v20  ;;  %vm449_vm14 = vcmp.gt.f32.partialorder %v416_v43, 0.0  ;;  %v356_v53 = vld [vmem:[%s4355_s20 + $0xe8] sm:$0xff] }
  0x33   : > { %3893 = vmatprep.mubr.msk.bf16.mxu1 %vm533_vm1, %v4434_v22  ;;  %3944 = vmatpush3.bf16.msra.mxu0 %v4375_v21  ;;  %v349_v21 = vld [vmem:[%s4355_s20 + $0xb0] sm:$0xff]  ;;  %v4466_v41 = vpack.c.bf16 %v676_v40, %v675_v39  ;;  %v339_v12 = vld [vmem:[%s4355_s20 + $0x60] sm:$0xff]  ;;  %v524_v27 = vsel %vm459_vm8, %v426_v2, %v492_v18  ;;  %v414_v39 = vadd.f32 %v4360_v6, %v376_v28 }
  0x34   : > { %4188 = vmatprep.subr.msk.bf16.mxu0 %vm769_vm0, %v4440_v26  ;;  %3894 = vmatmul.mubr.msk.bf16.vlgmr.msra.gmra.mxu1 %vm533_vm1, %v4459_v38  ;;  %v387_v52 = vmul.f32 %v4348_v5, %v349_v21  ;;  %v677_v58 = vld [vmem:[#allocation2 + $0x49] sm:$0xff]  ;;  %v678_v59 = vld [vmem:[#allocation2 + $0x51] sm:$0xff]  ;;  %v692_v8 = vld [vmem:[#allocation2 + $0xf9] sm:$0xff]  ;;  %v377_v29 = vmul.f32 %v4348_v5, %v339_v12  ;;  %613 = vst.msk [vmem:[#allocation2 + $0x129] sm:$0xff] %vm533_vm1, %v524_v27  ;;  %vm461_vm10 = vcmp.gt.f32.partialorder %v428_v23, 0.0 }
  0x35   : > { %3910 = vmatpush3.bf16.msra.mxu1 %v983_v33  ;;  %3881 = vmatprep.mubr.msk.bf16.mxu0 %vm533_vm1, %v4466_v41  ;;  %v4500_v63 = vpack.c.bf16 %v678_v59, %v677_v58  ;;  %v691_v0 = vld [vmem:[#allocation2 + $0xf1] sm:$0xff]  ;;  %v693_v25 = vld [vmem:[#allocation2 + $0x109] sm:$0xff]  ;;  %v494_v33 = vmul.f32 %v4369_v17, %v428_v23  ;;  %v525_v21 = vsel %vm460_vm9, %v427_v20, %v493_v32  ;;  %vm447_vm12 = vcmp.gt.f32.partialorder %v414_v39, 0.0 }
  0x36   : > { %4187 = vmatprep.subr.msk.bf16.mxu1 %vm769_vm0, %v4473_v44  ;;  %v425_v61 = vadd.f32 %v4360_v6, %v387_v52  ;;  %v4512_v14 = vpack.c.bf16 %v692_v8, %v691_v0  ;;  %v694_v31 = vld [vmem:[#allocation2 + $0x111] sm:$0xff]  ;;  %v679_v35 = vld [vmem:[#allocation2 + $0x61] sm:$0xff]  ;;  %v680_v36 = vld [vmem:[#allocation2 + $0x69] sm:$0xff]  ;;  %v415_v40 = vadd.f32 %v4360_v6, %v377_v29  ;;  %614 = vst.msk [vmem:[#allocation2 + $0x139] sm:$0xff] %vm533_vm1, %v525_v21 }
  0x37   : > { %v4529_v34 = vpack.c.bf16 %v694_v31, %v693_v25  ;;  %v4534_v3 = vpack.c.bf16 %v680_v36, %v679_v35  ;;  %v526_v42 = vsel %vm461_vm10, %v428_v23, %v494_v33  ;;  %v479_v47 = vmul.f32 %v4369_v17, %v413_v37  ;;  %v681_v50 = vld [vmem:[#allocation2 + $0x79] sm:$0xff]  ;;  %v1146_v24 = vld [vmem:[#allocation2 + $0x2] sm:$0xff]  ;;  %v1147_v25 = vld [vmem:[#allocation2 + $0xa] sm:$0xff] }
  0x38   : > { %vm458_vm7 = vcmp.gt.f32.partialorder %v425_v61, 0.0  ;;  %v491_v10 = vmul.f32 %v4369_v17, %v425_v61  ;;  %3897 = vmatprep.mubr.msk.bf16.mxu1 %vm533_vm1, %v4512_v14  ;;  %615 = vst.msk [vmem:[#allocation2 + $0x141] sm:$0xff] %vm533_vm1, %v526_v42  ;;  %v480_v48 = vmul.f32 %v4369_v17, %v414_v39  ;;  %vm448_vm13 = vcmp.gt.f32.partialorder %v415_v40, 0.0  ;;  %v622_v21 = vld [vmem:[#allocation2] sm:$0xff] }
  0x39   : > { %v481_v51 = vmul.f32 %v4369_v17, %v415_v40  ;;  %v482_v52 = vmul.f32 %v4369_v17, %v416_v43  ;;  %v682_v54 = vld [vmem:[#allocation2 + $0x81] sm:$0xff]  ;;  %v511_v55 = vsel %vm446_vm11, %v413_v37, %v479_v47  ;;  %v392_v58 = vmul.f32 %v4348_v5, %v354_v46 }
  0x3a   : > { %3882 = vmatmul.mubr.msk.bf16.gmra.mxu0 %vm533_vm1, %v4500_v63  ;;  %v523_v19 = vsel %vm458_vm7, %v425_v61, %v491_v10  ;;  %v512_v56 = vsel %vm447_vm12, %v414_v39, %v480_v48  ;;  %v4553_v59 = vpack.c.bf16 %v682_v54, %v681_v50  ;;  %600 = vst.msk [vmem:[#allocation2 + $0x91] sm:$0xff] %vm533_vm1, %v511_v55  ;;  %v357_v39 = vld [vmem:[%s4355_s20 + $0xf0] sm:$0xff]  ;;  %v1148_v42 = vld [vmem:[#allocation2 + $0x1a] sm:$0xff]  ;;  %v623_v47 = vld [vmem:[#allocation2 + $0x8] sm:$0xff] }
  0x3b   : > { %612 = vst.msk [vmem:[#allocation2 + $0x121] sm:$0xff] %vm533_vm1, %v523_v19  ;;  %3885 = vmatprep.mubr.msk.bf16.mxu0 %vm533_vm1, %v4534_v3  ;;  %601 = vst.msk [vmem:[#allocation2 + $0x99] sm:$0xff] %vm533_vm1, %v512_v56  ;;  %v513_v61 = vsel %vm448_vm13, %v415_v40, %v481_v51  ;;  %v514_v62 = vsel %vm449_vm14, %v416_v43, %v482_v52  ;;  %v393_v0 = vmul.f32 %v4348_v5, %v355_v49  ;;  %v696_v1 = vld [vmem:[#allocation2 + $0x129] sm:$0xff]  ;;  %v358_v40 = vld [vmem:[%s4355_s20 + $0xf8] sm:$0xff] }
  0x3c   : > { %3898 = vmatmul.mubr.msk.bf16.gmra.mxu1 %vm533_vm1, %v4529_v34  ;;  %602 = vst.msk [vmem:[#allocation2 + $0xa9] sm:$0xff] %vm533_vm1, %v513_v61  ;;  %603 = vst.msk [vmem:[#allocation2 + $0xb1] sm:$0xff] %vm533_vm1, %v514_v62  ;;  %v429_v2 = vadd.f32 %v4360_v6, %v391_v57  ;;  %v430_v4 = vadd.f32 %v4360_v6, %v392_v58  ;;  %v394_v7 = vmul.f32 %v4348_v5, %v356_v53  ;;  %v1149_v43 = vld [vmem:[#allocation2 + $0x22] sm:$0xff]  ;;  %v1150_v52 = vld [vmem:[#allocation2 + $0x32] sm:$0xff] }
  0x3d   : > { %v431_v9 = vadd.f32 %v4360_v6, %v393_v0  ;;  %v697_v12 = vld [vmem:[#allocation2 + $0x139] sm:$0xff]  ;;  %v1178_v36 = vpack.c.bf16 %v1147_v25, %v1146_v24  ;;  %v395_v48 = vmul.f32 %v4348_v5, %v357_v39  ;;  %v396_v49 = vmul.f32 %v4348_v5, %v358_v40  ;;  %v4613_v62 = vld [vmem:[%s5655_s4 + $0xc] sm:$0x3]  ;;  %v4641_v24 = vld [vmem:[%s5655_s4 + $0xa] sm:$0x3] }
  0x3e   : > { %vm462_vm15 = vcmp.gt.f32.partialorder %v429_v2, 0.0  ;;  %vm463_vm2 = vcmp.gt.f32.partialorder %v430_v4, 0.0  ;;  %v495_v10 = vmul.f32 %v4369_v17, %v429_v2  ;;  %v496_v11 = vmul.f32 %v4369_v17, %v430_v4  ;;  %v1151_v53 = vld [vmem:[#allocation2 + $0x3a] sm:$0xff]  ;;  %v628_v25 = vld [vmem:[#allocation2 + $0x48] sm:$0xff] }
  0x3f   : > { %v698_v13 = vld [vmem:[#allocation2 + $0x141] sm:$0xff]  ;;  %v432_v16 = vadd.f32 %v4360_v6, %v394_v7  ;;  %vm464_vm3 = vcmp.gt.f32.partialorder %v431_v9, 0.0  ;;  %v497_v18 = vmul.f32 %v4369_v17, %v431_v9  ;;  %v4598_v54 = vpack.c.bf16 %v1149_v43, %v1148_v42 }
  0x40   : > { %v4574_v19 = vpack.c.bf16 %v698_v13, %v697_v12  ;;  %v527_v20 = vsel %vm462_vm15, %v429_v2, %v495_v10  ;;  %v528_v23 = vsel %vm463_vm2, %v430_v4, %v496_v11  ;;  %v433_v55 = vadd.f32 %v4360_v6, %v395_v48  ;;  %v1152_v2 = vld [vmem:[#allocation2 + $0x4a] sm:$0xff]  ;;  %v1153_v4 = vld [vmem:[#allocation2 + $0x52] sm:$0xff]  ;;  %v1154_v11 = vld [vmem:[#allocation2 + $0x62] sm:$0xff] }
  0x41   : > { %616 = vst.msk [vmem:[#allocation2 + $0x151] sm:$0xff] %vm533_vm1, %v527_v20  ;;  %617 = vst.msk [vmem:[#allocation2 + $0x159] sm:$0xff] %vm533_vm1, %v528_v23  ;;  %vm465_vm4 = vcmp.gt.f32.partialorder %v432_v16, 0.0  ;;  %v498_v27 = vmul.f32 %v4369_v17, %v432_v16  ;;  %v529_v28 = vsel %vm464_vm3, %v431_v9, %v497_v18  ;;  %v683_v29 = vld [vmem:[#allocation2 + $0x91] sm:$0xff]  ;;  %v434_v56 = vadd.f32 %v4360_v6, %v396_v49  ;;  %v1162_v42 = vld [vmem:[#allocation2 + $0xc2] sm:$0xff] }
  0x42   : > { %v695_v60 = vld [vmem:[#allocation2 + $0x121] sm:$0xff]  ;;  %3886 = vmatmul.mubr.msk.bf16.gmra.mxu0 %vm533_vm1, %v4553_v59  ;;  %v684_v30 = vld [vmem:[#allocation2 + $0x99] sm:$0xff]  ;;  %618 = vst.msk [vmem:[#allocation2 + $0x169] sm:$0xff] %vm533_vm1, %v529_v28  ;;  %v654_v58 = vpack.c.bf16 %v623_v47, %v622_v21  ;;  %v4608_v61 = vpack.c.bf16 %v1151_v53, %v1150_v52  ;;  %vm466_vm5 = vcmp.gt.f32.partialorder %v433_v55, 0.0  ;;  %v499_v6 = vmul.f32 %v4369_v17, %v433_v55  ;;  %v626_v10 = vld [vmem:[#allocation2 + $0x30] sm:$0xff] }
  0x43   : > { %v4565_v8 = vpack.c.bf16 %v696_v1, %v695_v60  ;;  %v4582_v31 = vpack.c.bf16 %v684_v30, %v683_v29  ;;  %v685_v32 = vld [vmem:[#allocation2 + $0xa9] sm:$0xff]  ;;  %v686_v33 = vld [vmem:[#allocation2 + $0xb1] sm:$0xff]  ;;  %v530_v35 = vsel %vm465_vm4, %v432_v16, %v498_v27  ;;  %v1833_v60 = vsel %vm769_vm0, %v4440_v26, 0  ;;  %v625_v1 = vld [vmem:[#allocation2 + $0x20] sm:$0xff] }
  0x44   : > { %v4584_v37 = vpack.c.bf16 %v686_v33, %v685_v32  ;;  %619 = vst.msk [vmem:[#allocation2 + $0x171] sm:$0xff] %vm533_vm1, %v530_v35  ;;  %vm467_vm6 = vcmp.gt.f32.partialorder %v434_v56, 0.0  ;;  %v500_v0 = vmul.f32 %v4369_v17, %v434_v56  ;;  %v624_v26 = vld [vmem:[#allocation2 + $0x18] sm:$0xff]  ;;  %v531_v7 = vsel %vm466_vm5, %v433_v55, %v499_v6  ;;  %v1155_v12 = vld [vmem:[#allocation2 + $0x6a] sm:$0xff]  ;;  %v1157_v29 = vld [vmem:[#allocation2 + $0x82] sm:$0xff] }
  0x45   : > { %3901 = vmatprep.mubr.msk.bf16.mxu1 %vm533_vm1, %v4565_v8  ;;  %3889 = vmatprep.mubr.msk.bf16.mxu0 %vm533_vm1, %v4582_v31  ;;  %v627_v17 = vld [vmem:[#allocation2 + $0x38] sm:$0xff]  ;;  %620 = vst.msk [vmem:[#allocation2 + $0x181] sm:$0xff] %vm533_vm1, %v531_v7  ;;  %v4628_v13 = vpack.c.bf16 %v625_v1, %v624_v26  ;;  %v4630_v16 = vpack.c.bf16 %v1153_v4, %v1152_v2  ;;  %v1539_v20 = vsel %vm769_vm0, %v4473_v44, 0  ;;  %v629_v27 = vld [vmem:[#allocation2 + $0x50] sm:$0xff]  ;;  %v630_v44 = vld [vmem:[#allocation2 + $0x60] sm:$0xff] }
  0x46   : > { %3902 = vmatmul.mubr.msk.bf16.gmra.mxu1 %vm533_vm1, %v4574_v19  ;;  %v532_v9 = vsel %vm467_vm6, %v434_v56, %v500_v0  ;;  %v4632_v18 = vpack.c.bf16 %v627_v17, %v626_v10  ;;  %v4636_v23 = vpack.c.bf16 %v1155_v12, %v1154_v11  ;;  %v1156_v28 = vld [vmem:[#allocation2 + $0x7a] sm:$0xff]  ;;  %v631_v30 = vld [vmem:[#allocation2 + $0x68] sm:$0xff]  ;;  %v1158_v32 = vld [vmem:[#allocation2 + $0x92] sm:$0xff]  ;;  %v4653_v35 = vpack.c.bf16 %v629_v27, %v628_v25 }
  0x47   : > { %621 = vst.msk [vmem:[#allocation2 + $0x189] sm:$0xff] %vm533_vm1, %v532_v9  ;;  %v1159_v33 = vld [vmem:[#allocation2 + $0x9a] sm:$0xff]  ;;  %v4657_v39 = vpack.c.bf16 %v631_v30, %v630_v44  ;;  %v634_v47 = vld [vmem:[#allocation2 + $0x90] sm:$0xff]  ;;  %v1165_v6 = vld [vmem:[#allocation2 + $0xe2] sm:$0xff] }
  0x48   : > { %v699_v45 = vld [vmem:[#allocation2 + $0x151] sm:$0xff]  ;;  %v700_v46 = vld [vmem:[#allocation2 + $0x159] sm:$0xff]  ;;  %v4659_v40 = vpack.c.bf16 %v1159_v33, %v1158_v32  ;;  %v639_v0 = vld [vmem:[#allocation2 + $0xc8] sm:$0xff] }
  0x49   : > { %v4596_v50 = vpack.c.bf16 %v700_v46, %v699_v45  ;;  %v701_v51 = vld [vmem:[#allocation2 + $0x169] sm:$0xff]  ;;  %v632_v21 = vld [vmem:[#allocation2 + $0x78] sm:$0xff]  ;;  %v633_v43 = vld [vmem:[#allocation2 + $0x80] sm:$0xff] }
  0x4a   : > { %3890 = vmatmul.mubr.msk.bf16.gmra.mxu0 %vm533_vm1, %v4584_v37  ;;  %v1160_v45 = vld [vmem:[#allocation2 + $0xaa] sm:$0xff]  ;;  %v1161_v46 = vld [vmem:[#allocation2 + $0xb2] sm:$0xff]  ;;  %v638_v56 = vld [vmem:[#allocation2 + $0xc0] sm:$0xff] }
  0x4b   : > { %3945 = vmatprep.mubr.msk.bf16.mxu0 %vm533_vm1, %v1178_v36  ;;  %3905 = vmatprep.mubr.msk.bf16.mxu1 %vm533_vm1, %v4596_v50  ;;  %v702_v57 = vld [vmem:[#allocation2 + $0x171] sm:$0xff]  ;;  %v4655_v36 = vpack.c.bf16 %v1157_v29, %v1156_v28  ;;  %v4671_v52 = vpack.c.bf16 %v1161_v46, %v1160_v45  ;;  %v1167_v1 = vld [vmem:[#allocation2 + $0xfa] sm:$0xff]  ;;  %v4689_v7 = vpack.c.bf16 %v639_v0, %v638_v56  ;;  %v1170_v27 = vld [vmem:[#allocation2 + $0x122] sm:$0xff] }
  0x4c   : > { %v4606_v5 = vpack.c.bf16 %v702_v57, %v701_v51  ;;  %v635_v48 = vld [vmem:[#allocation2 + $0x98] sm:$0xff]  ;;  %v1163_v49 = vld [vmem:[#allocation2 + $0xca] sm:$0xff]  ;;  %v4669_v51 = vpack.c.bf16 %v633_v43, %v632_v21  ;;  %v641_v17 = vld [vmem:[#allocation2 + $0xe0] sm:$0xff] }
  0x4d   : > { %v4673_v53 = vpack.c.bf16 %v635_v48, %v634_v47  ;;  %v4675_v55 = vpack.c.bf16 %v1163_v49, %v1162_v42  ;;  %v1164_v57 = vld [vmem:[#allocation2 + $0xda] sm:$0xff]  ;;  %v1166_v26 = vld [vmem:[#allocation2 + $0xf2] sm:$0xff]  ;;  %v1168_v12 = vld [vmem:[#allocation2 + $0x10a] sm:$0xff] }
  0x4e   : > { %3906 = vmatmul.mubr.msk.bf16.gmra.mxu1 %vm533_vm1, %v4606_v5  ;;  %v4687_v4 = vpack.c.bf16 %v1165_v6, %v1164_v57  ;;  %v4691_v9 = vpack.c.bf16 %v1167_v1, %v1166_v26  ;;  %v640_v10 = vld [vmem:[#allocation2 + $0xd8] sm:$0xff]  ;;  %v642_v11 = vld [vmem:[#allocation2 + $0xf0] sm:$0xff]  ;;  %v644_v33 = vld [vmem:[#allocation2 + $0x108] sm:$0xff] }
  0x4f   : > { %3911 = vmatprep.mubr.msk.bf16.mxu1 %vm533_vm1, %v654_v58  ;;  %v636_v58 = vld [vmem:[#allocation2 + $0xa8] sm:$0xff]  ;;  %v643_v25 = vld [vmem:[#allocation2 + $0xf8] sm:$0xff]  ;;  %v4701_v28 = vpack.c.bf16 %v641_v17, %v640_v10  ;;  %v645_v21 = vld [vmem:[#allocation2 + $0x110] sm:$0xff] }
  0x50   : > { %v1171_v44 = vld [vmem:[#allocation2 + $0x12a] sm:$0xff]  ;;  %v4705_v30 = vpack.c.bf16 %v643_v25, %v642_v11  ;;  %v646_v42 = vld [vmem:[#allocation2 + $0x120] sm:$0xff]  ;;  %v1174_v47 = vld [vmem:[#allocation2 + $0x152] sm:$0xff]  ;;  %v4717_v49 = vpack.c.bf16 %v645_v21, %v644_v33 }
  0x51   : > { %v4707_v32 = vpack.c.bf16 %v1171_v44, %v1170_v27  ;;  %v1172_v43 = vld [vmem:[#allocation2 + $0x13a] sm:$0xff]  ;;  %v1173_v45 = vld [vmem:[#allocation2 + $0x142] sm:$0xff]  ;;  %v1176_v0 = vld [vmem:[#allocation2 + $0x16a] sm:$0xff]  ;;  %v2422_v44 = vsel %vm769_vm0, %v4613_v62, 0 }
  0x52   : > { %3946 = vmatmul.mubr.msk.bf16.vlgmr.msra.gmra.mxu0 %vm533_vm1, %v4598_v54  ;;  %v647_v46 = vld [vmem:[#allocation2 + $0x128] sm:$0xff]  ;;  %v1175_v48 = vld [vmem:[#allocation2 + $0x15a] sm:$0xff]  ;;  %v4719_v56 = vpack.c.bf16 %v1173_v45, %v1172_v43  ;;  %v1177_v26 = vld [vmem:[#allocation2 + $0x172] sm:$0xff] }
  0x53   : > { %4012 = vmatpush3.bf16.msra.mxu0 %v1833_v60  ;;  %3949 = vmatprep.mubr.msk.bf16.mxu0 %vm533_vm1, %v4608_v61  ;;  %v637_v60 = vld [vmem:[#allocation2 + $0xb0] sm:$0xff]  ;;  %v4721_v57 = vpack.c.bf16 %v647_v46, %v646_v42  ;;  %v649_v6 = vld [vmem:[#allocation2 + $0x140] sm:$0xff]  ;;  %v651_v10 = vld [vmem:[#allocation2 + $0x158] sm:$0xff]  ;;  %v4735_v11 = vpack.c.bf16 %v1177_v26, %v1176_v0 }
  0x54   : > { %4190 = vmatprep.subr.msk.bf16.mxu0 %vm769_vm0, %v4613_v62  ;;  %v4685_v2 = vpack.c.bf16 %v637_v60, %v636_v58  ;;  %v4723_v58 = vpack.c.bf16 %v1175_v48, %v1174_v47  ;;  %v648_v60 = vld [vmem:[#allocation2 + $0x138] sm:$0xff]  ;;  %v650_v1 = vld [vmem:[#allocation2 + $0x150] sm:$0xff]  ;;  %v3683_v62 = vld [vmem:[%s5655_s4 + $0xe] sm:$0x3] }
  0x55   : > { %v4733_v17 = vpack.c.bf16 %v649_v6, %v648_v60  ;;  %v653_v25 = vld [vmem:[#allocation2 + $0x170] sm:$0xff]  ;;  %v2353_v21 = vld [vmem:[#allocation2 + $0x198] sm:$0xff]  ;;  %v2354_v42 = vld [vmem:[#allocation2 + $0x1a0] sm:$0xff] }
  0x56   : > { %3912 = vmatmul.mubr.msk.bf16.vlgmr.msra.gmra.mxu1 %vm533_vm1, %v4628_v13  ;;  %v3700_v33 = vld [vmem:[%s5655_s4 + $0x10] sm:$0x3]  ;;  %v2370_v46 = vpack.c.bf16 %v2354_v42, %v2353_v21  ;;  %v2058_v60 = vld [vmem:[#allocation2 + $0x182] sm:$0xff] }
  0x57   : > { %3978 = vmatpush3.bf16.msra.mxu1 %v1539_v20  ;;  %3915 = vmatprep.mubr.msk.bf16.mxu1 %vm533_vm1, %v4632_v18  ;;  %v1169_v20 = vld [vmem:[#allocation2 + $0x112] sm:$0xff]  ;;  %v2059_v6 = vld [vmem:[#allocation2 + $0x18a] sm:$0xff] }
  0x58   : > { %4189 = vmatprep.subr.msk.bf16.mxu1 %vm769_vm0, %v4641_v24  ;;  %v4703_v29 = vpack.c.bf16 %v1169_v20, %v1168_v12  ;;  %v4737_v12 = vpack.c.bf16 %v651_v10, %v650_v1  ;;  %v652_v20 = vld [vmem:[#allocation2 + $0x168] sm:$0xff]  ;;  %v2617_v26 = vld [vmem:[#allocation2 + $0x31] sm:$0xff]  ;;  %v2618_v1 = vld [vmem:[#allocation2 + $0x39] sm:$0xff] }
  0x59   : > { %v4747_v27 = vpack.c.bf16 %v653_v25, %v652_v20  ;;  %v2649_v20 = vpack.c.bf16 %v2618_v1, %v2617_v26  ;;  %v2625_v1 = vld [vmem:[#allocation2 + $0x91] sm:$0xff] }
  0x5a   : > { %3950 = vmatmul.mubr.msk.bf16.gmra.mxu0 %vm533_vm1, %v4630_v16 }
  0x5b   : > { %3953 = vmatprep.mubr.msk.bf16.mxu0 %vm533_vm1, %v4636_v23 }
  0x5e   : > { %3916 = vmatmul.mubr.msk.bf16.gmra.mxu1 %vm533_vm1, %v4653_v35 }
  0x5f   : > { %3919 = vmatprep.mubr.msk.bf16.mxu1 %vm533_vm1, %v4657_v39 }
  0x62   : > { %3954 = vmatmul.mubr.msk.bf16.gmra.mxu0 %vm533_vm1, %v4655_v36 }
  0x63   : > { %3957 = vmatprep.mubr.msk.bf16.mxu0 %vm533_vm1, %v4659_v40 }
  0x66   : > { %3920 = vmatmul.mubr.msk.bf16.gmra.mxu1 %vm533_vm1, %v4669_v51 }
  0x67   : > { %3923 = vmatprep.mubr.msk.bf16.mxu1 %vm533_vm1, %v4673_v53 }
  0x6a   : > { %3958 = vmatmul.mubr.msk.bf16.gmra.mxu0 %vm533_vm1, %v4671_v52 }
  0x6b   : > { %3961 = vmatprep.mubr.msk.bf16.mxu0 %vm533_vm1, %v4675_v55 }
  0x6e   : > { %3924 = vmatmul.mubr.msk.bf16.gmra.mxu1 %vm533_vm1, %v4685_v2 }
  0x6f   : > { %3927 = vmatprep.mubr.msk.bf16.mxu1 %vm533_vm1, %v4689_v7 }
  0x72   : > { %3962 = vmatmul.mubr.msk.bf16.gmra.mxu0 %vm533_vm1, %v4687_v4 }
  0x73   : > { %3965 = vmatprep.mubr.msk.bf16.mxu0 %vm533_vm1, %v4691_v9 }
  0x76   : > { %3928 = vmatmul.mubr.msk.bf16.gmra.mxu1 %vm533_vm1, %v4701_v28 }
  0x77   : > { %3931 = vmatprep.mubr.msk.bf16.mxu1 %vm533_vm1, %v4705_v30 }
  0x7a   : > { %3966 = vmatmul.mubr.msk.bf16.gmra.mxu0 %vm533_vm1, %v4703_v29 }
  0x7b   : > { %3969 = vmatprep.mubr.msk.bf16.mxu0 %vm533_vm1, %v4707_v32 }
  0x7e   : > { %3932 = vmatmul.mubr.msk.bf16.gmra.mxu1 %vm533_vm1, %v4717_v49 }
  0x7f   : > { %3935 = vmatprep.mubr.msk.bf16.mxu1 %vm533_vm1, %v4721_v57 }
  0x82   : > { %3970 = vmatmul.mubr.msk.bf16.gmra.mxu0 %vm533_vm1, %v4719_v56 }
  0x83   : > { %3973 = vmatprep.mubr.msk.bf16.mxu0 %vm533_vm1, %v4723_v58 }
  0x86   : > { %3936 = vmatmul.mubr.msk.bf16.gmra.mxu1 %vm533_vm1, %v4733_v17 }
  0x87   : > { %3939 = vmatprep.mubr.msk.bf16.mxu1 %vm533_vm1, %v4737_v12 }
  0x8a   : > { %3974 = vmatmul.mubr.msk.bf16.gmra.mxu0 %vm533_vm1, %v4735_v11 }
  0x8b   : > { %4013 = vmatprep.mubr.msk.bf16.mxu0 %vm533_vm1, %v4430_v15  ;;  %v2127_v15 = vsel %vm769_vm0, %v4641_v24, 0 }
  0x8e   : > { %3940 = vmatmul.mubr.msk.bf16.gmra.mxu1 %vm533_vm1, %v4747_v27 }
  0x8f   : > { %3979 = vmatprep.mubr.msk.bf16.mxu1 %vm533_vm1, %v4628_v13 }
  0x92   : > { %4014 = vmatmul.mubr.msk.bf16.vlgmr.msra.gmra.mxu0 %vm533_vm1, %v4466_v41 }
  0x93   : > { %4080 = vmatpush3.bf16.msra.mxu0 %v2422_v44  ;;  %4017 = vmatprep.mubr.msk.bf16.mxu0 %vm533_vm1, %v4500_v63  ;;  %v1470_v63 = vld [vmem:[#allocation2 + $0x180] sm:$0xff] }
  0x94   : > { %4192 = vmatprep.subr.msk.bf16.mxu0 %vm769_vm0, %v3700_v33 }
  0x96   : > { %3980 = vmatmul.mubr.msk.bf16.vlgmr.msra.gmra.mxu1 %vm533_vm1, %v4632_v18 }
  0x97   : > { %4046 = vmatpush3.bf16.msra.mxu1 %v2127_v15  ;;  %3983 = vmatprep.mubr.msk.bf16.mxu1 %vm533_vm1, %v4653_v35 }
  0x98   : > { %4191 = vmatprep.subr.msk.bf16.mxu1 %vm769_vm0, %v3683_v62 }
  0x9a   : > { %4018 = vmatmul.mubr.msk.bf16.gmra.mxu0 %vm533_vm1, %v4534_v3  ;;  %v3010_v3 = vsel %vm769_vm0, %v3700_v33, 0  ;;  %v2620_v33 = vld [vmem:[#allocation2 + $0x51] sm:$0xff] }
  0x9b   : > { %4021 = vmatprep.mubr.msk.bf16.mxu0 %vm533_vm1, %v4553_v59  ;;  %v2716_v59 = vsel %vm769_vm0, %v3683_v62, 0  ;;  %vm3345_vm0 = vcmask 24576  }
  0x9e   : > { %3984 = vmatmul.mubr.msk.bf16.gmra.mxu1 %vm533_vm1, %v4657_v39 }
  0x9f   : > { %3987 = vmatprep.mubr.msk.bf16.mxu1 %vm533_vm1, %v4669_v51 }
  0xa2   : > { %4022 = vmatmul.mubr.msk.bf16.gmra.mxu0 %vm533_vm1, %v4582_v31 }
  0xa3   : > { %4025 = vmatprep.mubr.msk.bf16.mxu0 %vm533_vm1, %v4584_v37 }
  0xa6   : > { %3988 = vmatmul.mubr.msk.bf16.gmra.mxu1 %vm533_vm1, %v4673_v53 }
  0xa7   : > { %3991 = vmatprep.mubr.msk.bf16.mxu1 %vm533_vm1, %v4685_v2 }
  0xaa   : > { %4026 = vmatmul.mubr.msk.bf16.gmra.mxu0 %vm533_vm1, %v4434_v22  ;;  %v1764_v22 = vld [vmem:[#allocation2 + $0x181] sm:$0xff] }
  0xab   : > { %4029 = vmatprep.mubr.msk.bf16.mxu0 %vm533_vm1, %v4459_v38  ;;  %v1765_v38 = vld [vmem:[#allocation2 + $0x189] sm:$0xff] }
  0xac   : > { %v4817_v41 = vpack.c.bf16 %v1765_v38, %v1764_v22  ;;  %v2621_v22 = vld [vmem:[#allocation2 + $0x61] sm:$0xff]  ;;  %v2622_v38 = vld [vmem:[#allocation2 + $0x69] sm:$0xff] }
  0xae   : > { %3992 = vmatmul.mubr.msk.bf16.gmra.mxu1 %vm533_vm1, %v4689_v7 }
  0xaf   : > { %3995 = vmatprep.mubr.msk.bf16.mxu1 %vm533_vm1, %v4701_v28 }
  0xb2   : > { %4030 = vmatmul.mubr.msk.bf16.gmra.mxu0 %vm533_vm1, %v4512_v14  ;;  %v1471_v14 = vld [vmem:[#allocation2 + $0x188] sm:$0xff] }
  0xb3   : > { %4033 = vmatprep.mubr.msk.bf16.mxu0 %vm533_vm1, %v4529_v34  ;;  %v1487_v34 = vpack.c.bf16 %v1471_v14, %v1470_v63 }
  0xb6   : > { %3996 = vmatmul.mubr.msk.bf16.gmra.mxu1 %vm533_vm1, %v4705_v30 }
  0xb7   : > { %3999 = vmatprep.mubr.msk.bf16.mxu1 %vm533_vm1, %v4717_v49 }
  0xba   : > { %4034 = vmatmul.mubr.msk.bf16.gmra.mxu0 %vm533_vm1, %v4565_v8 }
  0xbb   : > { %4037 = vmatprep.mubr.msk.bf16.mxu0 %vm533_vm1, %v4574_v19 }
  0xbe   : > { %4000 = vmatmul.mubr.msk.bf16.gmra.mxu1 %vm533_vm1, %v4721_v57 }
  0xbf   : > { %4003 = vmatprep.mubr.msk.bf16.mxu1 %vm533_vm1, %v4733_v17 }
  0xc2   : > { %4038 = vmatmul.mubr.msk.bf16.gmra.mxu0 %vm533_vm1, %v4596_v50 }
  0xc3   : > { %4041 = vmatprep.mubr.msk.bf16.mxu0 %vm533_vm1, %v4606_v5 }
  0xc6   : > { %4004 = vmatmul.mubr.msk.bf16.gmra.mxu1 %vm533_vm1, %v4737_v12 }
  0xc7   : > { %4007 = vmatprep.mubr.msk.bf16.mxu1 %vm533_vm1, %v4747_v27 }
  0xca   : > { %4042 = vmatmul.mubr.msk.bf16.gmra.mxu0 %vm533_vm1, %v4817_v41 }
  0xcb   : > { %4081 = vmatprep.mubr.msk.bf16.mxu0 %vm533_vm1, %v4632_v18 }
  0xce   : > { %4008 = vmatmul.mubr.msk.bf16.gmra.mxu1 %vm533_vm1, %v1487_v34 }
  0xcf   : > { %4047 = vmatprep.mubr.msk.bf16.mxu1 %vm533_vm1, %v4598_v54 }
  0xd2   : > { %4082 = vmatmul.mubr.msk.bf16.vlgmr.msra.gmra.mxu0 %vm533_vm1, %v4653_v35 }
  0xd3   : > { %4148 = vmatpush3.bf16.msra.mxu0 %v3010_v3  ;;  %4085 = vmatprep.mubr.msk.bf16.mxu0 %vm533_vm1, %v4657_v39  ;;  %v2651_v3 = vpack.c.bf16 %v2622_v38, %v2621_v22 }
  0xd6   : > { %4048 = vmatmul.mubr.msk.bf16.vlgmr.msra.gmra.mxu1 %vm533_vm1, %v4608_v61 }
  0xd7   : > { %4114 = vmatpush3.bf16.msra.mxu1 %v2716_v59  ;;  %4051 = vmatprep.mubr.msk.bf16.mxu1 %vm533_vm1, %v4630_v16 }
  0xda   : > { %4086 = vmatmul.mubr.msk.bf16.gmra.mxu0 %vm533_vm1, %v4669_v51 }
  0xdb   : > { %4089 = vmatprep.mubr.msk.bf16.mxu0 %vm533_vm1, %v4673_v53 }
  0xde   : > { %4052 = vmatmul.mubr.msk.bf16.gmra.mxu1 %vm533_vm1, %v4636_v23 }
  0xdf   : > { %4055 = vmatprep.mubr.msk.bf16.mxu1 %vm533_vm1, %v4655_v36 }
  0xe2   : > { %4090 = vmatmul.mubr.msk.bf16.gmra.mxu0 %vm533_vm1, %v4685_v2 }
  0xe3   : > { %4093 = vmatprep.mubr.msk.bf16.mxu0 %vm533_vm1, %v4689_v7 }
  0xe6   : > { %4056 = vmatmul.mubr.msk.bf16.gmra.mxu1 %vm533_vm1, %v4659_v40 }
  0xe7   : > { %4059 = vmatprep.mubr.msk.bf16.mxu1 %vm533_vm1, %v4671_v52 }
  0xea   : > { %4094 = vmatmul.mubr.msk.bf16.gmra.mxu0 %vm533_vm1, %v4701_v28 }
  0xeb   : > { %4097 = vmatprep.mubr.msk.bf16.mxu0 %vm533_vm1, %v4705_v30 }
  0xee   : > { %4060 = vmatmul.mubr.msk.bf16.gmra.mxu1 %vm533_vm1, %v4675_v55 }
  0xef   : > { %4063 = vmatprep.mubr.msk.bf16.mxu1 %vm533_vm1, %v4687_v4 }
  0xf2   : > { %v4860_v8 = vpop.f32.mrf.mxu0  ;;  %4098 = vmatmul.mubr.msk.bf16.gmra.mxu0 %vm533_vm1, %v4717_v49 }
  0xf3   : > { %4101 = vmatprep.mubr.msk.bf16.mxu0 %vm533_vm1, %v4721_v57 }
  0xf4   : > { %v4862_v19 = vpop.f32.mrf.mxu0  ;;  %v4864_v31 = vpop.f32.mrf.mxu1 }
  0xf6   : > { %v4866_v37 = vpop.f32.mrf.mxu0  ;;  %v4872_v50 = vpop.f32.mrf.mxu1  ;;  %4064 = vmatmul.mubr.msk.bf16.gmra.mxu1 %vm533_vm1, %v4691_v9 }
  0xf7   : > { %4067 = vmatprep.mubr.msk.bf16.mxu1 %vm533_vm1, %v4703_v29 }
  0xf8   : > { %v4874_v54 = vpop.f32.mrf.mxu0  ;;  %v4880_v5 = vpop.f32.mrf.mxu1 }
  0xfa   : > { %v4882_v13 = vpop.f32.mrf.mxu0  ;;  %v4884_v18 = vpop.f32.mrf.mxu1  ;;  %4102 = vmatmul.mubr.msk.bf16.gmra.mxu0 %vm533_vm1, %v4733_v17  ;;  %v4942_v17 = vpack.c.bf16 %v2059_v6, %v2058_v60  ;;  %v2624_v60 = vld [vmem:[#allocation2 + $0x81] sm:$0xff] }
  0xfb   : > { %4105 = vmatprep.mubr.msk.bf16.mxu0 %vm533_vm1, %v4737_v12 }
  0xfc   : > { %v4886_v24 = vpop.f32.mrf.mxu0  ;;  %v4898_v39 = vpop.f32.mrf.mxu1 }
  0xfe   : > { %v4892_v35 = vpop.f32.mrf.mxu0  ;;  %v4902_v53 = vpop.f32.mrf.mxu1  ;;  %4068 = vmatmul.mubr.msk.bf16.gmra.mxu1 %vm533_vm1, %v4707_v32 }
  0xff   : > { %4071 = vmatprep.mubr.msk.bf16.mxu1 %vm533_vm1, %v4719_v56 }
 0x100   : > { %v4900_v51 = vpop.f32.mrf.mxu0  ;;  %v4904_v2 = vpop.f32.mrf.mxu1 }
 0x102   : > { %v4906_v7 = vpop.f32.mrf.mxu0  ;;  %v4910_v28 = vpop.f32.mrf.mxu1  ;;  %4106 = vmatmul.mubr.msk.bf16.gmra.mxu0 %vm533_vm1, %v4747_v27 }
 0x103   : > { %4109 = vmatprep.mubr.msk.bf16.mxu0 %vm533_vm1, %v1487_v34 }
 0x104   : > { %v4916_v30 = vpop.f32.mrf.mxu0 }
 0x106   : > { %v4919_v43 = vpop.f32.mrf.mxu0  ;;  %v4921_v45 = vpop.f32.mrf.mxu1  ;;  %4072 = vmatmul.mubr.msk.bf16.gmra.mxu1 %vm533_vm1, %v4723_v58 }
 0x107   : > { %4075 = vmatprep.mubr.msk.bf16.mxu1 %vm533_vm1, %v4735_v11 }
 0x108   : > { %v4923_v47 = vpop.f32.mrf.mxu0  ;;  %v4925_v48 = vpop.f32.mrf.mxu1 }
 0x10a   : > { %v4929_v49 = vpop.f32.mrf.mxu1  ;;  %v4931_v57 = vpop.f32.mrf.mxu0  ;;  %4110 = vmatmul.mubr.msk.bf16.gmra.mxu0 %vm533_vm1, %v2370_v46  ;;  %v2623_v46 = vld [vmem:[#allocation2 + $0x79] sm:$0xff] }
 0x10b   : > { %4149 = vmatprep.mubr.msk.bf16.mxu0 %vm533_vm1, %v4608_v61  ;;  %v2619_v61 = vld [vmem:[#allocation2 + $0x49] sm:$0xff]  ;;  %v2652_v38 = vpack.c.bf16 %v2624_v60, %v2623_v46  ;;  %v2629_v46 = vld [vmem:[#allocation2 + $0xc1] sm:$0xff] }
 0x10c   : > { %v4938_v0 = vpop.f32.mrf.mxu0  ;;  %v4940_v10 = vpop.f32.mrf.mxu1  ;;  %v2650_v14 = vpack.c.bf16 %v2620_v33, %v2619_v61  ;;  %v2630_v60 = vld [vmem:[#allocation2 + $0xc9] sm:$0xff] }
 0x10e   : > { %v4944_v12 = vpop.f32.mrf.mxu0  ;;  %v4948_v27 = vpop.f32.mrf.mxu1  ;;  %4076 = vmatmul.mubr.msk.bf16.gmra.mxu1 %vm533_vm1, %v4942_v17 }
 0x10f   : > { %4115 = vmatprep.mubr.msk.bf16.mxu1 %vm533_vm1, %v2649_v20  ;;  %v2626_v20 = vld [vmem:[#allocation2 + $0x99] sm:$0xff] }
 0x110   : > { %v4946_v25 = vpop.f32.mrf.mxu0  ;;  %v4957_v15 = vpop.f32.mrf.mxu1 }
 0x111   : > { %5660 = vst [vmem:[#allocation4_spill] sm:$0xff] %v4957_v15 }
 0x112   : > { %v3947_v44 = vpop.f32.mrf.mxu0  ;;  %4150 = vmatmul.mubr.msk.bf16.vlgmr.msra.gmra.mxu0 %vm533_vm1, %v4630_v16  ;;  %v4959_v63 = vpop.f32.mrf.mxu1 }
 0x113   : > { %4153 = vmatprep.mubr.msk.bf16.mxu0 %vm533_vm1, %v4636_v23  ;;  %5661 = vst [vmem:[#allocation5_spill] sm:$0xff] %v4959_v63 }
 0x114   : > { %v1281_v62 = vpop.f32.mrf.mxu0  ;;  %v4961_v59 = vpop.f32.mrf.mxu1 }
 0x115   : > { %5662 = vst [vmem:[#allocation6_spill] sm:$0xff] %v4961_v59 }
 0x116   : > { %v3948_v34 = vpop.f32.mrf.mxu0  ;;  %v3913_v21 = vpop.f32.mrf.mxu1  ;;  %4116 = vmatmul.mubr.msk.bf16.vlgmr.msra.gmra.mxu1 %vm533_vm1, %v2650_v14  ;;  %v2653_v14 = vpack.c.bf16 %v2626_v20, %v2625_v1 }
 0x117   : > { %v1028_v23 = vadd.f32 %v3913_v21, %v4860_v8  ;;  %4119 = vmatprep.mubr.msk.bf16.mxu1 %vm533_vm1, %v2651_v3 }
 0x118   : > { %v1284_v16 = vpop.f32.mrf.mxu0  ;;  %v1019_v6 = vpop.f32.mrf.mxu1 }
 0x119   : > { %v1020_v61 = vadd.f32 %v1019_v6, %v4862_v19  ;;  %v4971_v33 = vadd.f32 %v3947_v44, %v1028_v23 }
 0x11a   : > { %v3951_v42 = vpop.f32.mrf.mxu0  ;;  %4154 = vmatmul.mubr.msk.bf16.gmra.mxu0 %vm533_vm1, %v4655_v36  ;;  %v3914_v22 = vpop.f32.mrf.mxu1 }
 0x11b   : > { %4157 = vmatprep.mubr.msk.bf16.mxu0 %vm533_vm1, %v4659_v40  ;;  %v1031_v8 = vadd.f32 %v3914_v22, %v4866_v37  ;;  %v4974_v3 = vadd.f32 %v1281_v62, %v1020_v61  ;;  %v2627_v37 = vld [vmem:[#allocation2 + $0xa9] sm:$0xff]  ;;  %v2628_v62 = vld [vmem:[#allocation2 + $0xb1] sm:$0xff]  ;;  %v2655_v61 = vpack.c.bf16 %v2630_v60, %v2629_v46 }
 0x11c   : > { %v1297_v26 = vpop.f32.mrf.mxu0  ;;  %v1022_v21 = vpop.f32.mrf.mxu1  ;;  %v2654_v20 = vpack.c.bf16 %v2628_v62, %v2627_v37 }
 0x11d   : > { %v1023_v40 = vadd.f32 %v1022_v21, %v4874_v54  ;;  %v4977_v63 = vadd.f32 %v3948_v34, %v1031_v8 }
 0x11e   : > { %v3952_v36 = vpop.f32.mrf.mxu0  ;;  %v3917_v15 = vpop.f32.mrf.mxu1  ;;  %4120 = vmatmul.mubr.msk.bf16.gmra.mxu1 %vm533_vm1, %v2652_v38 }
 0x11f   : > { %v1044_v44 = vadd.f32 %v3917_v15, %v4882_v13  ;;  %4123 = vmatprep.mubr.msk.bf16.mxu1 %vm533_vm1, %v2653_v14  ;;  %v4986_v23 = vadd.f32 %v1284_v16, %v1023_v40  ;;  %v2633_v40 = vld [vmem:[#allocation2 + $0xf1] sm:$0xff] }
 0x120   : > { %v1300_v59 = vpop.f32.mrf.mxu0  ;;  %v1035_v54 = vpop.f32.mrf.mxu1 }
 0x121   : > { %v1036_v6 = vadd.f32 %v1035_v54, %v4886_v24  ;;  %v4989_v1 = vadd.f32 %v3951_v42, %v1044_v44  ;;  %v2634_v44 = vld [vmem:[#allocation2 + $0xf9] sm:$0xff] }
 0x122   : > { %v3955_v19 = vpop.f32.mrf.mxu0  ;;  %4158 = vmatmul.mubr.msk.bf16.gmra.mxu0 %vm533_vm1, %v4671_v52  ;;  %v3918_v52 = vpop.f32.mrf.mxu1  ;;  %v2657_v60 = vpack.c.bf16 %v2634_v44, %v2633_v40 }
 0x123   : > { %4161 = vmatprep.mubr.msk.bf16.mxu0 %vm533_vm1, %v4675_v55  ;;  %v1047_v15 = vadd.f32 %v3918_v52, %v4892_v35  ;;  %v4992_v22 = vadd.f32 %v1297_v26, %v1036_v6  ;;  %v2631_v35 = vld [vmem:[#allocation2 + $0xd9] sm:$0xff]  ;;  %v2632_v26 = vld [vmem:[#allocation2 + $0xe1] sm:$0xff] }
 0x124   : > { %v1313_v34 = vpop.f32.mrf.mxu0  ;;  %v1038_v38 = vpop.f32.mrf.mxu1  ;;  %v2656_v54 = vpack.c.bf16 %v2632_v26, %v2631_v35 }
 0x125   : > { %v1039_v16 = vadd.f32 %v1038_v38, %v4900_v51  ;;  %v4995_v8 = vadd.f32 %v3952_v36, %v1047_v15  ;;  %v2637_v38 = vld [vmem:[#allocation2 + $0x121] sm:$0xff] }
 0x126   : > { %v3956_v13 = vpop.f32.mrf.mxu0  ;;  %v3921_v14 = vpop.f32.mrf.mxu1  ;;  %4124 = vmatmul.mubr.msk.bf16.gmra.mxu1 %vm533_vm1, %v2654_v20 }
 0x127   : > { %v1060_v42 = vadd.f32 %v3921_v14, %v4906_v7  ;;  %4127 = vmatprep.mubr.msk.bf16.mxu1 %vm533_vm1, %v2655_v61  ;;  %v5004_v21 = vadd.f32 %v1300_v59, %v1039_v16  ;;  %v2638_v16 = vld [vmem:[#allocation2 + $0x129] sm:$0xff] }
 0x128   : > { %v1316_v55 = vpop.f32.mrf.mxu0  ;;  %v1051_v51 = vpop.f32.mrf.mxu1 }
 0x129   : > { %v1052_v37 = vadd.f32 %v1051_v51, %v4916_v30  ;;  %v5007_v62 = vadd.f32 %v3955_v19, %v1060_v42  ;;  %v2659_v51 = vpack.c.bf16 %v2638_v16, %v2637_v38 }
 0x12a   : > { %v3959_v24 = vpop.f32.mrf.mxu0  ;;  %4162 = vmatmul.mubr.msk.bf16.gmra.mxu0 %vm533_vm1, %v4687_v4  ;;  %v3922_v4 = vpop.f32.mrf.mxu1 }
 0x12b   : > { %4165 = vmatprep.mubr.msk.bf16.mxu0 %vm533_vm1, %v4691_v9  ;;  %v1063_v46 = vadd.f32 %v3922_v4, %v4919_v43  ;;  %v5010_v6 = vadd.f32 %v1313_v34, %v1052_v37  ;;  %v2635_v43 = vld [vmem:[#allocation2 + $0x109] sm:$0xff]  ;;  %v2636_v34 = vld [vmem:[#allocation2 + $0x111] sm:$0xff] }
 0x12c   : > { %v1329_v36 = vpop.f32.mrf.mxu0  ;;  %v1054_v52 = vpop.f32.mrf.mxu1  ;;  %v2658_v35 = vpack.c.bf16 %v2636_v34, %v2635_v43 }
 0x12d   : > { %v1055_v59 = vadd.f32 %v1054_v52, %v4923_v47  ;;  %v5013_v20 = vadd.f32 %v3956_v13, %v1063_v46  ;;  %v2641_v46 = vld [vmem:[#allocation2 + $0x151] sm:$0xff] }
 0x12e   : > { %v3960_v7 = vpop.f32.mrf.mxu0  ;;  %v3925_v15 = vpop.f32.mrf.mxu1  ;;  %4128 = vmatmul.mubr.msk.bf16.gmra.mxu1 %vm533_vm1, %v2656_v54 }
 0x12f   : > { %v1076_v19 = vadd.f32 %v3925_v15, %v4931_v57  ;;  %4131 = vmatprep.mubr.msk.bf16.mxu1 %vm533_vm1, %v2657_v60  ;;  %v5022_v61 = vadd.f32 %v1316_v55, %v1055_v59  ;;  %v2642_v60 = vld [vmem:[#allocation2 + $0x159] sm:$0xff] }
 0x130   : > { %v1332_v9 = vpop.f32.mrf.mxu0  ;;  %v1067_v47 = vpop.f32.mrf.mxu1  ;;  %v2661_v43 = vpack.c.bf16 %v2642_v60, %v2641_v46 }
 0x131   : > { %v1068_v14 = vadd.f32 %v1067_v47, %v4938_v0  ;;  %v5025_v42 = vadd.f32 %v3959_v24, %v1076_v19 }
 0x132   : > { %v3963_v30 = vpop.f32.mrf.mxu0  ;;  %4166 = vmatmul.mubr.msk.bf16.gmra.mxu0 %vm533_vm1, %v4703_v29  ;;  %v3926_v29 = vpop.f32.mrf.mxu1 }
 0x133   : > { %4169 = vmatprep.mubr.msk.bf16.mxu0 %vm533_vm1, %v4707_v32  ;;  %v1079_v26 = vadd.f32 %v3926_v29, %v4944_v12  ;;  %v5028_v40 = vadd.f32 %v1329_v36, %v1068_v14  ;;  %v2639_v12 = vld [vmem:[#allocation2 + $0x139] sm:$0xff]  ;;  %v2640_v36 = vld [vmem:[#allocation2 + $0x141] sm:$0xff] }
 0x134   : > { %v1345_v13 = vpop.f32.mrf.mxu0  ;;  %v1070_v44 = vpop.f32.mrf.mxu1  ;;  %v2660_v15 = vpack.c.bf16 %v2640_v36, %v2639_v12 }
 0x135   : > { %v1071_v55 = vadd.f32 %v1070_v44, %v4946_v25  ;;  %v5031_v37 = vadd.f32 %v3960_v7, %v1079_v26 }
 0x136   : > { %v3964_v57 = vpop.f32.mrf.mxu0  ;;  %v3929_v4 = vpop.f32.mrf.mxu1  ;;  %4132 = vmatmul.mubr.msk.bf16.gmra.mxu1 %vm533_vm1, %v2658_v35 }
 0x137   : > { %v1092_v24 = vadd.f32 %v3929_v4, %v4864_v31  ;;  %4135 = vmatprep.mubr.msk.bf16.mxu1 %vm533_vm1, %v2659_v51  ;;  %v5040_v54 = vadd.f32 %v1332_v9, %v1071_v55 }
 0x138   : > { %v1348_v32 = vpop.f32.mrf.mxu0  ;;  %v1083_v25 = vpop.f32.mrf.mxu1 }
 0x139   : > { %v1084_v52 = vadd.f32 %v1083_v25, %v4872_v50  ;;  %v5043_v59 = vadd.f32 %v3963_v30, %v1092_v24  ;;  %v2643_v30 = vld [vmem:[#allocation2 + $0x169] sm:$0xff] }
 0x13a   : > { %v3967_v0 = vpop.f32.mrf.mxu0  ;;  %4170 = vmatmul.mubr.msk.bf16.gmra.mxu0 %vm533_vm1, %v4719_v56  ;;  %v3930_v56 = vpop.f32.mrf.mxu1 }
 0x13b   : > { %4173 = vmatprep.mubr.msk.bf16.mxu0 %vm533_vm1, %v4723_v58  ;;  %v1095_v19 = vadd.f32 %v3930_v56, %v4880_v5  ;;  %v5046_v34 = vadd.f32 %v1345_v13, %v1084_v52  ;;  %v2644_v5 = vld [vmem:[#allocation2 + $0x171] sm:$0xff]  ;;  %v2941_v13 = vld [vmem:[#allocation2 + $0x19a] sm:$0xff] }
 0x13c   : > { %v1361_v7 = vpop.f32.mrf.mxu0  ;;  %v1086_v47 = vpop.f32.mrf.mxu1  ;;  %v2662_v44 = vpack.c.bf16 %v2644_v5, %v2643_v30 }
 0x13d   : > { %v1087_v9 = vadd.f32 %v1086_v47, %v4884_v18  ;;  %v5049_v38 = vadd.f32 %v3964_v57, %v1095_v19  ;;  %v2942_v18 = vld [vmem:[#allocation2 + $0x1a2] sm:$0xff] }
 0x13e   : > { %v3968_v31 = vpop.f32.mrf.mxu0  ;;  %v3933_v16 = vpop.f32.mrf.mxu1  ;;  %4136 = vmatmul.mubr.msk.bf16.gmra.mxu1 %vm533_vm1, %v2660_v15 }
 0x13f   : > { %v1108_v14 = vadd.f32 %v3933_v16, %v4898_v39  ;;  %4139 = vmatprep.mubr.msk.bf16.mxu1 %vm533_vm1, %v2661_v43  ;;  %v5058_v29 = vadd.f32 %v1348_v32, %v1087_v9  ;;  %v2958_v39 = vpack.c.bf16 %v2942_v18, %v2941_v13  ;;  %v5663_v13 = vld [vmem:[#allocation4_spill] sm:$0xff] }
 0x140   : > { %v1364_v58 = vpop.f32.mrf.mxu0  ;;  %v1099_v35 = vpop.f32.mrf.mxu1 }
 0x141   : > { %v1100_v26 = vadd.f32 %v1099_v35, %v4902_v53  ;;  %v5061_v51 = vadd.f32 %v3967_v0, %v1108_v14 }
 0x142   : > { %v3971_v50 = vpop.f32.mrf.mxu0  ;;  %4174 = vmatmul.mubr.msk.bf16.gmra.mxu0 %vm533_vm1, %v4735_v11  ;;  %v3934_v11 = vpop.f32.mrf.mxu1 }
 0x143   : > { %4177 = vmatprep.mubr.msk.bf16.mxu0 %vm533_vm1, %v4942_v17  ;;  %v1111_v4 = vadd.f32 %v3934_v11, %v4904_v2  ;;  %v5064_v24 = vadd.f32 %v1361_v7, %v1100_v26  ;;  %v2647_v2 = vld [vmem:[#allocation2 + $0x199] sm:$0xff]  ;;  %v2648_v7 = vld [vmem:[#allocation2 + $0x1a1] sm:$0xff] }
 0x144   : > { %v1377_v57 = vpop.f32.mrf.mxu0  ;;  %v1102_v12 = vpop.f32.mrf.mxu1  ;;  %v5664_v26 = vld [vmem:[#allocation5_spill] sm:$0xff] }
 0x145   : > { %v1103_v36 = vadd.f32 %v1102_v12, %v4910_v28  ;;  %v5067_v32 = vadd.f32 %v3968_v31, %v1111_v4  ;;  %v2664_v31 = vpack.c.bf16 %v2648_v7, %v2647_v2 }
 0x146   : > { %v3972_v55 = vpop.f32.mrf.mxu0  ;;  %v3937_v25 = vpop.f32.mrf.mxu1  ;;  %4140 = vmatmul.mubr.msk.bf16.gmra.mxu1 %vm533_vm1, %v2662_v44 }
 0x147   : > { %v1124_v0 = vadd.f32 %v3937_v25, %v4921_v45  ;;  %4143 = vmatprep.mubr.msk.bf16.mxu1 %vm533_vm1, %v4817_v41  ;;  %v5074_v46 = vadd.f32 %v1364_v58, %v1103_v36 }
 0x148   : > { %v1380_v17 = vpop.f32.mrf.mxu0  ;;  %v1115_v60 = vpop.f32.mrf.mxu1 }
 0x149   : > { %v1116_v28 = vadd.f32 %v1115_v60, %v4925_v48  ;;  %v5077_v56 = vadd.f32 %v3971_v50, %v1124_v0 }
 0x14a   : > { %v3975_v53 = vpop.f32.mrf.mxu0  ;;  %4178 = vmatmul.mubr.msk.bf16.gmra.mxu0 %vm533_vm1, %v2958_v39  ;;  %v3938_v15 = vpop.f32.mrf.mxu1  ;;  %v5665_v39 = vld [vmem:[#allocation6_spill] sm:$0xff] }
 0x14b   : > { %v1127_v43 = vadd.f32 %v3938_v15, %v4929_v49  ;;  %v5080_v47 = vadd.f32 %v1377_v57, %v1116_v28 }
 0x14c   : > { %v1393_v52 = vpop.f32.mrf.mxu0  ;;  %v1118_v45 = vpop.f32.mrf.mxu1 }
 0x14d   : > { %v1119_v41 = vadd.f32 %v1118_v45, %v4940_v10  ;;  %v5083_v16 = vadd.f32 %v3972_v55, %v1127_v43 }
 0x14e   : > { %v3976_v19 = vpop.f32.mrf.mxu0  ;;  %v3941_v58 = vpop.f32.mrf.mxu1  ;;  %4144 = vmatmul.mubr.msk.bf16.gmra.mxu1 %vm533_vm1, %v2664_v31 }
 0x14f   : > { %v1140_v48 = vadd.f32 %v3941_v58, %v4948_v27  ;;  %v5087_v50 = vadd.f32 %v1380_v17, %v1119_v41 }
 0x150   : > { %v1396_v9 = vpop.f32.mrf.mxu0  ;;  %v1131_v14 = vpop.f32.mrf.mxu1 }
 0x151   : > { %v1132_v49 = vadd.f32 %v1131_v14, %v5663_v13  ;;  %v5090_v18 = vadd.f32 %v3975_v53, %v1140_v48 }
 0x152   : > { %v4015_v30 = vpop.f32.mrf.mxu0  ;;  %v3942_v35 = vpop.f32.mrf.mxu1 }
 0x153   : > { %v1143_v10 = vadd.f32 %v3942_v35, %v5664_v26  ;;  %v5093_v11 = vadd.f32 %v1393_v52, %v1132_v49 }
 0x154   : > { %v1869_v5 = vpop.f32.mrf.mxu0  ;;  %v1134_v44 = vpop.f32.mrf.mxu1 }
 0x155   : > { %v1135_v4 = vadd.f32 %v1134_v44, %v5665_v39  ;;  %v5096_v12 = vadd.f32 %v3976_v19, %v1143_v10 }
 0x156   : > { %v4016_v57 = vpop.f32.mrf.mxu0  ;;  %v3981_v27 = vpop.f32.mrf.mxu1 }
 0x157   : > { %v1704_v36 = vadd.f32 %v3981_v27, %v4971_v33  ;;  %v5099_v25 = vadd.f32 %v1396_v9, %v1135_v4 }
 0x158   : > { %v1872_v55 = vpop.f32.mrf.mxu0  ;;  %v1575_v53 = vpop.f32.mrf.mxu1 }
 0x159   : > { %v1702_v2 = vadd.f32 %v1575_v53, %v4974_v3  ;;  %v5102_v7 = vadd.f32 %v4015_v30, %v1704_v36 }
 0x15a   : > { %v4019_v17 = vpop.f32.mrf.mxu0  ;;  %v3982_v60 = vpop.f32.mrf.mxu1 }
 0x15b   : > { %v1705_v28 = vadd.f32 %v3982_v60, %v4977_v63  ;;  %v5105_v15 = vadd.f32 %v1869_v5, %v1702_v2 }
 0x15c   : > { %v1885_v0 = vpop.f32.mrf.mxu0  ;;  %v1578_v31 = vpop.f32.mrf.mxu1 }
 0x15d   : > { %v1703_v43 = vadd.f32 %v1578_v31, %v4986_v23  ;;  %v5108_v45 = vadd.f32 %v4016_v57, %v1705_v28 }
 0x15e   : > { %v4020_v52 = vpop.f32.mrf.mxu0  ;;  %v3985_v33 = vpop.f32.mrf.mxu1 }
 0x15f   : > { %v1708_v41 = vadd.f32 %v3985_v33, %v4989_v1  ;;  %v5111_v58 = vadd.f32 %v1872_v55, %v1703_v43 }
 0x160   : > { %v1888_v19 = vpop.f32.mrf.mxu0  ;;  %v1591_v3 = vpop.f32.mrf.mxu1 }
 0x161   : > { %v1706_v48 = vadd.f32 %v1591_v3, %v4992_v22  ;;  %v5114_v14 = vadd.f32 %v4019_v17, %v1708_v41 }
 0x162   : > { %v4023_v9 = vpop.f32.mrf.mxu0  ;;  %v3986_v63 = vpop.f32.mrf.mxu1 }
 0x163   : > { %v1709_v13 = vadd.f32 %v3986_v63, %v4995_v8  ;;  %v5117_v49 = vadd.f32 %v1885_v0, %v1706_v48 }
 0x164   : > { %v1901_v30 = vpop.f32.mrf.mxu0  ;;  %v1594_v23 = vpop.f32.mrf.mxu1 }
 0x165   : > { %v1707_v57 = vadd.f32 %v1594_v23, %v5004_v21  ;;  %v5120_v26 = vadd.f32 %v4020_v52, %v1709_v13 }
 0x166   : > { %v4024_v5 = vpop.f32.mrf.mxu0  ;;  %v3989_v1 = vpop.f32.mrf.mxu1 }
 0x167   : > { %v1712_v44 = vadd.f32 %v3989_v1, %v5007_v62  ;;  %v5123_v55 = vadd.f32 %v1888_v19, %v1707_v57 }
 0x168   : > { %v1904_v35 = vpop.f32.mrf.mxu0  ;;  %v1607_v22 = vpop.f32.mrf.mxu1 }
 0x169   : > { %v1710_v4 = vadd.f32 %v1607_v22, %v5010_v6  ;;  %v5126_v27 = vadd.f32 %v4023_v9, %v1712_v44 }
 0x16a   : > { %v4027_v10 = vpop.f32.mrf.mxu0  ;;  %v3990_v8 = vpop.f32.mrf.mxu1 }
 0x16b   : > { %v1713_v36 = vadd.f32 %v3990_v8, %v5013_v20  ;;  %v5129_v53 = vadd.f32 %v1901_v30, %v1710_v4 }
 0x16c   : > { %v1917_v39 = vpop.f32.mrf.mxu0  ;;  %v1610_v21 = vpop.f32.mrf.mxu1 }
 0x16d   : > { %v1711_v2 = vadd.f32 %v1610_v21, %v5022_v61  ;;  %v5132_v60 = vadd.f32 %v4024_v5, %v1713_v36 }
 0x16e   : > { %v4028_v17 = vpop.f32.mrf.mxu0  ;;  %v3993_v62 = vpop.f32.mrf.mxu1 }
 0x16f   : > { %v1716_v28 = vadd.f32 %v3993_v62, %v5025_v42  ;;  %v5135_v31 = vadd.f32 %v1904_v35, %v1711_v2 }
 0x170   : > { %v1920_v0 = vpop.f32.mrf.mxu0  ;;  %v1623_v6 = vpop.f32.mrf.mxu1 }
 0x171   : > { %v1714_v43 = vadd.f32 %v1623_v6, %v5028_v40  ;;  %v5138_v33 = vadd.f32 %v4027_v10, %v1716_v28 }
 0x172   : > { %v4031_v52 = vpop.f32.mrf.mxu0  ;;  %v3994_v20 = vpop.f32.mrf.mxu1 }
 0x173   : > { %v1717_v41 = vadd.f32 %v3994_v20, %v5031_v37  ;;  %v5141_v3 = vadd.f32 %v1917_v39, %v1714_v43 }
 0x174   : > { %v1933_v19 = vpop.f32.mrf.mxu0  ;;  %v1626_v61 = vpop.f32.mrf.mxu1 }
 0x175   : > { %v1715_v48 = vadd.f32 %v1626_v61, %v5040_v54  ;;  %v5144_v63 = vadd.f32 %v4028_v17, %v1717_v41 }
 0x176   : > { %v4032_v9 = vpop.f32.mrf.mxu0  ;;  %v3997_v42 = vpop.f32.mrf.mxu1 }
 0x177   : > { %v1720_v13 = vadd.f32 %v3997_v42, %v5043_v59  ;;  %v5147_v23 = vadd.f32 %v1920_v0, %v1715_v48 }
 0x178   : > { %v1936_v30 = vpop.f32.mrf.mxu0  ;;  %v1639_v40 = vpop.f32.mrf.mxu1 }
 0x179   : > { %v1718_v57 = vadd.f32 %v1639_v40, %v5046_v34  ;;  %v5150_v1 = vadd.f32 %v4031_v52, %v1720_v13 }
 0x17a   : > { %v4035_v5 = vpop.f32.mrf.mxu0  ;;  %v3998_v37 = vpop.f32.mrf.mxu1 }
 0x17b   : > { %v1721_v44 = vadd.f32 %v3998_v37, %v5049_v38  ;;  %v5153_v22 = vadd.f32 %v1933_v19, %v1718_v57 }
 0x17c   : > { %v1949_v35 = vpop.f32.mrf.mxu0  ;;  %v1642_v54 = vpop.f32.mrf.mxu1 }
 0x17d   : > { %v1719_v4 = vadd.f32 %v1642_v54, %v5058_v29  ;;  %v5156_v8 = vadd.f32 %v4032_v9, %v1721_v44 }
 0x17e   : > { %v4036_v10 = vpop.f32.mrf.mxu0  ;;  %v4001_v59 = vpop.f32.mrf.mxu1 }
 0x17f   : > { %v1724_v36 = vadd.f32 %v4001_v59, %v5061_v51  ;;  %v5159_v21 = vadd.f32 %v1936_v30, %v1719_v4 }
 0x180   : > { %v1952_v39 = vpop.f32.mrf.mxu0  ;;  %v1655_v34 = vpop.f32.mrf.mxu1 }
 0x181   : > { %5666 = vst [vmem:[#allocation4_spill] sm:$0xff] %v5159_v21  ;;  %v1722_v2 = vadd.f32 %v1655_v34, %v5064_v24  ;;  %v5162_v62 = vadd.f32 %v4035_v5, %v1724_v36 }
 0x182   : > { %v4039_v17 = vpop.f32.mrf.mxu0  ;;  %v4002_v38 = vpop.f32.mrf.mxu1 }
 0x183   : > { %5667 = vst [vmem:[#allocation5_spill] sm:$0xff] %v5162_v62  ;;  %v1725_v28 = vadd.f32 %v4002_v38, %v5067_v32  ;;  %v5165_v6 = vadd.f32 %v1949_v35, %v1722_v2 }
 0x184   : > { %v1965_v0 = vpop.f32.mrf.mxu0  ;;  %v1658_v29 = vpop.f32.mrf.mxu1 }
 0x185   : > { %5668 = vst [vmem:[#allocation6_spill] sm:$0xff] %v5165_v6  ;;  %v1723_v43 = vadd.f32 %v1658_v29, %v5074_v46  ;;  %v5168_v20 = vadd.f32 %v4036_v10, %v1725_v28 }
 0x186   : > { %v4040_v52 = vpop.f32.mrf.mxu0  ;;  %v4005_v51 = vpop.f32.mrf.mxu1 }
 0x187   : > { %5669 = vst [vmem:[#allocation7_spill] sm:$0xff] %v5168_v20  ;;  %v1728_v41 = vadd.f32 %v4005_v51, %v5077_v56  ;;  %v5171_v61 = vadd.f32 %v1952_v39, %v1723_v43 }
 0x188   : > { %v1968_v19 = vpop.f32.mrf.mxu0  ;;  %v1671_v24 = vpop.f32.mrf.mxu1 }
 0x189   : > { %5670 = vst [vmem:[#allocation8_spill] sm:$0xff] %v5171_v61  ;;  %v1726_v48 = vadd.f32 %v1671_v24, %v5080_v47  ;;  %v5174_v42 = vadd.f32 %v4039_v17, %v1728_v41 }
 0x18a   : > { %v4043_v9 = vpop.f32.mrf.mxu0  ;;  %v4006_v32 = vpop.f32.mrf.mxu1 }
 0x18b   : > { %5671 = vst [vmem:[#allocation9_spill] sm:$0xff] %v5174_v42  ;;  %v1729_v13 = vadd.f32 %v4006_v32, %v5083_v16  ;;  %v5177_v40 = vadd.f32 %v1965_v0, %v1726_v48 }
 0x18c   : > { %v1981_v30 = vpop.f32.mrf.mxu0  ;;  %v1674_v46 = vpop.f32.mrf.mxu1 }
 0x18d   : > { %5672 = vst [vmem:[#allocation10_spill] sm:$0xff] %v5177_v40  ;;  %v1727_v57 = vadd.f32 %v1674_v46, %v5087_v50  ;;  %v5180_v37 = vadd.f32 %v4040_v52, %v1729_v13 }
 0x18e   : > { %v4044_v5 = vpop.f32.mrf.mxu0  ;;  %v4009_v56 = vpop.f32.mrf.mxu1 }
 0x18f   : > { %5673 = vst [vmem:[#allocation11_spill] sm:$0xff] %v5180_v37  ;;  %v1732_v44 = vadd.f32 %v4009_v56, %v5090_v18  ;;  %v5185_v47 = vadd.f32 %v1968_v19, %v1727_v57 }
 0x190   : > { %v1984_v35 = vpop.f32.mrf.mxu0  ;;  %v1687_v54 = vpop.f32.mrf.mxu1 }
 0x191   : > { %5674 = vst [vmem:[#allocation12_spill] sm:$0xff] %v5185_v47  ;;  %v1730_v16 = vadd.f32 %v1687_v54, %v5093_v11  ;;  %v5190_v4 = vadd.f32 %v4043_v9, %v1732_v44 }
 0x192   : > { %v5182_v10 = vpop.f32.mrf.mxu0  ;;  %v4010_v59 = vpop.f32.mrf.mxu1 }
 0x193   : > { %5675 = vst [vmem:[#allocation13_spill] sm:$0xff] %v5190_v4  ;;  %v1733_v50 = vadd.f32 %v4010_v59, %v5096_v12  ;;  %v5195_v36 = vadd.f32 %v1981_v30, %v1730_v16 }
 0x194   : > { %v5187_v39 = vpop.f32.mrf.mxu0  ;;  %v1690_v34 = vpop.f32.mrf.mxu1 }
 0x195   : > { %5676 = vst [vmem:[#allocation14_spill] sm:$0xff] %v5195_v36  ;;  %v1731_v18 = vadd.f32 %v1690_v34, %v5099_v25  ;;  %v5200_v2 = vadd.f32 %v4044_v5, %v1733_v50 }
 0x196   : > { %v5192_v17 = vpop.f32.mrf.mxu0  ;;  %v4049_v38 = vpop.f32.mrf.mxu1 }
 0x197   : > { %5677 = vst [vmem:[#allocation15_spill] sm:$0xff] %v5200_v2  ;;  %v5204_v11 = vadd.f32 %v1984_v35, %v1731_v18 }
 0x198   : > { %v5197_v0 = vpop.f32.mrf.mxu0  ;;  %v2163_v28 = vpop.f32.mrf.mxu1 }
 0x199   : > { %5678 = vst [vmem:[#allocation16_spill] sm:$0xff] %v5204_v11 }
 0x19a   : > { %v5202_v52 = vpop.f32.mrf.mxu0  ;;  %v4050_v19 = vpop.f32.mrf.mxu1 }
 0x19c   : > { %v5206_v29 = vpop.f32.mrf.mxu0  ;;  %v2166_v12 = vpop.f32.mrf.mxu1 }
 0x19e   : > { %v5208_v43 = vpop.f32.mrf.mxu0  ;;  %v4053_v9 = vpop.f32.mrf.mxu1 }
 0x1a0   : > { %v5210_v51 = vpop.f32.mrf.mxu0  ;;  %v2179_v25 = vpop.f32.mrf.mxu1 }
 0x1a2   : > { %v5212_v41 = vpop.f32.mrf.mxu0  ;;  %v4054_v30 = vpop.f32.mrf.mxu1 }
 0x1a4   : > { %v5214_v24 = vpop.f32.mrf.mxu0  ;;  %v2182_v32 = vpop.f32.mrf.mxu1 }
 0x1a6   : > { %v5216_v48 = vpop.f32.mrf.mxu0  ;;  %v4057_v13 = vpop.f32.mrf.mxu1 }
 0x1a8   : > { %v5218_v5 = vpop.f32.mrf.mxu0  ;;  %v2195_v35 = vpop.f32.mrf.mxu1 }
 0x1aa   : > { %v5220_v46 = vpop.f32.mrf.mxu0  ;;  %v4058_v56 = vpop.f32.mrf.mxu1 }
 0x1ac   : > { %v5222_v57 = vpop.f32.mrf.mxu0  ;;  %v2198_v54 = vpop.f32.mrf.mxu1 }
 0x1ae   : > { %v5224_v44 = vpop.f32.mrf.mxu0  ;;  %v4061_v59 = vpop.f32.mrf.mxu1 }
 0x1af   : > { %5679 = vst [vmem:[#allocation17_spill] sm:$0xff] %v5224_v44 }
 0x1b0   : > { %v5226_v16 = vpop.f32.mrf.mxu0  ;;  %v2211_v34 = vpop.f32.mrf.mxu1 }
 0x1b1   : > { %5680 = vst [vmem:[#allocation18_spill] sm:$0xff] %v5226_v16 }
 0x1b2   : > { %v5228_v50 = vpop.f32.mrf.mxu0  ;;  %v4062_v11 = vpop.f32.mrf.mxu1 }
 0x1b3   : > { %5681 = vst [vmem:[#allocation19_spill] sm:$0xff] %v5228_v50 }
 0x1b4   : > { %v5230_v18 = vpop.f32.mrf.mxu0  ;;  %v2214_v36 = vpop.f32.mrf.mxu1 }
 0x1b5   : > { %5682 = vst [vmem:[#allocation20_spill] sm:$0xff] %v5230_v18 }
 0x1b6   : > { %v5232_v2 = vpop.f32.mrf.mxu0  ;;  %v4065_v47 = vpop.f32.mrf.mxu1 }
 0x1b7   : > { %5683 = vst [vmem:[#allocation21_spill] sm:$0xff] %v5232_v2 }
 0x1b8   : > { %v5234_v4 = vpop.f32.mrf.mxu0  ;;  %v2227_v40 = vpop.f32.mrf.mxu1 }
 0x1b9   : > { %5684 = vst [vmem:[#allocation22_spill] sm:$0xff] %v5234_v4 }
 0x1ba   : > { %v5236_v37 = vpop.f32.mrf.mxu0  ;;  %v4066_v61 = vpop.f32.mrf.mxu1 }
 0x1bb   : > { %5685 = vst [vmem:[#allocation23_spill] sm:$0xff] %v5236_v37 }
 0x1bc   : > { %v5238_v42 = vpop.f32.mrf.mxu0  ;;  %v5242_v6 = vpop.f32.mrf.mxu1 }
 0x1bd   : > { %5686 = vst [vmem:[#allocation24_spill] sm:$0xff] %v5238_v42  ;;  %5688 = vst [vmem:[#allocation26_spill] sm:$0xff] %v5242_v6 }
 0x1be   : > { %v5240_v20 = vpop.f32.mrf.mxu0  ;;  %v4069_v18 = vpop.f32.mrf.mxu1 }
 0x1bf   : > { %5687 = vst [vmem:[#allocation25_spill] sm:$0xff] %v5240_v20 }
 0x1c0   : > { %v5244_v50 = vpop.f32.mrf.mxu0  ;;  %v5248_v2 = vpop.f32.mrf.mxu1 }
 0x1c1   : > { %5689 = vst [vmem:[#allocation27_spill] sm:$0xff] %v5244_v50  ;;  %5691 = vst [vmem:[#allocation29_spill] sm:$0xff] %v5248_v2 }
 0x1c2   : > { %v5246_v16 = vpop.f32.mrf.mxu0  ;;  %v5252_v4 = vpop.f32.mrf.mxu1 }
 0x1c3   : > { %5690 = vst [vmem:[#allocation28_spill] sm:$0xff] %v5246_v16  ;;  %5693 = vst [vmem:[#allocation31_spill] sm:$0xff] %v5252_v4 }
 0x1c4   : > { %v5250_v62 = vpop.f32.mrf.mxu0  ;;  %v5256_v21 = vpop.f32.mrf.mxu1 }
 0x1c5   : > { %5692 = vst [vmem:[#allocation30_spill] sm:$0xff] %v5250_v62  ;;  %5695 = vst [vmem:[#allocation33_spill] sm:$0xff] %v5256_v21  ;;  %v2292_v62 = vadd.f32 %v4049_v38, %v5102_v7 }
 0x1c6   : > { %v5254_v37 = vpop.f32.mrf.mxu0  ;;  %v5260_v20 = vpop.f32.mrf.mxu1 }
 0x1c7   : > { %5694 = vst [vmem:[#allocation32_spill] sm:$0xff] %v5254_v37  ;;  %5697 = vst [vmem:[#allocation35_spill] sm:$0xff] %v5260_v20  ;;  %v2293_v20 = vadd.f32 %v4050_v19, %v5108_v45  ;;  %v2587_v7 = vadd.f32 %v5182_v10, %v2292_v62  ;;  %v2300_v19 = vadd.f32 %v4057_v13, %v5126_v27 }
 0x1c8   : > { %v5258_v42 = vpop.f32.mrf.mxu0  ;;  %v5264_v50 = vpop.f32.mrf.mxu1  ;;  %v2304_v10 = vadd.f32 %v4061_v59, %v5138_v33  ;;  %v2308_v27 = vadd.f32 %v4065_v47, %v5150_v1  ;;  %v2306_v33 = vadd.f32 %v2227_v40, %v5153_v22 }
 0x1c9   : > { %5696 = vst [vmem:[#allocation34_spill] sm:$0xff] %v5258_v42  ;;  %5699 = vst [vmem:[#allocation37_spill] sm:$0xff] %v5264_v50  ;;  %v2290_v42 = vadd.f32 %v2163_v28, %v5105_v15  ;;  %v2291_v50 = vadd.f32 %v2166_v12, %v5111_v58  ;;  %v2295_v15 = vadd.f32 %v2182_v32, %v5123_v55  ;;  %v5709_v32 = vld [vmem:[#allocation19_spill] sm:$0xff] }
 0x1ca   : > { %v5262_v6 = vpop.f32.mrf.mxu0  ;;  %v5268_v16 = vpop.f32.mrf.mxu1  ;;  %v2588_v28 = vadd.f32 %v5192_v17, %v2293_v20  ;;  %v2298_v58 = vadd.f32 %v2195_v35, %v5129_v53  ;;  %v2305_v55 = vadd.f32 %v4062_v11, %v5144_v63  ;;  %v2303_v20 = vadd.f32 %v2214_v36, %v5147_v23  ;;  %v5705_v11 = vld [vmem:[#allocation4_spill] sm:$0xff] }
 0x1cb   : > { %5698 = vst [vmem:[#allocation36_spill] sm:$0xff] %v5262_v6  ;;  %5701 = vst [vmem:[#allocation39_spill] sm:$0xff] %v5268_v16  ;;  %v2294_v16 = vadd.f32 %v2179_v25, %v5117_v49  ;;  %v2585_v45 = vadd.f32 %v5187_v39, %v2290_v42  ;;  %v2299_v49 = vadd.f32 %v2198_v54, %v5135_v31  ;;  %v5710_v35 = vld [vmem:[#allocation20_spill] sm:$0xff]  ;;  %v5712_v54 = vld [vmem:[#allocation6_spill] sm:$0xff] }
 0x1cc   : > { %v5266_v44 = vpop.f32.mrf.mxu0  ;;  %v5273_v4 = vpop.f32.mrf.mxu1  ;;  %v2586_v42 = vadd.f32 %v5197_v0, %v2291_v50  ;;  %v5315_v17 = vadd.f32 %v5210_v51, %v2295_v15  ;;  %v5320_v47 = vadd.f32 %v5212_v41, %v2300_v19  ;;  %v5323_v36 = vadd.f32 %v5214_v24, %v2298_v58  ;;  %v5707_v51 = vld [vmem:[#allocation5_spill] sm:$0xff]  ;;  %v5346_v41 = vld [vmem:[%s5656_s5] ss:$0 sm:$0xff]  ;;  %v5714_v50 = vld [vmem:[#allocation7_spill] sm:$0xff] }
 0x1cd   : > { %5700 = vst [vmem:[#allocation38_spill] sm:$0xff] %v5266_v44  ;;  %v2296_v44 = vadd.f32 %v4053_v9, %v5114_v14  ;;  %v2301_v14 = vadd.f32 %v4058_v56, %v5132_v60  ;;  %v5307_v39 = vadd.f32 %v5206_v29, %v2294_v16  ;;  %v5329_v22 = vadd.f32 %v5218_v5, %v2299_v49  ;;  %v5706_v29 = vld [vmem:[#allocation26_spill] sm:$0xff]  ;;  %v5711_v56 = vld [vmem:[#allocation21_spill] sm:$0xff] }
 0x1ce   : > { %v5270_v2 = vpop.f32.mrf.mxu0  ;;  %v5279_v21 = vpop.f32.mrf.mxu1  ;;  %v2312_v9 = vadd.f32 %v4069_v18, %v5707_v51  ;;  %v5352_v5 = vadd.f32 %v5709_v32, %v2308_v27  ;;  %v5713_v16 = vld [vmem:[#allocation29_spill] sm:$0xff]  ;;  %v5726_v32 = vld [vmem:[#allocation23_spill] sm:$0xff] }
 0x1cf   : > { %5702 = vst [vmem:[#allocation40_spill] sm:$0xff] %v5270_v2  ;;  %v2591_v31 = vadd.f32 %v5202_v52, %v2296_v44  ;;  %v5326_v0 = vadd.f32 %v5216_v48, %v2301_v14  ;;  %v2310_v59 = vadd.f32 %v5713_v16, %v5712_v54  ;;  %v5717_v15 = vld [vmem:[#allocation33_spill] sm:$0xff]  ;;  %v5719_v14 = vld [vmem:[#allocation35_spill] sm:$0xff] }
 0x1d0   : > { %v5275_v37 = vpop.f32.mrf.mxu0  ;;  %v5284_v2 = vpop.f32.mrf.mxu1  ;;  %v5718_v58 = vld [vmem:[#allocation9_spill] sm:$0xff] }
 0x1d1   : > { %5703 = vst [vmem:[#allocation41_spill] sm:$0xff] %v5275_v37  ;;  %v2297_v37 = vadd.f32 %v4054_v30, %v5120_v26  ;;  %v2302_v26 = vadd.f32 %v2211_v34, %v5141_v3  ;;  %v2309_v3 = vadd.f32 %v4066_v61, %v5156_v8  ;;  %v5332_v61 = vadd.f32 %v5220_v46, %v2304_v10  ;;  %v5708_v30 = vld [vmem:[#allocation18_spill] sm:$0xff]  ;;  %v5715_v34 = vld [vmem:[#allocation31_spill] sm:$0xff] }
 0x1d2   : > { %v4151_v6 = vpop.f32.mrf.mxu0  ;;  %v5295_v12 = vpop.f32.mrf.mxu1  ;;  %v5349_v48 = vadd.f32 %v5708_v30, %v2303_v20  ;;  %v2313_v18 = vadd.f32 %v5715_v34, %v5714_v50  ;;  %v2316_v49 = vadd.f32 %v5719_v14, %v5718_v58  ;;  %v5720_v10 = vld [vmem:[#allocation10_spill] sm:$0xff] }
 0x1d3   : > { %v5312_v63 = vadd.f32 %v5208_v43, %v2297_v37  ;;  %v5335_v40 = vadd.f32 %v5222_v57, %v2302_v26  ;;  %v5704_v37 = vld [vmem:[#allocation17_spill] sm:$0xff]  ;;  %v2307_v43 = vadd.f32 %v5706_v29, %v5705_v11  ;;  %v5355_v57 = vadd.f32 %v5710_v35, %v2306_v33 }
 0x1d4   : > { %v3046_v38 = vpop.f32.mrf.mxu0  ;;  %v5303_v53 = vpop.f32.mrf.mxu1  ;;  %v5338_v52 = vadd.f32 %v5704_v37, %v2305_v55  ;;  %v5358_v44 = vadd.f32 %v5711_v56, %v2309_v3  ;;  %v5721_v26 = vld [vmem:[#allocation37_spill] sm:$0xff]  ;;  %v5722_v3 = vld [vmem:[#allocation11_spill] sm:$0xff]  ;;  %v5724_v37 = vld [vmem:[#allocation12_spill] sm:$0xff]  ;;  %v5388_v35 = vadd.f32 %v5726_v32, %v2312_v9 }
 0x1d5   : > { %v2314_v55 = vadd.f32 %v5721_v26, %v5720_v10  ;;  %v2315_v11 = vadd.f32 %v5273_v4, %v5724_v37  ;;  %v5727_v56 = vld [vmem:[#allocation13_spill] sm:$0xff] }
 0x1d6   : > { %v4152_v62 = vpop.f32.mrf.mxu0  ;;  %v4117_v23 = vpop.f32.mrf.mxu1  ;;  %v5730_v9 = vld [vmem:[#allocation25_spill] sm:$0xff] }
 0x1d7   : > { %v2881_v8 = vadd.f32 %v4117_v23, %v2587_v7  ;;  %v5716_v7 = vld [vmem:[#allocation8_spill] sm:$0xff]  ;;  %v5723_v23 = vld [vmem:[#allocation39_spill] sm:$0xff] }
 0x1d8   : > { %v3049_v60 = vpop.f32.mrf.mxu0  ;;  %v2752_v25 = vpop.f32.mrf.mxu1  ;;  %v2311_v19 = vadd.f32 %v5717_v15, %v5716_v7  ;;  %v5403_v7 = vadd.f32 %v5730_v9, %v2313_v18 }
 0x1d9   : > { %v3175_v13 = vadd.f32 %v4151_v6, %v2881_v8  ;;  %v2879_v46 = vadd.f32 %v2752_v25, %v2585_v45  ;;  %v2317_v8 = vadd.f32 %v5723_v23, %v5722_v3  ;;  %v5725_v25 = vld [vmem:[#allocation22_spill] sm:$0xff] }
 0x1da   : > { %v5317_v1 = vpop.f32.mrf.mxu0  ;;  %v4118_v6 = vpop.f32.mrf.mxu1  ;;  %v5385_v30 = vadd.f32 %v5725_v25, %v2307_v43  ;;  %v5729_v43 = vld [vmem:[#allocation24_spill] sm:$0xff]  ;;  %v5736_v3 = vld [vmem:[#allocation34_spill] sm:$0xff] }
 0x1db   : > { %v3214_v20 = vadd.f32 %v5346_v41, %v3175_v13  ;;  %v3173_v27 = vadd.f32 %v3046_v38, %v2879_v46  ;;  %v2882_v33 = vadd.f32 %v4118_v6, %v2588_v28  ;;  %v2320_v38 = vadd.f32 %v5279_v21, %v5727_v56  ;;  %v5728_v28 = vld [vmem:[#allocation14_spill] sm:$0xff]  ;;  %v5731_v21 = vld [vmem:[#allocation27_spill] sm:$0xff] }
 0x1dc   : > { %v3062_v24 = vpop.f32.mrf.mxu0  ;;  %v2755_v29 = vpop.f32.mrf.mxu1  ;;  %v2318_v13 = vadd.f32 %v5284_v2, %v5728_v28  ;;  %v5400_v34 = vadd.f32 %v5729_v43, %v2310_v59  ;;  %v5406_v15 = vadd.f32 %v5731_v21, %v2311_v19  ;;  %v5732_v2 = vld [vmem:[#allocation15_spill] sm:$0xff]  ;;  %v5734_v6 = vld [vmem:[#allocation30_spill] sm:$0xff]  ;;  %v5423_v23 = vadd.f32 %v5736_v3, %v2315_v11 }
 0x1dd   : > { %3246 = vst.msk [vmem:[%s5373_s19 + $0x10] sm:$0xff] %vm533_vm1, %v3214_v20  ;;  %v3212_v4 = vadd.f32 %v5346_v41, %v3173_v27  ;;  %v3176_v46 = vadd.f32 %v4152_v62, %v2882_v33  ;;  %v2880_v54 = vadd.f32 %v2755_v29, %v2586_v42  ;;  %v2321_v58 = vadd.f32 %v5295_v12, %v5732_v2  ;;  %v5733_v42 = vld [vmem:[#allocation28_spill] sm:$0xff] }
 0x1de   : > { %v4156_v45 = vpop.f32.mrf.mxu0  ;;  %v4121_v16 = vpop.f32.mrf.mxu1  ;;  %v5414_v14 = vadd.f32 %v5733_v42, %v2316_v49  ;;  %v5417_v10 = vadd.f32 %v5734_v6, %v2314_v55  ;;  %v5735_v33 = vld [vmem:[#allocation32_spill] sm:$0xff] }
 0x1df   : > { %3244 = vst.msk [vmem:[%s5373_s19] sm:$0xff] %vm533_vm1, %v3212_v4  ;;  %v3215_v62 = vadd.f32 %v5346_v41, %v3176_v46  ;;  %v3174_v59 = vadd.f32 %v3049_v60, %v2880_v54  ;;  %v2885_v26 = vadd.f32 %v4121_v16, %v2591_v31  ;;  %v5420_v19 = vadd.f32 %v5735_v33, %v2317_v8  ;;  %v5737_v12 = vld [vmem:[#allocation16_spill] sm:$0xff]  ;;  %v5739_v31 = vld [vmem:[#allocation38_spill] sm:$0xff] }
 0x1e0   : > { %v5382_v51 = vpop.f32.mrf.mxu0  ;;  %v2768_v18 = vpop.f32.mrf.mxu1  ;;  %v5427_v37 = vadd.f32 %v5303_v53, %v5737_v12  ;;  %v5738_v55 = vld [vmem:[#allocation36_spill] sm:$0xff]  ;;  %v5436_v29 = vadd.f32 %v5739_v31, %v2318_v13  ;;  %v3349_v8 = vmul.f32 %v3214_v20, %v3214_v20  ;;  %v3347_v25 = vmul.f32 %v3212_v4, %v3212_v4 }
 0x1e1   : > { %3247 = vst.msk [vmem:[%s5373_s19 + $0x18] sm:$0xff] %vm533_vm1, %v3215_v62  ;;  %v2883_v49 = vadd.f32 %v2768_v18, %v5307_v39  ;;  %v5433_v60 = vadd.f32 %v5738_v55, %v2320_v38  ;;  %v3213_v11 = vadd.f32 %v5346_v41, %v3174_v59  ;;  %v3179_v32 = vadd.f32 %v5317_v1, %v2885_v26  ;;  %v5740_v39 = vld [vmem:[#allocation40_spill] sm:$0xff] }
 0x1e2   : > { %v5397_v50 = vpop.f32.mrf.mxu0  ;;  %v4122_v56 = vpop.f32.mrf.mxu1  ;;  %v3276_v28 = vsel %vm533_vm1, %v3212_v4, 0.0  ;;  %v5443_v16 = vadd.f32 %v5740_v39, %v2321_v58  ;;  %v3350_v38 = vmul.f32 %v3215_v62, %v3215_v62  ;;  %v3279_v58 = vsel %vm533_vm1, %v3214_v20, 0.0 }
 0x1e3   : > { %v3177_v46 = vadd.f32 %v3062_v24, %v2883_v49  ;;  %v2886_v54 = vadd.f32 %v4122_v56, %v5312_v63  ;;  %3245 = vst.msk [vmem:[%s5373_s19 + $0x8] sm:$0xff] %vm533_vm1, %v3213_v11  ;;  %v3277_v13 = vsel %vm533_vm1, %v3213_v11, 0.0  ;;  %v3348_v43 = vmul.f32 %v3213_v11, %v3213_v11 }
 0x1e4   : > { %v3078_v27 = vpop.f32.mrf.mxu0  ;;  %v3218_v9 = vadd.f32 %v5346_v41, %v3179_v32  ;;  %v2771_v1 = vpop.f32.mrf.mxu1  ;;  %v3278_v4 = vadd.f32 %v3277_v13, %v3276_v28  ;;  %v3382_v42 = vsel %vm533_vm1, %v3349_v8, 0.0  ;;  %v3379_v6 = vsel %vm533_vm1, %v3347_v25, 0.0 }
 0x1e5   : > { %v3216_v24 = vadd.f32 %v5346_v41, %v3177_v46  ;;  %v3180_v63 = vadd.f32 %v4156_v45, %v2886_v54  ;;  %v2884_v2 = vadd.f32 %v2771_v1, %v5315_v17  ;;  %v3380_v59 = vsel %vm533_vm1, %v3348_v43, 0.0 }
 0x1e6   : > { %v4160_v53 = vpop.f32.mrf.mxu0  ;;  %3250 = vst.msk [vmem:[%s5373_s19 + $0x30] sm:$0xff] %vm533_vm1, %v3218_v9  ;;  %v4125_v26 = vpop.f32.mrf.mxu1  ;;  %v3281_v33 = vsel %vm533_vm1, %v3215_v62, 0.0  ;;  %v3280_v3 = vadd.f32 %v3279_v58, %v3278_v4  ;;  %v3381_v45 = vadd.f32 %v3380_v59, %v3379_v6  ;;  %v3384_v20 = vsel %vm533_vm1, %v3350_v38, 0.0 }
 0x1e7   : > { %3248 = vst.msk [vmem:[%s5373_s19 + $0x20] sm:$0xff] %vm533_vm1, %v3216_v24  ;;  %v3351_v17 = vmul.f32 %v3216_v24, %v3216_v24  ;;  %v3219_v12 = vadd.f32 %v5346_v41, %v3180_v63  ;;  %v3178_v49 = vadd.f32 %v5382_v51, %v2884_v2  ;;  %v2889_v55 = vadd.f32 %v4125_v26, %v5320_v47 }
 0x1e8   : > { %v5449_v21 = vpop.f32.mrf.mxu0  ;;  %v2784_v31 = vpop.f32.mrf.mxu1  ;;  %v3383_v25 = vadd.f32 %v3382_v42, %v3381_v45  ;;  %v3353_v11 = vmul.f32 %v3218_v9, %v3218_v9  ;;  %v3282_v62 = vadd.f32 %v3281_v33, %v3280_v3  ;;  %v3283_v56 = vsel %vm533_vm1, %v3216_v24, 0.0 }
 0x1e9   : > { %v2887_v32 = vadd.f32 %v2784_v31, %v5323_v36  ;;  %v3386_v28 = vsel %vm533_vm1, %v3351_v17, 0.0  ;;  %3251 = vst.msk [vmem:[%s5373_s19 + $0x38] sm:$0xff] %vm533_vm1, %v3219_v12  ;;  %v3217_v46 = vadd.f32 %v5346_v41, %v3178_v49  ;;  %v3183_v51 = vadd.f32 %v5397_v50, %v2889_v55 }
 0x1ea   : > { %v5459_v18 = vpop.f32.mrf.mxu0  ;;  %v4126_v54 = vpop.f32.mrf.mxu1  ;;  %v3284_v39 = vadd.f32 %v3283_v56, %v3282_v62  ;;  %v3385_v38 = vadd.f32 %v3384_v20, %v3383_v25  ;;  %v3354_v1 = vmul.f32 %v3219_v12, %v3219_v12  ;;  %v3287_v6 = vsel %vm533_vm1, %v3218_v9, 0.0 }
 0x1eb   : > { %v3181_v13 = vadd.f32 %v3078_v27, %v2887_v32  ;;  %v2890_v43 = vadd.f32 %v4126_v54, %v5326_v0  ;;  %3249 = vst.msk [vmem:[%s5373_s19 + $0x28] sm:$0xff] %vm533_vm1, %v3217_v46  ;;  %v3285_v36 = vsel %vm533_vm1, %v3217_v46, 0.0  ;;  %v3352_v4 = vmul.f32 %v3217_v46, %v3217_v46 }
 0x1ec   : > { %v3094_v8 = vpop.f32.mrf.mxu0  ;;  %v3222_v24 = vadd.f32 %v5346_v41, %v3183_v51  ;;  %v2787_v63 = vpop.f32.mrf.mxu1  ;;  %v3387_v50 = vadd.f32 %v3386_v28, %v3385_v38  ;;  %v3286_v58 = vadd.f32 %v3285_v36, %v3284_v39  ;;  %v3390_v0 = vsel %vm533_vm1, %v3353_v11, 0.0 }
 0x1ed   : > { %v3220_v42 = vadd.f32 %v5346_v41, %v3181_v13  ;;  %v3184_v27 = vadd.f32 %v4160_v53, %v2890_v43  ;;  %v3388_v59 = vsel %vm533_vm1, %v3352_v4, 0.0  ;;  %v2888_v26 = vadd.f32 %v2787_v63, %v5329_v22 }
 0x1ee   : > { %v4164_v47 = vpop.f32.mrf.mxu0  ;;  %3254 = vst.msk [vmem:[%s5373_s19 + $0x50] sm:$0xff] %vm533_vm1, %v3222_v24  ;;  %v4129_v33 = vpop.f32.mrf.mxu1  ;;  %v3289_v45 = vsel %vm533_vm1, %v3219_v12, 0.0  ;;  %v3288_v17 = vadd.f32 %v3287_v6, %v3286_v58  ;;  %v3389_v20 = vadd.f32 %v3388_v59, %v3387_v50  ;;  %v3392_v9 = vsel %vm533_vm1, %v3354_v1, 0.0 }
 0x1ef   : > { %3252 = vst.msk [vmem:[%s5373_s19 + $0x40] sm:$0xff] %vm533_vm1, %v3220_v42  ;;  %v3355_v53 = vmul.f32 %v3220_v42, %v3220_v42  ;;  %v3223_v49 = vadd.f32 %v5346_v41, %v3184_v27  ;;  %v3182_v55 = vadd.f32 %v5449_v21, %v2888_v26  ;;  %v2893_v31 = vadd.f32 %v4129_v33, %v5332_v61 }
 0x1f0   : > { %v5480_v2 = vpop.f32.mrf.mxu0  ;;  %v2800_v22 = vpop.f32.mrf.mxu1  ;;  %v3391_v11 = vadd.f32 %v3390_v0, %v3389_v20  ;;  %v3357_v62 = vmul.f32 %v3222_v24, %v3222_v24  ;;  %v3290_v12 = vadd.f32 %v3289_v45, %v3288_v17  ;;  %v3291_v56 = vsel %vm533_vm1, %v3220_v42, 0.0 }
 0x1f1   : > { %v2891_v32 = vadd.f32 %v2800_v22, %v5335_v40  ;;  %v3394_v28 = vsel %vm533_vm1, %v3355_v53, 0.0  ;;  %3255 = vst.msk [vmem:[%s5373_s19 + $0x58] sm:$0xff] %vm533_vm1, %v3223_v49  ;;  %v3221_v46 = vadd.f32 %v5346_v41, %v3182_v55  ;;  %v3187_v21 = vadd.f32 %v5459_v18, %v2893_v31 }
 0x1f2   : > { %v5489_v3 = vpop.f32.mrf.mxu0  ;;  %v4130_v51 = vpop.f32.mrf.mxu1  ;;  %v3292_v54 = vadd.f32 %v3291_v56, %v3290_v12  ;;  %v3393_v39 = vadd.f32 %v3392_v9, %v3391_v11  ;;  %v3358_v43 = vmul.f32 %v3223_v49, %v3223_v49  ;;  %v3295_v42 = vsel %vm533_vm1, %v3222_v24, 0.0 }
 0x1f3   : > { %v3185_v38 = vadd.f32 %v3094_v8, %v2891_v32  ;;  %v2894_v13 = vadd.f32 %v4130_v51, %v5338_v52  ;;  %3253 = vst.msk [vmem:[%s5373_s19 + $0x48] sm:$0xff] %vm533_vm1, %v3221_v46  ;;  %v3293_v40 = vsel %vm533_vm1, %v3221_v46, 0.0  ;;  %v3356_v1 = vmul.f32 %v3221_v46, %v3221_v46 }
 0x1f4   : > { %v3110_v25 = vpop.f32.mrf.mxu0  ;;  %v3226_v36 = vadd.f32 %v5346_v41, %v3187_v21  ;;  %v2803_v4 = vpop.f32.mrf.mxu1  ;;  %v3395_v18 = vadd.f32 %v3394_v28, %v3393_v39  ;;  %v3294_v50 = vadd.f32 %v3293_v40, %v3292_v54  ;;  %v3398_v52 = vsel %vm533_vm1, %v3357_v62, 0.0 }
 0x1f5   : > { %v3224_v58 = vadd.f32 %v5346_v41, %v3185_v38  ;;  %v3188_v8 = vadd.f32 %v4164_v47, %v2894_v13  ;;  %v3396_v27 = vsel %vm533_vm1, %v3356_v1, 0.0  ;;  %v2892_v6 = vadd.f32 %v2803_v4, %v5349_v48 }
 0x1f6   : > { %v4168_v61 = vpop.f32.mrf.mxu0  ;;  %3258 = vst.msk [vmem:[%s5373_s19 + $0x70] sm:$0xff] %vm533_vm1, %v3226_v36  ;;  %v4133_v0 = vpop.f32.mrf.mxu1  ;;  %v3297_v26 = vsel %vm533_vm1, %v3223_v49, 0.0  ;;  %v3296_v33 = vadd.f32 %v3295_v42, %v3294_v50  ;;  %v3397_v45 = vadd.f32 %v3396_v27, %v3395_v18  ;;  %v3400_v24 = vsel %vm533_vm1, %v3358_v43, 0.0 }
 0x1f7   : > { %3256 = vst.msk [vmem:[%s5373_s19 + $0x60] sm:$0xff] %vm533_vm1, %v3224_v58  ;;  %v3359_v47 = vmul.f32 %v3224_v58, %v3224_v58  ;;  %v3227_v17 = vadd.f32 %v5346_v41, %v3188_v8  ;;  %v3186_v20 = vadd.f32 %v5480_v2, %v2892_v6  ;;  %v2897_v53 = vadd.f32 %v4133_v0, %v5352_v5 }
 0x1f8   : > { %v5510_v63 = vpop.f32.mrf.mxu0  ;;  %v2816_v48 = vpop.f32.mrf.mxu1  ;;  %v3399_v55 = vadd.f32 %v3398_v52, %v3397_v45  ;;  %v3361_v31 = vmul.f32 %v3226_v36, %v3226_v36  ;;  %v3298_v49 = vadd.f32 %v3297_v26, %v3296_v33  ;;  %v3299_v11 = vsel %vm533_vm1, %v3224_v58, 0.0 }
 0x1f9   : > { %v2895_v22 = vadd.f32 %v2816_v48, %v5355_v57  ;;  %v3402_v62 = vsel %vm533_vm1, %v3359_v47, 0.0  ;;  %3259 = vst.msk [vmem:[%s5373_s19 + $0x78] sm:$0xff] %vm533_vm1, %v3227_v17  ;;  %v3225_v12 = vadd.f32 %v5346_v41, %v3186_v20  ;;  %v3191_v2 = vadd.f32 %v5489_v3, %v2897_v53 }
 0x1fa   : > { %v5519_v59 = vpop.f32.mrf.mxu0  ;;  %v4134_v32 = vpop.f32.mrf.mxu1  ;;  %v3300_v56 = vadd.f32 %v3299_v11, %v3298_v49  ;;  %v3401_v28 = vadd.f32 %v3400_v24, %v3399_v55  ;;  %v3362_v51 = vmul.f32 %v3227_v17, %v3227_v17  ;;  %v3305_v8 = vsel %vm533_vm1, %v3227_v17, 0.0 }
 0x1fb   : > { %v3189_v46 = vadd.f32 %v3110_v25, %v2895_v22  ;;  %v2898_v21 = vadd.f32 %v4134_v32, %v5358_v44  ;;  %3257 = vst.msk [vmem:[%s5373_s19 + $0x68] sm:$0xff] %vm533_vm1, %v3225_v12  ;;  %v3301_v57 = vsel %vm533_vm1, %v3225_v12, 0.0  ;;  %v3360_v54 = vmul.f32 %v3225_v12, %v3225_v12 }
 0x1fc   : > { %v3126_v9 = vpop.f32.mrf.mxu0  ;;  %v3230_v39 = vadd.f32 %v5346_v41, %v3191_v2  ;;  %v2819_v38 = vpop.f32.mrf.mxu1  ;;  %v3403_v3 = vadd.f32 %v3402_v62, %v3401_v28  ;;  %v3302_v43 = vadd.f32 %v3301_v57, %v3300_v56  ;;  %v3303_v25 = vsel %vm533_vm1, %v3226_v36, 0.0 }
 0x1fd   : > { %v3228_v40 = vadd.f32 %v5346_v41, %v3189_v46  ;;  %v3192_v1 = vadd.f32 %v4168_v61, %v2898_v21  ;;  %v3406_v44 = vsel %vm533_vm1, %v3361_v31, 0.0  ;;  %v3404_v4 = vsel %vm533_vm1, %v3360_v54, 0.0 }
 0x1fe   : > { %v4172_v5 = vpop.f32.mrf.mxu0  ;;  %3262 = vst.msk [vmem:[%s5373_s19 + $0x90] sm:$0xff] %vm533_vm1, %v3230_v39  ;;  %v2896_v18 = vadd.f32 %v2819_v38, %v5385_v30  ;;  %v4137_v50 = vpop.f32.mrf.mxu1  ;;  %v3304_v42 = vadd.f32 %v3303_v25, %v3302_v43  ;;  %v3405_v52 = vadd.f32 %v3404_v4, %v3403_v3  ;;  %v3408_v36 = vsel %vm533_vm1, %v3362_v51, 0.0 }
 0x1ff   : > { %3260 = vst.msk [vmem:[%s5373_s19 + $0x80] sm:$0xff] %vm533_vm1, %v3228_v40  ;;  %v3363_v61 = vmul.f32 %v3228_v40, %v3228_v40  ;;  %v3231_v27 = vadd.f32 %v5346_v41, %v3192_v1  ;;  %v2901_v0 = vadd.f32 %v4137_v50, %v5388_v35  ;;  %v3365_v45 = vmul.f32 %v3230_v39, %v3230_v39 }
 0x200   : > { %v3129_v13 = vpop.f32.mrf.mxu0  ;;  %v3190_v6 = vadd.f32 %v5510_v63, %v2896_v18  ;;  %v2832_v26 = vpop.f32.mrf.mxu1  ;;  %v3407_v33 = vadd.f32 %v3406_v44, %v3405_v52  ;;  %v3306_v47 = vadd.f32 %v3305_v8, %v3304_v42  ;;  %v3307_v17 = vsel %vm533_vm1, %v3228_v40, 0.0 }
 0x201   : > { %v2899_v24 = vadd.f32 %v2832_v26, %v5400_v34  ;;  %v3410_v20 = vsel %vm533_vm1, %v3363_v61, 0.0  ;;  %3263 = vst.msk [vmem:[%s5373_s19 + $0x98] sm:$0xff] %vm533_vm1, %v3231_v27  ;;  %v3195_v63 = vadd.f32 %v5519_v59, %v2901_v0  ;;  %v3366_v11 = vmul.f32 %v3231_v27, %v3231_v27 }
 0x202   : > { %v4175_v58 = vpop.f32.mrf.mxu0  ;;  %v3229_v53 = vadd.f32 %v5346_v41, %v3190_v6  ;;  %v4138_v48 = vpop.f32.mrf.mxu1  ;;  %v3308_v35 = vadd.f32 %v3307_v17, %v3306_v47  ;;  %v3409_v55 = vadd.f32 %v3408_v36, %v3407_v33  ;;  %v3313_v57 = vsel %vm533_vm1, %v3231_v27, 0.0 }
 0x203   : > { %v3193_v31 = vadd.f32 %v3126_v9, %v2899_v24  ;;  %v2902_v49 = vadd.f32 %v4138_v48, %v5403_v7  ;;  %v3234_v12 = vadd.f32 %v5346_v41, %v3195_v63  ;;  %v3311_v9 = vsel %vm533_vm1, %v3230_v39, 0.0  ;;  %v5741_v63 = vld [vmem:[#allocation41_spill] sm:$0xff] }
 0x204   : > { %v3142_v30 = vpop.f32.mrf.mxu0  ;;  %3261 = vst.msk [vmem:[%s5373_s19 + $0x88] sm:$0xff] %vm533_vm1, %v3229_v53  ;;  %v3309_v34 = vsel %vm533_vm1, %v3229_v53, 0.0  ;;  %v3364_v62 = vmul.f32 %v3229_v53, %v3229_v53  ;;  %v2835_v2 = vpop.f32.mrf.mxu1  ;;  %v3411_v32 = vadd.f32 %v3410_v20, %v3409_v55  ;;  %v3414_v7 = vsel %vm533_vm1, %v3365_v45, 0.0 }
 0x205   : > { %v3310_v59 = vadd.f32 %v3309_v34, %v3308_v35  ;;  %v3232_v56 = vadd.f32 %v5346_v41, %v3193_v31  ;;  %v3196_v28 = vadd.f32 %v4172_v5, %v2902_v49  ;;  %3266 = vst.msk [vmem:[%s5373_s19 + $0xb0] sm:$0xff] %vm533_vm1, %v3234_v12  ;;  %v2900_v21 = vadd.f32 %v2835_v2, %v5406_v15 }
 0x206   : > { %v4176_v22 = vpop.f32.mrf.mxu0  ;;  %v3412_v46 = vsel %vm533_vm1, %v3364_v62, 0.0  ;;  %v4141_v51 = vpop.f32.mrf.mxu1  ;;  %v3416_v39 = vsel %vm533_vm1, %v3366_v11, 0.0  ;;  %v3369_v15 = vmul.f32 %v3234_v12, %v3234_v12  ;;  %v2614_v48 = vadd.f32 %v5741_v63, %v5427_v37 }
 0x207   : > { %v3312_v54 = vadd.f32 %v3311_v9, %v3310_v59  ;;  %v3413_v38 = vadd.f32 %v3412_v46, %v3411_v32  ;;  %3264 = vst.msk [vmem:[%s5373_s19 + $0xa0] sm:$0xff] %vm533_vm1, %v3232_v56  ;;  %v3367_v3 = vmul.f32 %v3232_v56, %v3232_v56  ;;  %v3235_v43 = vadd.f32 %v5346_v41, %v3196_v28 }
 0x208   : > { %v3145_v5 = vpop.f32.mrf.mxu0  ;;  %v3194_v40 = vadd.f32 %v3129_v13, %v2900_v21  ;;  %v2905_v1 = vadd.f32 %v4141_v51, %v5414_v14  ;;  %v2848_v25 = vpop.f32.mrf.mxu1  ;;  %v3315_v50 = vsel %vm533_vm1, %v3232_v56, 0.0  ;;  %v3422_v35 = vsel %vm533_vm1, %v3369_v15, 0.0 }
 0x209   : > { %v3415_v44 = vadd.f32 %v3414_v7, %v3413_v38  ;;  %v3314_v4 = vadd.f32 %v3313_v57, %v3312_v54  ;;  %v2903_v18 = vadd.f32 %v2848_v25, %v5417_v10  ;;  %v3418_v8 = vsel %vm533_vm1, %v3367_v3, 0.0  ;;  %3267 = vst.msk [vmem:[%s5373_s19 + $0xb8] sm:$0xff] %vm533_vm1, %v3235_v43 }
 0x20a   : > { %v3233_v42 = vadd.f32 %v5346_v41, %v3194_v40  ;;  %v3199_v52 = vadd.f32 %v4175_v58, %v2905_v1  ;;  %v4142_v61 = vpop.f32.mrf.mxu1  ;;  %v4179_v6 = vpop.f32.mrf.mxu0  ;;  %v3370_v0 = vmul.f32 %v3235_v43, %v3235_v43  ;;  %v3321_v55 = vsel %vm533_vm1, %v3235_v43, 0.0 }
 0x20b   : > { %v3316_v13 = vadd.f32 %v3315_v50, %v3314_v4  ;;  %v3417_v36 = vadd.f32 %v3416_v39, %v3415_v44  ;;  %v3197_v14 = vadd.f32 %v3142_v30, %v2903_v18  ;;  %v2906_v27 = vadd.f32 %v4142_v61, %v5420_v19 }
 0x20c   : > { %3265 = vst.msk [vmem:[%s5373_s19 + $0xa8] sm:$0xff] %vm533_vm1, %v3233_v42  ;;  %v3317_v10 = vsel %vm533_vm1, %v3233_v42, 0.0  ;;  %v3368_v26 = vmul.f32 %v3233_v42, %v3233_v42  ;;  %v3238_v33 = vadd.f32 %v5346_v41, %v3199_v52  ;;  %v2851_v45 = vpop.f32.mrf.mxu1  ;;  %v3319_v30 = vsel %vm533_vm1, %v3234_v12, 0.0 }
 0x20d   : > { %v3419_v47 = vadd.f32 %v3418_v8, %v3417_v36  ;;  %v3318_v58 = vadd.f32 %v3317_v10, %v3316_v13  ;;  %v3236_v24 = vadd.f32 %v5346_v41, %v3197_v14  ;;  %v3200_v17 = vadd.f32 %v4176_v22, %v2906_v27  ;;  %v3158_v22 = vpop.f32.mrf.mxu0 }
 0x20e   : > { %v3420_v19 = vsel %vm533_vm1, %v3368_v26, 0.0  ;;  %3270 = vst.msk [vmem:[%s5373_s19 + $0xd0] sm:$0xff] %vm533_vm1, %v3238_v33  ;;  %v2904_v20 = vadd.f32 %v2851_v45, %v5423_v23  ;;  %v4145_v53 = vpop.f32.mrf.mxu1  ;;  %v3424_v2 = vsel %vm533_vm1, %v3370_v0, 0.0  ;;  %v3373_v56 = vmul.f32 %v3238_v33, %v3238_v33 }
 0x20f   : > { %v3320_v31 = vadd.f32 %v3319_v30, %v3318_v58  ;;  %v3421_v49 = vadd.f32 %v3420_v19, %v3419_v47  ;;  %3268 = vst.msk [vmem:[%s5373_s19 + $0xc0] sm:$0xff] %vm533_vm1, %v3236_v24  ;;  %v3371_v11 = vmul.f32 %v3236_v24, %v3236_v24  ;;  %v3239_v34 = vadd.f32 %v5346_v41, %v3200_v17  ;;  %v4180_v57 = vpop.f32.mrf.mxu0 }
 0x210   : > { %v3198_v62 = vadd.f32 %v3145_v5, %v2904_v20  ;;  %v2909_v23 = vadd.f32 %v4145_v53, %v5433_v60  ;;  %v2864_v12 = vpop.f32.mrf.mxu1  ;;  %v3323_v28 = vsel %vm533_vm1, %v3236_v24, 0.0  ;;  %v3327_v44 = vsel %vm533_vm1, %v3238_v33, 0.0 }
 0x211   : > { %v3423_v37 = vadd.f32 %v3422_v35, %v3421_v49  ;;  %v3322_v32 = vadd.f32 %v3321_v55, %v3320_v31  ;;  %v2907_v59 = vadd.f32 %v2864_v12, %v5436_v29  ;;  %3271 = vst.msk [vmem:[%s5373_s19 + $0xd8] sm:$0xff] %vm533_vm1, %v3239_v34  ;;  %v3426_v38 = vsel %vm533_vm1, %v3371_v11, 0.0  ;;  %v3161_v42 = vpop.f32.mrf.mxu0 }
 0x212   : > { %v3237_v9 = vadd.f32 %v5346_v41, %v3198_v62  ;;  %v3203_v7 = vadd.f32 %v4179_v6, %v2909_v23  ;;  %v4146_v46 = vpop.f32.mrf.mxu1  ;;  %v3374_v15 = vmul.f32 %v3239_v34, %v3239_v34  ;;  %v3430_v18 = vsel %vm533_vm1, %v3373_v56, 0.0 }
 0x213   : > { %v3324_v21 = vadd.f32 %v3323_v28, %v3322_v32  ;;  %v3425_v51 = vadd.f32 %v3424_v2, %v3423_v37  ;;  %v3201_v60 = vadd.f32 %v3158_v22, %v2907_v59  ;;  %v2910_v54 = vadd.f32 %v4146_v46, %v5443_v16 }
 0x214   : > { %3269 = vst.msk [vmem:[%s5373_s19 + $0xc8] sm:$0xff] %vm533_vm1, %v3237_v9  ;;  %v3325_v29 = vsel %vm533_vm1, %v3237_v9, 0.0  ;;  %v3372_v3 = vmul.f32 %v3237_v9, %v3237_v9  ;;  %v3242_v5 = vadd.f32 %v5346_v41, %v3203_v7  ;;  %v2867_v39 = vpop.f32.mrf.mxu1  ;;  %v3329_v52 = vsel %vm533_vm1, %v3239_v34, 0.0 }
 0x215   : > { %v3427_v43 = vadd.f32 %v3426_v38, %v3425_v51  ;;  %v3326_v40 = vadd.f32 %v3325_v29, %v3324_v21  ;;  %v3240_v1 = vadd.f32 %v5346_v41, %v3201_v60  ;;  %v3204_v25 = vadd.f32 %v4180_v57, %v2910_v54 }
 0x216   : > { %v3428_v16 = vsel %vm533_vm1, %v3372_v3, 0.0  ;;  %3274 = vst.msk [vmem:[%s5373_s19 + $0xf0] sm:$0xff] %vm533_vm1, %v3242_v5  ;;  %v2908_v4 = vadd.f32 %v2867_v39, %v2614_v48  ;;  %v3432_v6 = vsel %vm533_vm1, %v3374_v15, 0.0  ;;  %v3377_v45 = vmul.f32 %v3242_v5, %v3242_v5 }
 0x217   : > { %v3328_v50 = vadd.f32 %v3327_v44, %v3326_v40  ;;  %v3429_v8 = vadd.f32 %v3428_v16, %v3427_v43  ;;  %3272 = vst.msk [vmem:[%s5373_s19 + $0xe0] sm:$0xff] %vm533_vm1, %v3240_v1  ;;  %v3375_v61 = vmul.f32 %v3240_v1, %v3240_v1  ;;  %v3243_v13 = vadd.f32 %v5346_v41, %v3204_v25 }
 0x218   : > { %v3202_v36 = vadd.f32 %v3161_v42, %v2908_v4  ;;  %v3331_v0 = vsel %vm533_vm1, %v3240_v1, 0.0  ;;  %v3335_v19 = vsel %vm533_vm1, %v3242_v5, 0.0 }
 0x219   : > { %v3431_v14 = vadd.f32 %v3430_v18, %v3429_v8  ;;  %v3330_v27 = vadd.f32 %v3329_v52, %v3328_v50  ;;  %3275 = vst.msk [vmem:[%s5373_s19 + $0xf8] sm:$0xff] %vm533_vm1, %v3243_v13  ;;  %v3434_v47 = vsel %vm533_vm1, %v3375_v61, 0.0  ;;  %v3378_v20 = vmul.f32 %v3243_v13, %v3243_v13 }
 0x21a   : > { %v3241_v10 = vadd.f32 %v5346_v41, %v3202_v36  ;;  %v3438_v41 = vsel %vm533_vm1, %v3377_v45, 0.0  ;;  %v3337_v35 = vsel %vm533_vm1, %v3243_v13, 0.0 }
 0x21b   : > { %v3332_v26 = vadd.f32 %v3331_v0, %v3330_v27  ;;  %v3433_v33 = vadd.f32 %v3432_v6, %v3431_v14  ;;  %v3440_v49 = vsel %vm533_vm1, %v3378_v20, 0.0 }
 0x21c   : > { %3273 = vst.msk [vmem:[%s5373_s19 + $0xe8] sm:$0xff] %vm533_vm1, %v3241_v10  ;;  %v3333_v58 = vsel %vm533_vm1, %v3241_v10, 0.0  ;;  %v3376_v24 = vmul.f32 %v3241_v10, %v3241_v10 }
 0x21d   : > { %v3435_v17 = vadd.f32 %v3434_v47, %v3433_v33  ;;  %v3334_v30 = vadd.f32 %v3333_v58, %v3332_v26 }
 0x21e   : > { %v3436_v53 = vsel %vm533_vm1, %v3376_v24, 0.0 }
 0x21f   : > { %v3336_v63 = vadd.f32 %v3335_v19, %v3334_v30  ;;  %v3437_v48 = vadd.f32 %v3436_v53, %v3435_v17 }
 0x221   : > { %v3338_v55 = vadd.f32 %v3337_v35, %v3336_v63  ;;  %v3439_v31 = vadd.f32 %v3438_v41, %v3437_v48 }
 0x223   : > { %v3339_v22 = vrot.slane %v3338_v55, 4  ;;  %v3441_v11 = vadd.f32 %v3440_v49, %v3439_v31 }
 0x225   : > { %v3340_v34 = vadd.f32 %v3339_v22, %v3338_v55  ;;  %v3442_v62 = vrot.slane %v3441_v11, 4 }
 0x227   : > { %v3341_v23 = vrot.slane %v3340_v34, 2  ;;  %v3443_v12 = vadd.f32 %v3442_v62, %v3441_v11 }
 0x229   : > { %v3342_v2 = vadd.f32 %v3341_v23, %v3340_v34  ;;  %v3444_v37 = vrot.slane %v3443_v12, 2 }
 0x22b   : > { %v3343_v32 = vrot.slane %v3342_v2, 1  ;;  %v3445_v59 = vadd.f32 %v3444_v37, %v3443_v12 }
 0x22d   : > { %v3344_v56 = vadd.f32 %v3343_v32, %v3342_v2  ;;  %v3446_v28 = vrot.slane %v3445_v59, 1 }
 0x22f   : > { %3346 = vst.msk [vmem:[%s320_s21] sm:$0x1] %vm3345_vm0, %v3344_v56  ;;  %v3447_v9 = vadd.f32 %v3446_v28, %v3445_v59 }
 0x231   : > { %3448 = vst.msk [vmem:[%s323_s24] sm:$0x1] %vm3345_vm0, %v3447_v9 }
 0x232 PF: > { %s20_s29 = sadd.s32 1, %s4208_s29  }
 0x233   : > { %p17_p4 = scmp.ge.s32.totalorder %s20_s29, 4  }
 0x235   :  { %19 = sbr.rel (!%p17_p4) target bundleno = 2 (0x2), region = 108 }

</bundles_post_ra>
